<compile_context>
chip_gen: v7x
topology: tpu7x:2x2x1
jax: 0.10.0
libtpu: 0.0.40
codegen_flags: <defaults>
</compile_context>

<pallas_src>
import functools

import jax
import jax.numpy as jnp
from jax.experimental import pallas as pl
from jax.experimental.pallas import tpu as pltpu

SQRT_HALF = 0.7071067811865476  # 1/sqrt(2)


def _gelu_linear_kernel(x_ref, w_ref, b_ref, o_ref):
    """Fused exact-GELU + matmul + bias; accumulates directly into o_ref (f32).

    Grid axis 0: output-N tiles (parallel). Grid axis 1: K reduction (arbitrary).
    """
    k = pl.program_id(1)

    x = x_ref[...]
    # GELU(approximate='none'): 0.5 * x * (1 + erf(x / sqrt(2)))
    g = 0.5 * x * (1.0 + jax.lax.erf(x * SQRT_HALF))
    partial = jnp.dot(g, w_ref[...], preferred_element_type=jnp.float32)

    @pl.when(k == 0)
    def _():
        # First reduction step: init with bias (broadcast (1,tn)->(M,tn)) + partial.
        o_ref[...] = b_ref[...] + partial

    @pl.when(k > 0)
    def _():
        o_ref[...] = o_ref[...] + partial


@functools.partial(jax.jit, static_argnames=("tk", "tn"))
def gelu_dropout_linear_dropout(x, w, b, *, tk=1024, tn=512):
    """x: [..., K] ; w: [K, N] ; b: [N] -> [..., N]."""
    *lead, K = x.shape
    N = w.shape[1]
    M = 1
    for d in lead:
        M *= d

    x2 = x.reshape(M, K)  # no pad: (M, ...) blocks cover the full row extent

    assert K % tk == 0, "in_features must be divisible by the K tile"
    assert N % tn == 0, "out_features must be divisible by the N tile"
    grid = (N // tn, K // tk)  # reduction axis last ("arbitrary")

    cost = pl.CostEstimate(
        flops=2 * M * K * N,
        transcendentals=M * K,
        bytes_accessed=(M * K + K * N + M * N + N) * x.dtype.itemsize,
    )

    out = pl.pallas_call(
        _gelu_linear_kernel,
        out_shape=jax.ShapeDtypeStruct((M, N), jnp.float32),
        grid_spec=pltpu.PrefetchScalarGridSpec(
            num_scalar_prefetch=0,
            grid=grid,
            in_specs=[
                pl.BlockSpec((M, tk), lambda n, k: (0, k)),    # activations tile
                pl.BlockSpec((tk, tn), lambda n, k: (k, n)),   # weight tile (the HBM-bound stream)
                pl.BlockSpec((1, tn), lambda n, k: (0, n)),    # bias tile
            ],
            out_specs=pl.BlockSpec((M, tn), lambda n, k: (0, n)),
        ),
        compiler_params=pltpu.CompilerParams(
            dimension_semantics=("parallel", "arbitrary"),
        ),
        cost_estimate=cost,
    )(x2, w, b.reshape(1, N))

    return out.reshape(*lead, N).astype(x.dtype)


def _reference(x, w, b):
    g = 0.5 * x * (1.0 + jax.lax.erf(x * SQRT_HALF))
    return jnp.einsum("bhwk,kn->bhwn", g, w) + b


if __name__ == "__main__":
    key = jax.random.PRNGKey(0)
    kx, kw, kb = jax.random.split(key, 3)

    B, H, W, K, N = 1, 7, 7, 4096, 1024  # shapes implied by the module

    x = jax.random.normal(kx, (B, H, W, K), dtype=jnp.float32)
    # Deterministic Linear params (PyTorch stores weight as [out, in]; we use [in, out]).
    w = jax.random.normal(kw, (K, N), dtype=jnp.float32) * (1.0 / jnp.sqrt(K))
    b = jax.random.normal(kb, (N,), dtype=jnp.float32) * 0.01

    out = gelu_dropout_linear_dropout(x, w, b)
    out = jax.block_until_ready(out)

    ref = _reference(x, w, b)
    assert out.shape == (B, H, W, N), out.shape
    assert jnp.allclose(out, ref, atol=1e-3, rtol=1e-3), float(jnp.max(jnp.abs(out - ref)))

    print("KERNEL_OK")
</pallas_src>

<mosaic_0001>
module attributes {stable_mosaic.version = 11 : i64} {
  func.func @_gelu_linear_kernel(%arg0: i32, %arg1: i32, %arg2: memref<49x1024xf32, #tpu.memory_space<vmem>>, %arg3: memref<1024x512xf32, #tpu.memory_space<vmem>>, %arg4: memref<1x512xf32, #tpu.memory_space<vmem>>, %arg5: memref<49x512xf32, #tpu.memory_space<vmem>>) attributes {dimension_semantics = [#tpu.dimension_semantics<parallel>, #tpu.dimension_semantics<arbitrary>], iteration_bounds = array<i64: 2, 4>, scalar_prefetch = 0 : i64, scratch_operands = 0 : i64, tpu.core_type = #tpu.core_type<tc>, window_params = [{transform_indices = @transform_0, window_bounds = array<i64: 49, 1024>}, {transform_indices = @transform_1, window_bounds = array<i64: 1024, 512>}, {transform_indices = @transform_2, window_bounds = array<i64: 1, 512>}, {transform_indices = @transform_3, window_bounds = array<i64: 49, 512>}]} {
    %c0 = arith.constant 0 : index
    %c0_0 = arith.constant 0 : index
    %0 = vector.load %arg2[%c0, %c0_0] : memref<49x1024xf32, #tpu.memory_space<vmem>>, vector<49x1024xf32>
    %cst = arith.constant 5.000000e-01 : f32
    %1 = vector.broadcast %cst : f32 to vector<49x1024xf32>
    %2 = arith.mulf %1, %0 : vector<49x1024xf32>
    %cst_1 = arith.constant 0.707106769 : f32
    %3 = vector.broadcast %cst_1 : f32 to vector<49x1024xf32>
    %4 = arith.mulf %0, %3 : vector<49x1024xf32>
    %5 = math.erf %4 : vector<49x1024xf32>
    %cst_2 = arith.constant 1.000000e+00 : f32
    %6 = vector.broadcast %cst_2 : f32 to vector<49x1024xf32>
    %7 = arith.addf %6, %5 : vector<49x1024xf32>
    %8 = arith.mulf %2, %7 : vector<49x1024xf32>
    %c0_3 = arith.constant 0 : index
    %c0_4 = arith.constant 0 : index
    %9 = vector.load %arg3[%c0_3, %c0_4] : memref<1024x512xf32, #tpu.memory_space<vmem>>, vector<1024x512xf32>
    %cst_5 = arith.constant dense<0.000000e+00> : vector<49x512xf32>
    %10 = tpu.matmul %8, %9, %cst_5 {dimension_numbers = #tpu.dot_dimension_numbers<[1], [0], [0], [1], [0, 0, 1, 1], [], []>} : vector<49x1024xf32>, vector<1024x512xf32>, vector<49x512xf32> -> vector<49x512xf32>
    %c0_i32 = arith.constant 0 : i32
    %11 = arith.cmpi eq, %arg1, %c0_i32 : i32
    %12 = arith.extui %11 : i1 to i32
    %c0_i32_6 = arith.constant 0 : i32
    %13 = arith.cmpi ne, %12, %c0_i32_6 : i32
    scf.if %13 {
      %c0_9 = arith.constant 0 : index
      %c0_10 = arith.constant 0 : index
      %17 = vector.load %arg4[%c0_9, %c0_10] : memref<1x512xf32, #tpu.memory_space<vmem>>, vector<1x512xf32>
      %18 = vector.broadcast %17 : vector<1x512xf32> to vector<49x512xf32>
      %19 = arith.addf %18, %10 : vector<49x512xf32>
      %c0_11 = arith.constant 0 : index
      %c0_12 = arith.constant 0 : index
      %20 = vector.load %arg5[%c0_11, %c0_12] : memref<49x512xf32, #tpu.memory_space<vmem>>, vector<49x512xf32>
      tpu.vector_store %arg5[%c0_11, %c0_12], %19 {strides = array<i32>} : memref<49x512xf32, #tpu.memory_space<vmem>>, vector<49x512xf32>,
    } else {
    }
    %c0_i32_7 = arith.constant 0 : i32
    %14 = arith.cmpi sgt, %arg1, %c0_i32_7 : i32
    %15 = arith.extui %14 : i1 to i32
    %c0_i32_8 = arith.constant 0 : i32
    %16 = arith.cmpi ne, %15, %c0_i32_8 : i32
    scf.if %16 {
      %c0_9 = arith.constant 0 : index
      %c0_10 = arith.constant 0 : index
      %17 = vector.load %arg5[%c0_9, %c0_10] : memref<49x512xf32, #tpu.memory_space<vmem>>, vector<49x512xf32>
      %18 = arith.addf %17, %10 : vector<49x512xf32>
      %c0_11 = arith.constant 0 : index
      %c0_12 = arith.constant 0 : index
      %19 = vector.load %arg5[%c0_11, %c0_12] : memref<49x512xf32, #tpu.memory_space<vmem>>, vector<49x512xf32>
      tpu.vector_store %arg5[%c0_11, %c0_12], %18 {strides = array<i32>} : memref<49x512xf32, #tpu.memory_space<vmem>>, vector<49x512xf32>,
    } else {
    }
    return
  }
  func.func @transform_0(%arg0: i32, %arg1: i32) -> (i32, i32) {
    %c0_i32 = arith.constant 0 : i32
    %c0_i32_0 = arith.constant 0 : i32
    return %c0_i32, %arg1 : i32, i32
  }
  func.func @transform_1(%arg0: i32, %arg1: i32) -> (i32, i32) {
    %c0_i32 = arith.constant 0 : i32
    return %arg1, %arg0 : i32, i32
  }
  func.func @transform_2(%arg0: i32, %arg1: i32) -> (i32, i32) {
    %c0_i32 = arith.constant 0 : i32
    %c0_i32_0 = arith.constant 0 : i32
    return %c0_i32, %arg0 : i32, i32
  }
  func.func @transform_3(%arg0: i32, %arg1: i32) -> (i32, i32) {
    %c0_i32 = arith.constant 0 : i32
    %c0_i32_0 = arith.constant 0 : i32
    return %c0_i32, %arg0 : i32, i32
  }
}

</mosaic_0001>

<bundles_post_ra>
// kernel: gelu_dropout_linear_dropout.1
= control target key start
LH: loop header
LB: loop body
LE: loop exit
PB: predicated region body
PF: predicated region fallthrough
CT: control target
= control target key end

     0   :  { %s4984_s0 = inlined_call_operand.vmem [shape: f32[49,4096], index: 0, kind: input, shape index: {}]   ;;  %s4985_s1 = inlined_call_operand.hbm [shape: f32[4096,1024], index: 1, kind: input, shape index: {}]   ;;  %s4986_s2 = inlined_call_operand.hbm [shape: f32[1,1024], index: 2, kind: input, shape index: {}]   ;;  %s4987_s3 = inlined_call_operand.vmem [shape: f32[49,1024], index: 3, kind: output, shape index: {}]  }
   0x1   :  { %4995 = sst [smem:[#allocation18_spill]] %s4984_s0 }
   0x2   :  { %4996 = sst [smem:[#allocation19_spill]] %s4985_s1 }
   0x3   :  { %8 = vsyncpa [#allocation4], 0 }
   0x4   :  { %10 = vsyncpa [#allocation4 + $0x1], 0 }
   0x5   :  { %11 = vsyncpa [#allocation6], 0 }
   0x6   :  { %13 = vsyncpa [#allocation6 + $0x1], 0  ;;  %s3509_s12 = smov 0   ;;  %s3511_s13 = smov 0  }
   0x7   :  { %s3513_s14 = smov 0   ;;  %s3515_s15 = smov 0  }
   0x8   :  { %s3517_s16 = smov 0   ;;  %s3519_s17 = smov 0  }
   0x9   :  { %s3521_s18 = smov 0   ;;  %s3523_s19 = smov 0  }
   0xa   :  { %s3525_s20 = smov 0   ;;  %s3527_s21 = smov 0  }
   0xb   :  { %s3529_s22 = smov 0   ;;  %s3531_s23 = smov 0  }
   0xc   :  { %s3533_s24 = smov 0  }
   0xd LB: > { %4997 = sst [smem:[#allocation10_spill]] %s3454_s17  ;;  %s2467_s25 = sadd.s32 4294967295, %s3482_s24   ;;  %s3482_s24 = sphi %s3533_s24, %s19_s24   ;;  %s3478_s23 = sphi %s3531_s23, %s5033_s23   ;;  %s3474_s22 = sphi %s3529_s22, %s5023_s22   ;;  %s3470_s21 = sphi %s3527_s21, %s5032_s21   ;;  %s3466_s20 = sphi %s3525_s20, %s5022_s20   ;;  %s3462_s19 = sphi %s3523_s19, %s5021_s19   ;;  %s3458_s18 = sphi %s3521_s18, %s5020_s18   ;;  %s3454_s17 = sphi %s3519_s17, %s5031_s17   ;;  %s3450_s16 = sphi %s3517_s16, %s5030_s16   ;;  %s3446_s15 = sphi %s3515_s15, %s5029_s15   ;;  %s3442_s14 = sphi %s3513_s14, %s5028_s14   ;;  %s3438_s13 = sphi %s3511_s13, %s5027_s13   ;;  %s3434_s12 = sphi %s3509_s12, %s5026_s12  }
   0xe   : > { %4998 = sst [smem:[#allocation11_spill]] %s3462_s19  ;;  %s28_s26 = sadd.s32 1, %s3474_s22 }
   0xf   : > { %4999 = sst [smem:[#allocation12_spill]] %s3474_s22  ;;  %p29_p0 = scmp.ge.s32.totalorder %s28_s26, 4 }
  0x10   : > { %s31_s27 = sadd.s32 1, %s3478_s23  ;;  %s38_s28 = sadd.s32 1, %s3462_s19 }
  0x11   : > { %p45_p1 = scmp.ne.s32.totalorder %s3462_s19, %s3458_s18  ;;  %s5035_s26 = smov (%p29_p0, %s28_s26), 0 }
  0x12   : > { %5000 = sst [smem:[#allocation13_spill]] %s5035_s26  ;;  %s5037_s27 = smov (!%p29_p0, %s31_s27), %s3478_s23 }
  0x13   : > { %s35_s29 = ssub.s32 %s3474_s22, %s5035_s26  ;;  %p46_p2 = scmp.eq.s32.totalorder %s3482_s24, 0 }
  0x14   : > { %p33_p3 = scmp.ge.s32.totalorder %s5037_s27, 2  ;;  %p36_p4 = scmp.eq.s32.totalorder %s35_s29, 0 }
  0x15   : > { %p3588_p5 = por %p46_p2, %p45_p1  ;;  %s66_s4 = sadd.s32 1, %s3454_s17 }
  0x16   : > { %s5039_s27 = smov (%p33_p3, %s5037_s27), 0  ;;  %p73_p6 = scmp.ne.s32.totalorder %s3454_s17, %s3450_s16 }
  0x17   : > { %5002 = sst [smem:[#allocation14_spill]] %s5039_s27  ;;  %s62_s6 = ssub.s32 %s3478_s23, %s5039_s27 }
  0x18   : > { %s3596_s5 = scalar_select %p36_p4, %s3462_s19, %s38_s28  }
  0x19   : > { %s63_s7 = sor.u32 %s62_s6, %s35_s29  ;;  %p79_p7 = scmp.ne.s32.totalorder %s3450_s16, %s3446_s15 }
  0x1a   : > { %5003 = sst [smem:[#allocation15_spill]] %s3596_s5  ;;  %p64_p8 = scmp.eq.s32.totalorder %s63_s7, 0 }
  0x1b   : > { %p3606_p9 = por %p73_p6, %p46_p2  ;;  %p80_p10 = scmp.eq.s32.totalorder %s2467_s25, 0 }
  0x1c   : > { %p90_p11 = scmp.eq.s32.totalorder %s62_s6, 0  ;;  %s92_s11 = sadd.s32 1, %s3442_s14 }
  0x1d   : > { %s3613_s9 = scalar_select %p64_p8, %s3454_s17, %s66_s4  }
  0x1e   : > { %p3615_p12 = por %p80_p10, %p79_p7  ;;  %p99_p13 = scmp.ne.s32.totalorder %s3442_s14, %s3438_s13 }
  0x1f   : > { %5005 = sst [smem:[#allocation16_spill]] %s3613_s9  ;;  %p105_p0 = scmp.ne.s32.totalorder %s3438_s13, %s3434_s12 }
  0x20   : > { %s5006_s10 = scalar_select %p3615_p12, 1, 0 }
  0x21   : > { %s3621_s28 = scalar_select %p90_p11, %s3442_s14, %s92_s11  }
  0x22   : > { %p129_p1 = scmp.eq.s32.totalorder %s2467_s25, 7  ;;  %p3631_p3 = por %p99_p13, %p46_p2 }
  0x23   : > { %5007 = sst [smem:[#allocation17_spill]] %s3621_s28  ;;  %p3635_p4 = por %p105_p0, %p80_p10 }
  0x24   : > { %p3639_p6 = por %p129_p1, %p99_p13  ;;  %p2470_p7 = scmp.ge.s32.totalorder %s3482_s24, 8 }
  0x25   : > { %s5009_s29 = scalar_select %p3635_p4, 1, 0 }
  0x26   : > { %s5010_s4 = scalar_select %p3639_p6, 1, 0 }
  0x27   : > { %151 = sbr.rel (%p2470_p7) target bundleno = 144 (0x90), region = 16 }
  0x2e   : > { %154 = sbr.rel (!%p3588_p5) target bundleno = 85 (0x55), region = 20  ;;  %s156_s12 = sand.u32 (%p3588_p5), 1, %s3462_s19  }
  0x2f   : > { %s2490_s25 = sshll.u32 (%p3588_p5), %s3474_s22, 6  ;;  %s3090_s6 = smul.u32 (%p3588_p5), 448, %s156_s12 }
  0x30   : > { %s5011_s0 = sld [smem:[#allocation18_spill]] (%p3588_p5) }
  0x31   : > { %s3659_s30 = scalar_lea.vmem (%p3588_p5), [#allocation2], %s3090_s6 }
  0x36   : > { %s3651_s27 = scalar_lea.vmem %s5011_s0, %s2490_s25 }
  0x37   : > { %v174_v0 = vld [vmem:[%s3651_s27] sm:$0xff]  ;;  %v176_v1 = vld [vmem:[%s3651_s27 + $0x8] sm:$0xff]  ;;  %v178_v2 = vld [vmem:[%s3651_s27 + $0x10] sm:$0xff] }
  0x38   : > { %v180_v3 = vld [vmem:[%s3651_s27 + $0x18] sm:$0xff]  ;;  %v182_v4 = vld [vmem:[%s3651_s27 + $0x20] sm:$0xff]  ;;  %v184_v5 = vld [vmem:[%s3651_s27 + $0x28] sm:$0xff]  ;;  %175 = vst [vmem:[%s3659_s30] sm:$0xff] %v174_v0 }
  0x39   : > { %177 = vst [vmem:[%s3659_s30 + $0x8] sm:$0xff] %v176_v1  ;;  %179 = vst [vmem:[%s3659_s30 + $0x10] sm:$0xff] %v178_v2  ;;  %v186_v6 = vld [vmem:[%s3651_s27 + $0x30] sm:$0xff]  ;;  %v188_v7 = vld [vmem:[%s3651_s27 + $0x38] sm:$0xff] }
  0x3a   : > { %181 = vst [vmem:[%s3659_s30 + $0x18] sm:$0xff] %v180_v3  ;;  %183 = vst [vmem:[%s3659_s30 + $0x20] sm:$0xff] %v182_v4  ;;  %v190_v8 = vld [vmem:[%s3651_s27 + $0x100] sm:$0xff]  ;;  %v192_v9 = vld [vmem:[%s3651_s27 + $0x108] sm:$0xff] }
  0x3b   : > { %185 = vst [vmem:[%s3659_s30 + $0x28] sm:$0xff] %v184_v5  ;;  %187 = vst [vmem:[%s3659_s30 + $0x30] sm:$0xff] %v186_v6  ;;  %v194_v10 = vld [vmem:[%s3651_s27 + $0x110] sm:$0xff]  ;;  %v196_v11 = vld [vmem:[%s3651_s27 + $0x118] sm:$0xff] }
  0x3c   : > { %189 = vst [vmem:[%s3659_s30 + $0x38] sm:$0xff] %v188_v7  ;;  %191 = vst [vmem:[%s3659_s30 + $0x40] sm:$0xff] %v190_v8  ;;  %v198_v12 = vld [vmem:[%s3651_s27 + $0x120] sm:$0xff]  ;;  %v200_v13 = vld [vmem:[%s3651_s27 + $0x128] sm:$0xff] }
  0x3d   : > { %193 = vst [vmem:[%s3659_s30 + $0x48] sm:$0xff] %v192_v9  ;;  %195 = vst [vmem:[%s3659_s30 + $0x50] sm:$0xff] %v194_v10  ;;  %v202_v14 = vld [vmem:[%s3651_s27 + $0x130] sm:$0xff]  ;;  %v204_v15 = vld [vmem:[%s3651_s27 + $0x138] sm:$0xff] }
  0x3e   : > { %197 = vst [vmem:[%s3659_s30 + $0x58] sm:$0xff] %v196_v11  ;;  %199 = vst [vmem:[%s3659_s30 + $0x60] sm:$0xff] %v198_v12  ;;  %v206_v16 = vld [vmem:[%s3651_s27 + $0x200] sm:$0xff]  ;;  %v208_v17 = vld [vmem:[%s3651_s27 + $0x208] sm:$0xff] }
  0x3f   : > { %201 = vst [vmem:[%s3659_s30 + $0x68] sm:$0xff] %v200_v13  ;;  %203 = vst [vmem:[%s3659_s30 + $0x70] sm:$0xff] %v202_v14  ;;  %v210_v18 = vld [vmem:[%s3651_s27 + $0x210] sm:$0xff]  ;;  %v212_v19 = vld [vmem:[%s3651_s27 + $0x218] sm:$0xff] }
  0x40   : > { %205 = vst [vmem:[%s3659_s30 + $0x78] sm:$0xff] %v204_v15  ;;  %207 = vst [vmem:[%s3659_s30 + $0x80] sm:$0xff] %v206_v16  ;;  %v214_v20 = vld [vmem:[%s3651_s27 + $0x220] sm:$0xff]  ;;  %v216_v21 = vld [vmem:[%s3651_s27 + $0x228] sm:$0xff] }
  0x41   : > { %209 = vst [vmem:[%s3659_s30 + $0x88] sm:$0xff] %v208_v17  ;;  %211 = vst [vmem:[%s3659_s30 + $0x90] sm:$0xff] %v210_v18  ;;  %v218_v22 = vld [vmem:[%s3651_s27 + $0x230] sm:$0xff]  ;;  %v220_v23 = vld [vmem:[%s3651_s27 + $0x238] sm:$0xff] }
  0x42   : > { %213 = vst [vmem:[%s3659_s30 + $0x98] sm:$0xff] %v212_v19  ;;  %215 = vst [vmem:[%s3659_s30 + $0xa0] sm:$0xff] %v214_v20  ;;  %v222_v24 = vld [vmem:[%s3651_s27 + $0x300] sm:$0xff]  ;;  %v224_v25 = vld [vmem:[%s3651_s27 + $0x308] sm:$0xff] }
  0x43   : > { %217 = vst [vmem:[%s3659_s30 + $0xa8] sm:$0xff] %v216_v21  ;;  %219 = vst [vmem:[%s3659_s30 + $0xb0] sm:$0xff] %v218_v22  ;;  %v226_v26 = vld [vmem:[%s3651_s27 + $0x310] sm:$0xff]  ;;  %v228_v27 = vld [vmem:[%s3651_s27 + $0x318] sm:$0xff] }
  0x44   : > { %221 = vst [vmem:[%s3659_s30 + $0xb8] sm:$0xff] %v220_v23  ;;  %223 = vst [vmem:[%s3659_s30 + $0xc0] sm:$0xff] %v222_v24  ;;  %v230_v28 = vld [vmem:[%s3651_s27 + $0x320] sm:$0xff]  ;;  %v232_v29 = vld [vmem:[%s3651_s27 + $0x328] sm:$0xff] }
  0x45   : > { %225 = vst [vmem:[%s3659_s30 + $0xc8] sm:$0xff] %v224_v25  ;;  %227 = vst [vmem:[%s3659_s30 + $0xd0] sm:$0xff] %v226_v26  ;;  %v234_v30 = vld [vmem:[%s3651_s27 + $0x330] sm:$0xff]  ;;  %v236_v31 = vld [vmem:[%s3651_s27 + $0x338] sm:$0xff] }
  0x46   : > { %229 = vst [vmem:[%s3659_s30 + $0xd8] sm:$0xff] %v228_v27  ;;  %231 = vst [vmem:[%s3659_s30 + $0xe0] sm:$0xff] %v230_v28  ;;  %v238_v32 = vld [vmem:[%s3651_s27 + $0x400] sm:$0xff]  ;;  %v240_v33 = vld [vmem:[%s3651_s27 + $0x408] sm:$0xff] }
  0x47   : > { %233 = vst [vmem:[%s3659_s30 + $0xe8] sm:$0xff] %v232_v29  ;;  %235 = vst [vmem:[%s3659_s30 + $0xf0] sm:$0xff] %v234_v30  ;;  %v242_v34 = vld [vmem:[%s3651_s27 + $0x410] sm:$0xff]  ;;  %v244_v35 = vld [vmem:[%s3651_s27 + $0x418] sm:$0xff] }
  0x48   : > { %237 = vst [vmem:[%s3659_s30 + $0xf8] sm:$0xff] %v236_v31  ;;  %239 = vst [vmem:[%s3659_s30 + $0x100] sm:$0xff] %v238_v32  ;;  %v246_v36 = vld [vmem:[%s3651_s27 + $0x420] sm:$0xff]  ;;  %v248_v37 = vld [vmem:[%s3651_s27 + $0x428] sm:$0xff] }
  0x49   : > { %241 = vst [vmem:[%s3659_s30 + $0x108] sm:$0xff] %v240_v33  ;;  %243 = vst [vmem:[%s3659_s30 + $0x110] sm:$0xff] %v242_v34  ;;  %v250_v38 = vld [vmem:[%s3651_s27 + $0x430] sm:$0xff]  ;;  %v252_v39 = vld [vmem:[%s3651_s27 + $0x438] sm:$0xff] }
  0x4a   : > { %245 = vst [vmem:[%s3659_s30 + $0x118] sm:$0xff] %v244_v35  ;;  %247 = vst [vmem:[%s3659_s30 + $0x120] sm:$0xff] %v246_v36  ;;  %v254_v40 = vld [vmem:[%s3651_s27 + $0x500] sm:$0xff]  ;;  %v256_v41 = vld [vmem:[%s3651_s27 + $0x508] sm:$0xff] }
  0x4b   : > { %249 = vst [vmem:[%s3659_s30 + $0x128] sm:$0xff] %v248_v37  ;;  %251 = vst [vmem:[%s3659_s30 + $0x130] sm:$0xff] %v250_v38  ;;  %v258_v42 = vld [vmem:[%s3651_s27 + $0x510] sm:$0xff]  ;;  %v260_v43 = vld [vmem:[%s3651_s27 + $0x518] sm:$0xff] }
  0x4c   : > { %253 = vst [vmem:[%s3659_s30 + $0x138] sm:$0xff] %v252_v39  ;;  %255 = vst [vmem:[%s3659_s30 + $0x140] sm:$0xff] %v254_v40  ;;  %v262_v44 = vld [vmem:[%s3651_s27 + $0x520] sm:$0xff]  ;;  %v264_v45 = vld [vmem:[%s3651_s27 + $0x528] sm:$0xff] }
  0x4d   : > { %257 = vst [vmem:[%s3659_s30 + $0x148] sm:$0xff] %v256_v41  ;;  %259 = vst [vmem:[%s3659_s30 + $0x150] sm:$0xff] %v258_v42  ;;  %v266_v46 = vld [vmem:[%s3651_s27 + $0x530] sm:$0xff]  ;;  %v268_v47 = vld [vmem:[%s3651_s27 + $0x538] sm:$0xff] }
  0x4e   : > { %261 = vst [vmem:[%s3659_s30 + $0x158] sm:$0xff] %v260_v43  ;;  %263 = vst [vmem:[%s3659_s30 + $0x160] sm:$0xff] %v262_v44  ;;  %v270_v48 = vld [vmem:[%s3651_s27 + $0x600] sm:$0xff]  ;;  %v272_v49 = vld [vmem:[%s3651_s27 + $0x608] sm:$0xff] }
  0x4f   : > { %265 = vst [vmem:[%s3659_s30 + $0x168] sm:$0xff] %v264_v45  ;;  %267 = vst [vmem:[%s3659_s30 + $0x170] sm:$0xff] %v266_v46  ;;  %v274_v50 = vld [vmem:[%s3651_s27 + $0x610] sm:$0xff]  ;;  %v276_v51 = vld [vmem:[%s3651_s27 + $0x618] sm:$0xff] }
  0x50   : > { %269 = vst [vmem:[%s3659_s30 + $0x178] sm:$0xff] %v268_v47  ;;  %271 = vst [vmem:[%s3659_s30 + $0x180] sm:$0xff] %v270_v48  ;;  %v278_v52 = vld [vmem:[%s3651_s27 + $0x620] sm:$0xff]  ;;  %v280_v53 = vld [vmem:[%s3651_s27 + $0x628] sm:$0xff] }
  0x51   : > { %273 = vst [vmem:[%s3659_s30 + $0x188] sm:$0xff] %v272_v49  ;;  %275 = vst [vmem:[%s3659_s30 + $0x190] sm:$0xff] %v274_v50  ;;  %v282_v54 = vld [vmem:[%s3651_s27 + $0x630] sm:$0xff]  ;;  %v284_v55 = vld [vmem:[%s3651_s27 + $0x638] sm:$0xff] }
  0x52   : > { %277 = vst [vmem:[%s3659_s30 + $0x198] sm:$0xff] %v276_v51  ;;  %279 = vst [vmem:[%s3659_s30 + $0x1a0] sm:$0xff] %v278_v52 }
  0x53   : > { %281 = vst [vmem:[%s3659_s30 + $0x1a8] sm:$0xff] %v280_v53  ;;  %283 = vst [vmem:[%s3659_s30 + $0x1b0] sm:$0xff] %v282_v54 }
  0x54   : > { %285 = vst [vmem:[%s3659_s30 + $0x1b8] sm:$0xff] %v284_v55 }
  0x55 PF: > { %s292_s12 = sand.u32 1, %s3454_s17   ;;  %s2475_s25 = sshll.u32 %s3478_s23, 2 }
  0x56   : > { %s2473_s6 = sshll.u32 %s292_s12, 12  ;;  %s2491_s7 = sshll.u32 %s3474_s22, 10 }
  0x57   : > { %s303_s11 = sadd.s32 %s2491_s7, %s2475_s25  ;;  %s296_s0 = scalar_lea.vmem [#allocation3], %s2473_s6 }
  0x58   : > { %s306_s26 = sshll.u32 %s296_s0, 4  ;;  %s2477_s5 = sshll.u32 %s303_s11, 7  ;;  %s3770_s26 = int_to_ptr.vmem [resolvable:$true] %s306_s26 }
  0x59   : > { %s5012_s1 = sld [smem:[#allocation19_spill]]  ;;  %s3777_s30 = scalar_lea.sflag [#allocation4], %s292_s12 }
  0x5f   : > { %s3775_s27 = scalar_lea.hbm %s5012_s1, %s2477_s5  ;;  %s3320_s6 = scalar_lea.hbm %s5012_s1, 524288 }
  0x60   : > { %s3316_s17 = scalar_lea.hbm %s3775_s27, 65536  ;;  %p3321_p10 = scmp.lt.u32.totalorder %s3775_s27, %s5012_s1 }
  0x61   : > { %p3317_p2 = scmp.ne.s32.totalorder %s3775_s27, %s3316_s17  ;;  %p3322_p11 = scmp.lt.u32.totalorder %s3320_s6, %s3316_s17 }
  0x62   : > { %p3324_p0 = scmp.lt.u32.totalorder %s3316_s17, %s3775_s27 }
  0x63   : > { %p3318_p5 = pnand %p3317_p2, %p3606_p9  ;;  %p3323_p13 = por %p3322_p11, %p3321_p10 }
  0x65   : > { %p3319_p8 = pneg %p3318_p5  ;;  %p3325_p1 = por %p3324_p0, %p3323_p13 }
  0x67   : > { %p3326_p7 = pnand %p3325_p1, %p3319_p8 }
  0x69   : > { %3329 = shalt.err (!%p3326_p7)
}
  0x6a   : > { %s3330_s19 = scalar_lea.vmem %s3770_s26, 65536  ;;  %s3484_s5 = smov [#allocation3]  }
  0x6b   : > { %p3331_p2 = scmp.ne.s32.totalorder %s3770_s26, %s3330_s19  ;;  %s3334_s9 = sshll.u32 %s3484_s5, 4  ;;  %s3335_s9 = int_to_ptr.vmem [resolvable:$false] %s3334_s9 }
  0x6c   : > { %s3336_s12 = scalar_lea.vmem %s3335_s9, 131072  ;;  %p3337_p4 = scmp.lt.s32.totalorder %s3770_s26, %s3335_s9 }
  0x6d   : > { %p3332_p5 = pnand %p3331_p2, %p3606_p9  ;;  %p3338_p12 = scmp.lt.s32.totalorder %s3336_s12, %s3330_s19 }
  0x6f   : > { %p3333_p6 = pneg %p3332_p5  ;;  %p3339_p10 = por %p3338_p12, %p3337_p4 }
  0x71   : > { %p3340_p11 = pnand %p3339_p10, %p3333_p6 }
  0x73   : > { %3343 = shalt.err (!%p3340_p11)
}
  0x74   : > { %s3485_s17 = smov 1024   ;;  %s3486_s0 = smov 512  }
  0x75   : > { %s3487_s25 = smov 32   ;;  %s316_s6 = sand.u32 1, %s3442_s14  }
  0x76   : > { %3093 = dma.hbm_to_vmem [thread:$0]  (%p3606_p9), %s3775_s27, 65536, %s3770_s26, %s3777_s30, %s3485_s17, %s3486_s0, %s3487_s25  }
  0x77   : > { %s2492_s7 = sshll.u32 %s3478_s23, 6  ;;  %s2478_s11 = sshll.u32 %s316_s6, 2 }
  0x78   : > { %s3806_s9 = scalar_lea.hbm %s4986_s2, %s2492_s7  ;;  %s320_s12 = scalar_lea.vmem [#allocation5], %s2478_s11 }
  0x79   : > { %s328_s1 = sshll.u32 %s320_s12, 4  ;;  %s317_s22 = scalar_lea.sflag [#allocation6], %s316_s6  ;;  %s329_s1 = int_to_ptr.vmem [resolvable:$true] %s328_s1 }
  0x7a   : > { %s3344_s28 = scalar_lea.hbm %s3806_s9, 64  ;;  %s3348_s27 = scalar_lea.hbm %s4986_s2, 128 }
  0x7b   : > { %p3345_p12 = scmp.ne.s32.totalorder %s3806_s9, %s3344_s28  ;;  %p3349_p6 = scmp.lt.u32.totalorder %s3806_s9, %s4986_s2 }
  0x7c   : > { %p3350_p8 = scmp.lt.u32.totalorder %s3348_s27, %s3344_s28  ;;  %p3352_p0 = scmp.lt.u32.totalorder %s3344_s28, %s3806_s9 }
  0x7d   : > { %p3346_p9 = pnand %p3345_p12, %p3631_p3 }
  0x7e   : > { %p3351_p13 = por %p3350_p8, %p3349_p6 }
  0x7f   : > { %p3347_p4 = pneg %p3346_p9 }
  0x80   : > { %p3353_p1 = por %p3352_p0, %p3351_p13 }
  0x82   : > { %p3354_p7 = pnand %p3353_p1, %p3347_p4 }
  0x84   : > { %3357 = shalt.err (!%p3354_p7)
}
  0x85   : > { %s3358_s0 = scalar_lea.vmem %s329_s1, 64  ;;  %s3488_s25 = smov [#allocation5]  }
  0x86   : > { %p3359_p2 = scmp.ne.s32.totalorder %s329_s1, %s3358_s0  ;;  %s3362_s6 = sshll.u32 %s3488_s25, 4  ;;  %s3363_s6 = int_to_ptr.vmem [resolvable:$false] %s3362_s6 }
  0x87   : > { %s3364_s7 = scalar_lea.vmem %s3363_s6, 128  ;;  %p3365_p11 = scmp.lt.s32.totalorder %s329_s1, %s3363_s6 }
  0x88   : > { %p3360_p5 = pnand %p3359_p2, %p3631_p3  ;;  %p3366_p12 = scmp.lt.s32.totalorder %s3364_s7, %s3358_s0 }
  0x8a   : > { %p3361_p10 = pneg %p3360_p5  ;;  %p3367_p9 = por %p3366_p12, %p3365_p11 }
  0x8c   : > { %p3368_p6 = pnand %p3367_p9, %p3361_p10 }
  0x8e   : > { %3371 = shalt.err (!%p3368_p6)
}
  0x8f   : > { %3094 = dma.hbm_to_vmem [thread:$0]  (%p3631_p3), %s3806_s9, 64, %s329_s1, %s317_s22  }
  0x90 PF: > { %p2481_p4 = scmp.ge.s32.totalorder %s3482_s24, 1  ;;  %p333_p8 = scmp.lt.s32.totalorder %s3482_s24, 9 }
  0x92   : > { %p334_p13 = pnand %p2481_p4, %p333_p8 }
  0x93   : > { %s340_s28 = sand.u32 (!%p334_p13), 1, %s3458_s18   ;;  %s346_s11 = sand.u32 (!%p334_p13), 1, %s3450_s16  }
  0x94   : > { %337 = sbr.rel (%p334_p13) target bundleno = 696 (0x2b8), region = 51  ;;  %s2482_s19 = sshll.u32 (!%p334_p13), %s346_s11, 12 }
  0x95   : > { %s3091_s5 = smul.u32 (!%p334_p13), 448, %s340_s28  ;;  %s347_s26 = scalar_lea.sflag (!%p334_p13), [#allocation4], %s346_s11 }
  0x96   : > { %s3831_s15 = scalar_lea.vmem (!%p334_p13), [#allocation3], %s2482_s19  ;;  %p5013_p3 = scmp.ne.s32.totalorder (!%p334_p13), %s5006_s10, 0 }
  0x97   : > { %s3829_s12 = scalar_lea.vmem (!%p334_p13), [#allocation2], %s3091_s5 }
  0x9b   : > { %3425 = dma.done.wait (%p5013_p3), %s347_s26, 65536  }
  0x9c   : > { %3427 = vsyncadd (%p5013_p3), %s347_s26, 4294901760  ;;  %s3838_s1 = sand.u32 1, %s3438_s13   ;;  %p5014_p0 = scmp.ne.s32.totalorder %s5009_s29, 0 }
  0x9d   : > { %s2483_s18 = sshll.u32 %s3838_s1, 2  ;;  %s356_s22 = scalar_lea.sflag [#allocation6], %s3838_s1 }
  0x9e   : > { %s3842_s9 = scalar_lea.vmem [#allocation5], %s2483_s18 }
  0x9f   : > { %3429 = dma.done.wait (%p5014_p0), %s356_s22, 64  }
  0xa0   : > { %3431 = vsyncadd (%p5014_p0), %s356_s22, 4294967232  ;;  %s3092_s10 = smul.u32 224, %s3838_s1  ;;  %v732_v56 = vld [vmem:[%s3831_s15 + $0x8] sm:$0xff]  ;;  %v734_v58 = vld [vmem:[%s3831_s15 + $0x18] sm:$0xff]  ;;  %p2484_p1 = scmp.ne.s32.totalorder %s3466_s20, 0 }
  0xa1   : > { %v736_v57 = vld [vmem:[%s3831_s15 + $0x28] sm:$0xff]  ;;  %v738_v60 = vld [vmem:[%s3831_s15 + $0x38] sm:$0xff]  ;;  %v731_v61 = vld [vmem:[%s3831_s15] sm:$0xff] }
  0xa2   : > { %v2494_v59 = vpack.c.bf16 %v736_v57, %v732_v56  ;;  %v735_v62 = vld [vmem:[%s3831_s15 + $0x20] sm:$0xff]  ;;  %v2750_v63 = vpack.c.bf16 %v738_v60, %v734_v58  ;;  %v733_v1 = vld [vmem:[%s3831_s15 + $0x10] sm:$0xff]  ;;  %v740_v3 = vld [vmem:[%s3831_s15 + $0x48] sm:$0xff]  ;;  %s4730_s29 = scalar_lea.vmem [#allocation7], %s3092_s10 }
  0xa3   : > { %v2496_v0 = vpack.c.bf16 %v735_v62, %v731_v61  ;;  %v737_v2 = vld [vmem:[%s3831_s15 + $0x30] sm:$0xff]  ;;  %v744_v5 = vld [vmem:[%s3831_s15 + $0x68] sm:$0xff]  ;;  %v742_v6 = vld [vmem:[%s3831_s15 + $0x58] sm:$0xff] }
  0xa4   : > { %2495 = vmatprep.subr.bf16.mxu0 %v2494_v59  ;;  %v2752_v4 = vpack.c.bf16 %v737_v2, %v733_v1  ;;  %v746_v7 = vld [vmem:[%s3831_s15 + $0x78] sm:$0xff]  ;;  %2751 = vmatprep.subr.bf16.mxu1 %v2750_v63  ;;  %v2498_v8 = vpack.c.bf16 %v744_v5, %v740_v3  ;;  %v739_v10 = vld [vmem:[%s3831_s15 + $0x40] sm:$0xff]  ;;  %v741_v12 = vld [vmem:[%s3831_s15 + $0x50] sm:$0xff] }
  0xa5   : > { %2497 = vmatpush1.bf16.msra.mxu0 %v2496_v0  ;;  %v2754_v9 = vpack.c.bf16 %v746_v7, %v742_v6  ;;  %v743_v11 = vld [vmem:[%s3831_s15 + $0x60] sm:$0xff]  ;;  %v745_v14 = vld [vmem:[%s3831_s15 + $0x70] sm:$0xff]  ;;  %v748_v15 = vld [vmem:[%s3831_s15 + $0x88] sm:$0xff] }
  0xa6   : > { %2753 = vmatpush1.bf16.msra.mxu1 %v2752_v4  ;;  %v2500_v13 = vpack.c.bf16 %v743_v11, %v739_v10  ;;  %v752_v16 = vld [vmem:[%s3831_s15 + $0xa8] sm:$0xff]  ;;  %2499 = vmatprep.subr.bf16.mxu0 %v2498_v8  ;;  %v2756_v17 = vpack.c.bf16 %v745_v14, %v741_v12  ;;  %v750_v19 = vld [vmem:[%s3831_s15 + $0x98] sm:$0xff]  ;;  %v747_v21 = vld [vmem:[%s3831_s15 + $0x80] sm:$0xff] }
  0xa7   : > { %2755 = vmatprep.subr.bf16.mxu1 %v2754_v9  ;;  %v2502_v18 = vpack.c.bf16 %v752_v16, %v748_v15  ;;  %v754_v20 = vld [vmem:[%s3831_s15 + $0xb8] sm:$0xff]  ;;  %v751_v23 = vld [vmem:[%s3831_s15 + $0xa0] sm:$0xff]  ;;  %v749_v24 = vld [vmem:[%s3831_s15 + $0x90] sm:$0xff] }
  0xa8   : > { %v2758_v22 = vpack.c.bf16 %v754_v20, %v750_v19  ;;  %v753_v25 = vld [vmem:[%s3831_s15 + $0xb0] sm:$0xff]  ;;  %v2504_v26 = vpack.c.bf16 %v751_v23, %v747_v21  ;;  %v756_v27 = vld [vmem:[%s3831_s15 + $0xc8] sm:$0xff]  ;;  %v758_v29 = vld [vmem:[%s3831_s15 + $0xd8] sm:$0xff] }
  0xa9   : > { %2501 = vmatpush1.bf16.msra.mxu0 %v2500_v13  ;;  %v760_v28 = vld [vmem:[%s3831_s15 + $0xe8] sm:$0xff]  ;;  %v2760_v30 = vpack.c.bf16 %v753_v25, %v749_v24  ;;  %v762_v32 = vld [vmem:[%s3831_s15 + $0xf8] sm:$0xff]  ;;  %v755_v33 = vld [vmem:[%s3831_s15 + $0xc0] sm:$0xff] }
  0xaa   : > { %2757 = vmatpush1.bf16.msra.mxu1 %v2756_v17  ;;  %2503 = vmatprep.subr.bf16.mxu0 %v2502_v18  ;;  %v2506_v31 = vpack.c.bf16 %v760_v28, %v756_v27  ;;  %v759_v34 = vld [vmem:[%s3831_s15 + $0xe0] sm:$0xff]  ;;  %v2762_v35 = vpack.c.bf16 %v762_v32, %v758_v29  ;;  %v757_v36 = vld [vmem:[%s3831_s15 + $0xd0] sm:$0xff]  ;;  %v764_v38 = vld [vmem:[%s3831_s15 + $0x108] sm:$0xff] }
  0xab   : > { %2759 = vmatprep.subr.bf16.mxu1 %v2758_v22  ;;  %v761_v37 = vld [vmem:[%s3831_s15 + $0xf0] sm:$0xff]  ;;  %v768_v39 = vld [vmem:[%s3831_s15 + $0x128] sm:$0xff]  ;;  %v766_v40 = vld [vmem:[%s3831_s15 + $0x118] sm:$0xff]  ;;  %v2508_v42 = vpack.c.bf16 %v759_v34, %v755_v33 }
  0xac   : > { %v770_v41 = vld [vmem:[%s3831_s15 + $0x138] sm:$0xff]  ;;  %v2764_v43 = vpack.c.bf16 %v761_v37, %v757_v36  ;;  %v2510_v44 = vpack.c.bf16 %v768_v39, %v764_v38  ;;  %v763_v45 = vld [vmem:[%s3831_s15 + $0x100] sm:$0xff]  ;;  %v765_v47 = vld [vmem:[%s3831_s15 + $0x110] sm:$0xff] }
  0xad   : > { %2505 = vmatpush1.bf16.msra.mxu0 %v2504_v26  ;;  %v767_v46 = vld [vmem:[%s3831_s15 + $0x120] sm:$0xff]  ;;  %v2766_v48 = vpack.c.bf16 %v770_v41, %v766_v40  ;;  %v769_v49 = vld [vmem:[%s3831_s15 + $0x130] sm:$0xff]  ;;  %v772_v50 = vld [vmem:[%s3831_s15 + $0x148] sm:$0xff] }
  0xae   : > { %2761 = vmatpush1.bf16.msra.mxu1 %v2760_v30  ;;  %2507 = vmatprep.subr.bf16.mxu0 %v2506_v31  ;;  %v776_v51 = vld [vmem:[%s3831_s15 + $0x168] sm:$0xff]  ;;  %v774_v52 = vld [vmem:[%s3831_s15 + $0x158] sm:$0xff]  ;;  %v2512_v54 = vpack.c.bf16 %v767_v46, %v763_v45  ;;  %v2768_v55 = vpack.c.bf16 %v769_v49, %v765_v47  ;;  %v771_v57 = vld [vmem:[%s3831_s15 + $0x140] sm:$0xff] }
  0xaf   : > { %2763 = vmatprep.subr.bf16.mxu1 %v2762_v35  ;;  %v778_v53 = vld [vmem:[%s3831_s15 + $0x178] sm:$0xff]  ;;  %v2514_v56 = vpack.c.bf16 %v776_v51, %v772_v50  ;;  %v775_v58 = vld [vmem:[%s3831_s15 + $0x160] sm:$0xff]  ;;  %v773_v59 = vld [vmem:[%s3831_s15 + $0x150] sm:$0xff] }
  0xb0   : > { %v2770_v60 = vpack.c.bf16 %v778_v53, %v774_v52  ;;  %v777_v61 = vld [vmem:[%s3831_s15 + $0x170] sm:$0xff]  ;;  %v780_v62 = vld [vmem:[%s3831_s15 + $0x188] sm:$0xff]  ;;  %v782_v0 = vld [vmem:[%s3831_s15 + $0x198] sm:$0xff]  ;;  %v2516_v2 = vpack.c.bf16 %v775_v58, %v771_v57 }
  0xb1   : > { %2509 = vmatpush1.bf16.msra.mxu0 %v2508_v42  ;;  %v784_v63 = vld [vmem:[%s3831_s15 + $0x1a8] sm:$0xff]  ;;  %v786_v1 = vld [vmem:[%s3831_s15 + $0x1b8] sm:$0xff]  ;;  %v2772_v3 = vpack.c.bf16 %v777_v61, %v773_v59  ;;  %v779_v5 = vld [vmem:[%s3831_s15 + $0x180] sm:$0xff] }
  0xb2   : > { %2765 = vmatpush1.bf16.msra.mxu1 %v2764_v43  ;;  %2511 = vmatprep.subr.bf16.mxu0 %v2510_v44  ;;  %v2518_v4 = vpack.c.bf16 %v784_v63, %v780_v62  ;;  %v783_v6 = vld [vmem:[%s3831_s15 + $0x1a0] sm:$0xff]  ;;  %v781_v7 = vld [vmem:[%s3831_s15 + $0x190] sm:$0xff]  ;;  %v2774_v8 = vpack.c.bf16 %v786_v1, %v782_v0  ;;  %v788_v10 = vld [vmem:[%s3831_s15 + $0x1c8] sm:$0xff] }
  0xb3   : > { %2767 = vmatprep.subr.bf16.mxu1 %v2766_v48  ;;  %v785_v9 = vld [vmem:[%s3831_s15 + $0x1b0] sm:$0xff]  ;;  %v792_v11 = vld [vmem:[%s3831_s15 + $0x1e8] sm:$0xff]  ;;  %v790_v12 = vld [vmem:[%s3831_s15 + $0x1d8] sm:$0xff]  ;;  %v2520_v14 = vpack.c.bf16 %v783_v6, %v779_v5 }
  0xb4   : > { %v794_v13 = vld [vmem:[%s3831_s15 + $0x1f8] sm:$0xff]  ;;  %v2776_v15 = vpack.c.bf16 %v785_v9, %v781_v7  ;;  %v2522_v16 = vpack.c.bf16 %v792_v11, %v788_v10  ;;  %v787_v17 = vld [vmem:[%s3831_s15 + $0x1c0] sm:$0xff]  ;;  %v789_v19 = vld [vmem:[%s3831_s15 + $0x1d0] sm:$0xff] }
  0xb5   : > { %2513 = vmatpush1.bf16.msra.mxu0 %v2512_v54  ;;  %v791_v18 = vld [vmem:[%s3831_s15 + $0x1e0] sm:$0xff]  ;;  %v2778_v20 = vpack.c.bf16 %v794_v13, %v790_v12  ;;  %v793_v21 = vld [vmem:[%s3831_s15 + $0x1f0] sm:$0xff]  ;;  %v796_v22 = vld [vmem:[%s3831_s15 + $0x208] sm:$0xff] }
  0xb6   : > { %2769 = vmatpush1.bf16.msra.mxu1 %v2768_v55  ;;  %2515 = vmatprep.subr.bf16.mxu0 %v2514_v56  ;;  %v800_v23 = vld [vmem:[%s3831_s15 + $0x228] sm:$0xff]  ;;  %v798_v24 = vld [vmem:[%s3831_s15 + $0x218] sm:$0xff]  ;;  %v2524_v26 = vpack.c.bf16 %v791_v18, %v787_v17  ;;  %v2780_v27 = vpack.c.bf16 %v793_v21, %v789_v19  ;;  %v795_v29 = vld [vmem:[%s3831_s15 + $0x200] sm:$0xff] }
  0xb7   : > { %2771 = vmatprep.subr.bf16.mxu1 %v2770_v60  ;;  %v802_v25 = vld [vmem:[%s3831_s15 + $0x238] sm:$0xff]  ;;  %v2526_v28 = vpack.c.bf16 %v800_v23, %v796_v22  ;;  %v799_v30 = vld [vmem:[%s3831_s15 + $0x220] sm:$0xff]  ;;  %v797_v31 = vld [vmem:[%s3831_s15 + $0x210] sm:$0xff] }
  0xb8   : > { %v2782_v32 = vpack.c.bf16 %v802_v25, %v798_v24  ;;  %v801_v33 = vld [vmem:[%s3831_s15 + $0x230] sm:$0xff]  ;;  %v804_v34 = vld [vmem:[%s3831_s15 + $0x248] sm:$0xff]  ;;  %v806_v36 = vld [vmem:[%s3831_s15 + $0x258] sm:$0xff]  ;;  %v2528_v38 = vpack.c.bf16 %v799_v30, %v795_v29 }
  0xb9   : > { %2517 = vmatpush1.bf16.msra.mxu0 %v2516_v2  ;;  %v808_v35 = vld [vmem:[%s3831_s15 + $0x268] sm:$0xff]  ;;  %v810_v37 = vld [vmem:[%s3831_s15 + $0x278] sm:$0xff]  ;;  %v2784_v39 = vpack.c.bf16 %v801_v33, %v797_v31  ;;  %v803_v41 = vld [vmem:[%s3831_s15 + $0x240] sm:$0xff] }
  0xba   : > { %2773 = vmatpush1.bf16.msra.mxu1 %v2772_v3  ;;  %2519 = vmatprep.subr.bf16.mxu0 %v2518_v4  ;;  %v2530_v40 = vpack.c.bf16 %v808_v35, %v804_v34  ;;  %v807_v42 = vld [vmem:[%s3831_s15 + $0x260] sm:$0xff]  ;;  %v805_v43 = vld [vmem:[%s3831_s15 + $0x250] sm:$0xff]  ;;  %v2786_v44 = vpack.c.bf16 %v810_v37, %v806_v36  ;;  %v812_v46 = vld [vmem:[%s3831_s15 + $0x288] sm:$0xff] }
  0xbb   : > { %2775 = vmatprep.subr.bf16.mxu1 %v2774_v8  ;;  %v809_v45 = vld [vmem:[%s3831_s15 + $0x270] sm:$0xff]  ;;  %v816_v47 = vld [vmem:[%s3831_s15 + $0x2a8] sm:$0xff]  ;;  %v814_v48 = vld [vmem:[%s3831_s15 + $0x298] sm:$0xff]  ;;  %v2532_v50 = vpack.c.bf16 %v807_v42, %v803_v41 }
  0xbc   : > { %v818_v49 = vld [vmem:[%s3831_s15 + $0x2b8] sm:$0xff]  ;;  %v2788_v51 = vpack.c.bf16 %v809_v45, %v805_v43  ;;  %v2534_v52 = vpack.c.bf16 %v816_v47, %v812_v46  ;;  %v811_v53 = vld [vmem:[%s3831_s15 + $0x280] sm:$0xff]  ;;  %v813_v55 = vld [vmem:[%s3831_s15 + $0x290] sm:$0xff] }
  0xbd   : > { %2521 = vmatpush1.bf16.msra.mxu0 %v2520_v14  ;;  %v815_v54 = vld [vmem:[%s3831_s15 + $0x2a0] sm:$0xff]  ;;  %v2790_v56 = vpack.c.bf16 %v818_v49, %v814_v48  ;;  %v817_v57 = vld [vmem:[%s3831_s15 + $0x2b0] sm:$0xff]  ;;  %v820_v58 = vld [vmem:[%s3831_s15 + $0x2c8] sm:$0xff] }
  0xbe   : > { %2777 = vmatpush1.bf16.msra.mxu1 %v2776_v15  ;;  %2523 = vmatprep.subr.bf16.mxu0 %v2522_v16  ;;  %v824_v59 = vld [vmem:[%s3831_s15 + $0x2e8] sm:$0xff]  ;;  %v822_v60 = vld [vmem:[%s3831_s15 + $0x2d8] sm:$0xff]  ;;  %v2536_v62 = vpack.c.bf16 %v815_v54, %v811_v53  ;;  %v819_v63 = vld [vmem:[%s3831_s15 + $0x2c0] sm:$0xff]  ;;  %v2792_v0 = vpack.c.bf16 %v817_v57, %v813_v55 }
  0xbf   : > { %2779 = vmatprep.subr.bf16.mxu1 %v2778_v20  ;;  %v826_v61 = vld [vmem:[%s3831_s15 + $0x2f8] sm:$0xff]  ;;  %v2538_v1 = vpack.c.bf16 %v824_v59, %v820_v58  ;;  %v823_v2 = vld [vmem:[%s3831_s15 + $0x2e0] sm:$0xff]  ;;  %v821_v3 = vld [vmem:[%s3831_s15 + $0x2d0] sm:$0xff] }
  0xc0   : > { %v825_v4 = vld [vmem:[%s3831_s15 + $0x2f0] sm:$0xff]  ;;  %v2794_v5 = vpack.c.bf16 %v826_v61, %v822_v60  ;;  %v828_v6 = vld [vmem:[%s3831_s15 + $0x308] sm:$0xff]  ;;  %v830_v9 = vld [vmem:[%s3831_s15 + $0x318] sm:$0xff]  ;;  %v2540_v12 = vpack.c.bf16 %v823_v2, %v819_v63 }
  0xc1   : > { %2525 = vmatpush1.bf16.msra.mxu0 %v2524_v26  ;;  %v832_v7 = vld [vmem:[%s3831_s15 + $0x328] sm:$0xff]  ;;  %v834_v10 = vld [vmem:[%s3831_s15 + $0x338] sm:$0xff]  ;;  %v3951_v13 = vld [vmem:[%s3829_s12] sm:$0xff]  ;;  %v2796_v14 = vpack.c.bf16 %v825_v4, %v821_v3 }
  0xc2   : > { %2781 = vmatpush1.bf16.msra.mxu1 %v2780_v27  ;;  %2527 = vmatprep.subr.bf16.mxu0 %v2526_v28  ;;  %v396_v8 = vld [vmem:[%s3829_s12 + $0x8] sm:$0xff]  ;;  %v2542_v15 = vpack.c.bf16 %v832_v7, %v828_v6  ;;  %v827_v16 = vld [vmem:[%s3831_s15 + $0x300] sm:$0xff]  ;;  %v829_v18 = vld [vmem:[%s3831_s15 + $0x310] sm:$0xff]  ;;  %v507_v19 = vmul.f32 0.70710677, %v3951_v13  ;;  %v2798_v20 = vpack.c.bf16 %v834_v10, %v830_v9  ;;  %v451_v3 = vmul.f32 0.5, %v3951_v13 }
  0xc3   : > { %2783 = vmatprep.subr.bf16.mxu1 %v2782_v32  ;;  %v508_v11 = vmul.f32 0.70710677, %v396_v8  ;;  %v831_v17 = vld [vmem:[%s3831_s15 + $0x320] sm:$0xff]  ;;  %v833_v21 = vld [vmem:[%s3831_s15 + $0x330] sm:$0xff]  ;;  %v836_v22 = vld [vmem:[%s3831_s15 + $0x348] sm:$0xff]  ;;  %v452_v48 = vmul.f32 0.5, %v396_v8 }
  0xc4   : > { %v840_v23 = vld [vmem:[%s3831_s15 + $0x368] sm:$0xff]  ;;  %v838_v24 = vld [vmem:[%s3831_s15 + $0x358] sm:$0xff]  ;;  %v2544_v26 = vpack.c.bf16 %v831_v17, %v827_v16  ;;  %v2800_v27 = vpack.c.bf16 %v833_v21, %v829_v18  ;;  %v835_v29 = vld [vmem:[%s3831_s15 + $0x340] sm:$0xff] }
  0xc5   : > { %2529 = vmatpush1.bf16.msra.mxu0 %v2528_v38  ;;  %3204 = verf.f32 %v508_v11  ;;  %v842_v25 = vld [vmem:[%s3831_s15 + $0x378] sm:$0xff]  ;;  %v2546_v28 = vpack.c.bf16 %v840_v23, %v836_v22  ;;  %v839_v30 = vld [vmem:[%s3831_s15 + $0x360] sm:$0xff]  ;;  %v837_v31 = vld [vmem:[%s3831_s15 + $0x350] sm:$0xff] }
  0xc6   : > { %2785 = vmatpush1.bf16.msra.mxu1 %v2784_v39  ;;  %2531 = vmatprep.subr.bf16.mxu0 %v2530_v40  ;;  %3206 = verf.f32 %v507_v19  ;;  %v2802_v32 = vpack.c.bf16 %v842_v25, %v838_v24  ;;  %v841_v33 = vld [vmem:[%s3831_s15 + $0x370] sm:$0xff]  ;;  %v844_v34 = vld [vmem:[%s3831_s15 + $0x388] sm:$0xff]  ;;  %v846_v36 = vld [vmem:[%s3831_s15 + $0x398] sm:$0xff]  ;;  %v2548_v38 = vpack.c.bf16 %v839_v30, %v835_v29 }
  0xc7   : > { %2787 = vmatprep.subr.bf16.mxu1 %v2786_v44  ;;  %v848_v35 = vld [vmem:[%s3831_s15 + $0x3a8] sm:$0xff]  ;;  %v850_v37 = vld [vmem:[%s3831_s15 + $0x3b8] sm:$0xff]  ;;  %v2804_v39 = vpack.c.bf16 %v841_v33, %v837_v31  ;;  %v843_v41 = vld [vmem:[%s3831_s15 + $0x380] sm:$0xff] }
  0xc8   : > { %v2550_v40 = vpack.c.bf16 %v848_v35, %v844_v34  ;;  %v847_v42 = vld [vmem:[%s3831_s15 + $0x3a0] sm:$0xff]  ;;  %v845_v43 = vld [vmem:[%s3831_s15 + $0x390] sm:$0xff]  ;;  %v2806_v44 = vpack.c.bf16 %v850_v37, %v846_v36  ;;  %v852_v46 = vld [vmem:[%s3831_s15 + $0x3c8] sm:$0xff] }
  0xc9   : > { %2533 = vmatpush1.bf16.msra.mxu0 %v2532_v50  ;;  %v849_v45 = vld [vmem:[%s3831_s15 + $0x3b0] sm:$0xff]  ;;  %v856_v47 = vld [vmem:[%s3831_s15 + $0x3e8] sm:$0xff]  ;;  %v854_v50 = vld [vmem:[%s3831_s15 + $0x3d8] sm:$0xff] }
  0xca   : > { %2789 = vmatpush1.bf16.msra.mxu1 %v2788_v51  ;;  %2535 = vmatprep.subr.bf16.mxu0 %v2534_v52  ;;  %v858_v51 = vld [vmem:[%s3831_s15 + $0x3f8] sm:$0xff]  ;;  %v2552_v52 = vpack.c.bf16 %v847_v42, %v843_v41  ;;  %v2808_v55 = vpack.c.bf16 %v849_v45, %v845_v43  ;;  %v851_v57 = vld [vmem:[%s3831_s15 + $0x3c0] sm:$0xff]  ;;  %v853_v59 = vld [vmem:[%s3831_s15 + $0x3d0] sm:$0xff] }
  0xcb   : > { %2791 = vmatprep.subr.bf16.mxu1 %v2790_v56  ;;  %v2554_v56 = vpack.c.bf16 %v856_v47, %v852_v46  ;;  %v855_v58 = vld [vmem:[%s3831_s15 + $0x3e0] sm:$0xff]  ;;  %v2810_v60 = vpack.c.bf16 %v858_v51, %v854_v50  ;;  %v857_v61 = vld [vmem:[%s3831_s15 + $0x3f0] sm:$0xff]  ;;  %v860_v63 = vld [vmem:[%s3831_s15 + $0x408] sm:$0xff] }
  0xcc   : > { %v866_v2 = vld [vmem:[%s3831_s15 + $0x438] sm:$0xff]  ;;  %v2812_v6 = vpack.c.bf16 %v857_v61, %v853_v59  ;;  %v859_v8 = vld [vmem:[%s3831_s15 + $0x400] sm:$0xff]  ;;  %v861_v10 = vld [vmem:[%s3831_s15 + $0x410] sm:$0xff] }
  0xcd   : > { %2537 = vmatpush1.bf16.msra.mxu0 %v2536_v62  ;;  %v863_v9 = vld [vmem:[%s3831_s15 + $0x420] sm:$0xff]  ;;  %v868_v13 = vld [vmem:[%s3831_s15 + $0x448] sm:$0xff]  ;;  %v870_v16 = vld [vmem:[%s3831_s15 + $0x458] sm:$0xff] }
  0xce   : > { %2793 = vmatpush1.bf16.msra.mxu1 %v2792_v0  ;;  %2539 = vmatprep.subr.bf16.mxu0 %v2538_v1  ;;  %v864_v0 = vld [vmem:[%s3831_s15 + $0x428] sm:$0xff]  ;;  %v862_v1 = vld [vmem:[%s3831_s15 + $0x418] sm:$0xff]  ;;  %v2560_v18 = vpack.c.bf16 %v863_v9, %v859_v8  ;;  %v867_v21 = vld [vmem:[%s3831_s15 + $0x440] sm:$0xff] }
  0xcf   : > { %2795 = vmatprep.subr.bf16.mxu1 %v2794_v5  ;;  %v3205_v49 = vpop.eup %3204  ;;  %v2556_v5 = vpack.c.bf16 %v855_v58, %v851_v57  ;;  %v2558_v7 = vpack.c.bf16 %v864_v0, %v860_v63  ;;  %v2814_v11 = vpack.c.bf16 %v866_v2, %v862_v1  ;;  %v874_v17 = vld [vmem:[%s3831_s15 + $0x478] sm:$0xff]  ;;  %v871_v22 = vld [vmem:[%s3831_s15 + $0x460] sm:$0xff]  ;;  %v869_v23 = vld [vmem:[%s3831_s15 + $0x450] sm:$0xff] }
  0xd0   : > { %v620_v53 = vadd.f32 1.0, %v3205_v49  ;;  %v3207_v54 = vpop.eup %3206  ;;  %v2818_v24 = vpack.c.bf16 %v874_v17, %v870_v16  ;;  %v873_v25 = vld [vmem:[%s3831_s15 + $0x470] sm:$0xff]  ;;  %v882_v29 = vld [vmem:[%s3831_s15 + $0x4b8] sm:$0xff]  ;;  %v2564_v30 = vpack.c.bf16 %v871_v22, %v867_v21  ;;  %v875_v31 = vld [vmem:[%s3831_s15 + $0x480] sm:$0xff] }
  0xd1   : > { %2541 = vmatpush1.bf16.msra.mxu0 %v2540_v12  ;;  %v619_v4 = vadd.f32 1.0, %v3207_v54  ;;  %v865_v12 = vld [vmem:[%s3831_s15 + $0x430] sm:$0xff]  ;;  %v879_v34 = vld [vmem:[%s3831_s15 + $0x4a0] sm:$0xff]  ;;  %v886_v41 = vld [vmem:[%s3831_s15 + $0x4d8] sm:$0xff] }
  0xd2   : > { %2797 = vmatpush1.bf16.msra.mxu1 %v2796_v14  ;;  %2543 = vmatprep.subr.bf16.mxu0 %v2542_v15  ;;  %v676_v62 = vmul.f32 %v620_v53, %v452_v48  ;;  %v872_v14 = vld [vmem:[%s3831_s15 + $0x468] sm:$0xff]  ;;  %v2816_v19 = vpack.c.bf16 %v865_v12, %v861_v10  ;;  %v877_v35 = vld [vmem:[%s3831_s15 + $0x490] sm:$0xff]  ;;  %v890_v42 = vld [vmem:[%s3831_s15 + $0x4f8] sm:$0xff]  ;;  %v2568_v45 = vpack.c.bf16 %v879_v34, %v875_v31 }
  0xd3   : > { %2799 = vmatprep.subr.bf16.mxu1 %v2798_v20  ;;  %v675_v15 = vmul.f32 %v619_v4, %v451_v3  ;;  %v2562_v20 = vpack.c.bf16 %v872_v14, %v868_v13  ;;  %v881_v36 = vld [vmem:[%s3831_s15 + $0x4b0] sm:$0xff]  ;;  %v883_v46 = vld [vmem:[%s3831_s15 + $0x4c0] sm:$0xff]  ;;  %v2826_v53 = vpack.c.bf16 %v890_v42, %v886_v41  ;;  %v894_v58 = vld [vmem:[%s3831_s15 + $0x518] sm:$0xff] }
  0xd4   : > { %1307 = vmatprep.mubr.f32.mxu0 %v676_v62  ;;  %1735 = vmatprep.mubr.f32.mxu1 %v676_v62  ;;  %v2824_v48 = vpack.c.bf16 %v881_v36, %v877_v35  ;;  %v887_v50 = vld [vmem:[%s3831_s15 + $0x4e0] sm:$0xff]  ;;  %v885_v51 = vld [vmem:[%s3831_s15 + $0x4d0] sm:$0xff]  ;;  %v898_v59 = vld [vmem:[%s3831_s15 + $0x538] sm:$0xff] }
  0xd5   : > { %2545 = vmatpush1.bf16.msra.mxu0 %v2544_v26  ;;  %v876_v26 = vld [vmem:[%s3831_s15 + $0x488] sm:$0xff]  ;;  %v889_v54 = vld [vmem:[%s3831_s15 + $0x4f0] sm:$0xff]  ;;  %v2572_v61 = vpack.c.bf16 %v887_v50, %v883_v46  ;;  %v891_v62 = vld [vmem:[%s3831_s15 + $0x500] sm:$0xff] }
  0xd6   : > { %2801 = vmatpush1.bf16.msra.mxu1 %v2800_v27  ;;  %2547 = vmatprep.subr.bf16.mxu0 %v2546_v28  ;;  %v880_v27 = vld [vmem:[%s3831_s15 + $0x4a8] sm:$0xff]  ;;  %v878_v28 = vld [vmem:[%s3831_s15 + $0x498] sm:$0xff]  ;;  %v2828_v1 = vpack.c.bf16 %v889_v54, %v885_v51  ;;  %v895_v3 = vld [vmem:[%s3831_s15 + $0x520] sm:$0xff] }
  0xd7   : > { %2803 = vmatprep.subr.bf16.mxu1 %v2802_v32  ;;  %v2820_v32 = vpack.c.bf16 %v873_v25, %v869_v23  ;;  %v2566_v33 = vpack.c.bf16 %v880_v27, %v876_v26  ;;  %v2822_v37 = vpack.c.bf16 %v882_v29, %v878_v28  ;;  %v4037_v0 = vld [vmem:[%s3829_s12 + $0xc8] sm:$0xff]  ;;  %v893_v4 = vld [vmem:[%s3831_s15 + $0x510] sm:$0xff]  ;;  %v4046_v10 = vld [vmem:[%s3829_s12 + $0xc0] sm:$0xff]  ;;  %v2576_v14 = vpack.c.bf16 %v895_v3, %v891_v62 }
  0xd8   : > { %v900_v8 = vld [vmem:[%s3831_s15 + $0x548] sm:$0xff]  ;;  %v906_v12 = vld [vmem:[%s3831_s15 + $0x578] sm:$0xff]  ;;  %v531_v13 = vmul.f32 0.70710677, %v4046_v10  ;;  %v903_v16 = vld [vmem:[%s3831_s15 + $0x560] sm:$0xff] }
  0xd9   : > { %2549 = vmatpush1.bf16.msra.mxu0 %v2548_v38  ;;  %v884_v38 = vld [vmem:[%s3831_s15 + $0x4c8] sm:$0xff]  ;;  %v905_v21 = vld [vmem:[%s3831_s15 + $0x570] sm:$0xff]  ;;  %v4060_v23 = vld [vmem:[%s3829_s12 + $0x100] sm:$0xff] }
  0xda   : > { %2805 = vmatpush1.bf16.msra.mxu1 %v2804_v39  ;;  %2551 = vmatprep.subr.bf16.mxu0 %v2550_v40  ;;  %v888_v39 = vld [vmem:[%s3831_s15 + $0x4e8] sm:$0xff]  ;;  %v539_v28 = vmul.f32 0.70710677, %v4060_v23  ;;  %v914_v31 = vld [vmem:[%s3831_s15 + $0x5b8] sm:$0xff]  ;;  %v4082_v42 = vld [vmem:[%s3831_s15 + $0x5b0] sm:$0xff] }
  0xdb   : > { %2807 = vmatprep.subr.bf16.mxu1 %v2806_v44  ;;  %v4010_v40 = vld [vmem:[%s3829_s12 + $0x48] sm:$0xff]  ;;  %v4016_v44 = vld [vmem:[%s3829_s12 + $0x40] sm:$0xff]  ;;  %v2570_v49 = vpack.c.bf16 %v888_v39, %v884_v38  ;;  %v4079_v39 = vld [vmem:[%s3831_s15 + $0x590] sm:$0xff] }
  0xdc   : > { %v516_v43 = vmul.f32 0.70710677, %v4010_v40  ;;  %v515_v47 = vmul.f32 0.70710677, %v4016_v44  ;;  %v904_v9 = vld [vmem:[%s3831_s15 + $0x568] sm:$0xff]  ;;  %v460_v27 = vmul.f32 0.5, %v4010_v40 }
  0xdd   : > { %2553 = vmatpush1.bf16.msra.mxu0 %v2552_v52  ;;  %v4023_v52 = vld [vmem:[%s3829_s12 + $0x88] sm:$0xff]  ;;  %v4076_v38 = vld [vmem:[%s3831_s15 + $0x5a0] sm:$0xff]  ;;  %v918_v51 = vld [vmem:[%s3831_s15 + $0x5d8] sm:$0xff] }
  0xde   : > { %2809 = vmatpush1.bf16.msra.mxu1 %v2808_v55  ;;  %2555 = vmatprep.subr.bf16.mxu0 %v2554_v56  ;;  %3208 = verf.f32 %v516_v43  ;;  %v892_v55 = vld [vmem:[%s3831_s15 + $0x508] sm:$0xff]  ;;  %v524_v57 = vmul.f32 0.70710677, %v4023_v52  ;;  %v4087_v46 = vld [vmem:[%s3829_s12 + $0x140] sm:$0xff] }
  0xdf   : > { %2811 = vmatprep.subr.bf16.mxu1 %v2810_v60  ;;  %v896_v56 = vld [vmem:[%s3831_s15 + $0x528] sm:$0xff]  ;;  %3210 = verf.f32 %v515_v47  ;;  %v4032_v60 = vld [vmem:[%s3829_s12 + $0x80] sm:$0xff]  ;;  %v547_v54 = vmul.f32 0.70710677, %v4087_v46 }
  0xe0   : > { %3212 = verf.f32 %v524_v57  ;;  %v523_v63 = vmul.f32 0.70710677, %v4032_v60  ;;  %v2574_v2 = vpack.c.bf16 %v896_v56, %v892_v55  ;;  %v4054_v17 = vld [vmem:[%s3829_s12 + $0x108] sm:$0xff]  ;;  %v922_v55 = vld [vmem:[%s3831_s15 + $0x5f8] sm:$0xff]  ;;  %v4095_v56 = vld [vmem:[%s3831_s15 + $0x5c0] sm:$0xff] }
  0xe1   : > { %2557 = vmatpush1.bf16.msra.mxu0 %v2556_v5  ;;  %v897_v5 = vld [vmem:[%s3831_s15 + $0x530] sm:$0xff]  ;;  %v540_v22 = vmul.f32 0.70710677, %v4054_v17  ;;  %v908_v25 = vld [vmem:[%s3831_s15 + $0x588] sm:$0xff] }
  0xe2   : > { %2813 = vmatpush1.bf16.msra.mxu1 %v2812_v6  ;;  %2559 = vmatprep.subr.bf16.mxu0 %v2558_v7  ;;  %v532_v6 = vmul.f32 0.70710677, %v4037_v0  ;;  %v2830_v7 = vpack.c.bf16 %v898_v59, %v894_v58  ;;  %3214 = verf.f32 %v523_v63  ;;  %v912_v26 = vld [vmem:[%s3831_s15 + $0x5a8] sm:$0xff]  ;;  %v467_v58 = vmul.f32 0.5, %v4032_v60  ;;  %v4104_v63 = vld [vmem:[%s3831_s15 + $0x5e0] sm:$0xff] }
  0xe3   : > { %2815 = vmatprep.subr.bf16.mxu1 %v2814_v11  ;;  %v902_v11 = vld [vmem:[%s3831_s15 + $0x558] sm:$0xff]  ;;  %v2582_v41 = vpack.c.bf16 %v912_v26, %v908_v25  ;;  %v920_v50 = vld [vmem:[%s3831_s15 + $0x5e8] sm:$0xff] }
  0xe4   : > { %1308 = vmatmul.mubr.f32.vlgmr.msra.gmra.mrb[0].mxu0 %v675_v15  ;;  %3216 = verf.f32 %v532_v6  ;;  %v4099_v59 = vld [vmem:[%s3829_s12 + $0x188] sm:$0x1]  ;;  %v917_v6 = vld [vmem:[%s3831_s15 + $0x5d0] sm:$0xff] }
  0xe5   : > { %2561 = vmatpush1.bf16.msra.mxu0 %v2560_v18  ;;  %1736 = vmatmul.mubr.f32.vlgmr.msra.gmra.mrb[0].mxu1 %v675_v15  ;;  %v899_v15 = vld [vmem:[%s3831_s15 + $0x540] sm:$0xff]  ;;  %v2832_v18 = vpack.c.bf16 %v897_v5, %v893_v4  ;;  %3218 = verf.f32 %v531_v13  ;;  %v556_v60 = vmul.f32 0.70710677, %v4099_v59  ;;  %v2840_v4 = vpack.c.bf16 %v4082_v42, %v4079_v39  ;;  %v934_v39 = vld [vmem:[%s3831_s15 + $0x658] sm:$0xff] }
  0xe6   : > { %2817 = vmatpush1.bf16.msra.mxu1 %v2816_v19  ;;  %2563 = vmatprep.subr.bf16.mxu0 %v2562_v20  ;;  %v2578_v19 = vpack.c.bf16 %v904_v9, %v900_v8  ;;  %v901_v20 = vld [vmem:[%s3831_s15 + $0x550] sm:$0xff]  ;;  %3220 = verf.f32 %v540_v22  ;;  %v2580_v35 = vpack.c.bf16 %v903_v16, %v899_v15  ;;  %v2842_v9 = vpack.c.bf16 %v922_v55, %v918_v51  ;;  %v4119_v15 = vld [vmem:[%s3829_s12 + $0x18] sm:$0xff]  ;;  %v931_v51 = vld [vmem:[%s3831_s15 + $0x640] sm:$0xff] }
  0xe7   : > { %2819 = vmatprep.subr.bf16.mxu1 %v2818_v24  ;;  %v2834_v24 = vpack.c.bf16 %v906_v12, %v902_v11  ;;  %v2836_v36 = vpack.c.bf16 %v905_v21, %v901_v20  ;;  %3222 = verf.f32 %v539_v28  ;;  %v924_v11 = vld [vmem:[%s3831_s15 + $0x608] sm:$0xff]  ;;  %v930_v20 = vld [vmem:[%s3831_s15 + $0x638] sm:$0xff]  ;;  %v475_v22 = vmul.f32 0.5, %v4046_v10  ;;  %v923_v10 = vld [vmem:[%s3831_s15 + $0x600] sm:$0xff] }
  0xe8   : > { %v3209_v29 = vpop.eup %3208  ;;  %v928_v12 = vld [vmem:[%s3831_s15 + $0x628] sm:$0xff]  ;;  %v483_v42 = vmul.f32 0.5, %v4060_v23  ;;  %v933_v23 = vld [vmem:[%s3831_s15 + $0x650] sm:$0xff] }
  0xe9   : > { %2565 = vmatpush1.bf16.msra.mxu0 %v2564_v30  ;;  %v910_v30 = vld [vmem:[%s3831_s15 + $0x598] sm:$0xff]  ;;  %v3211_v34 = vpop.eup %3210  ;;  %v628_v40 = vadd.f32 1.0, %v3209_v29 }
  0xea   : > { %2821 = vmatpush1.bf16.msra.mxu1 %v2820_v32  ;;  %2567 = vmatprep.subr.bf16.mxu0 %v2566_v33  ;;  %v459_v32 = vmul.f32 0.5, %v4016_v44  ;;  %v4070_v33 = vld [vmem:[%s3829_s12 + $0x148] sm:$0xff]  ;;  %v627_v43 = vadd.f32 1.0, %v3211_v34  ;;  %v468_v44 = vmul.f32 0.5, %v4023_v52  ;;  %v3213_v47 = vpop.eup %3212 }
  0xeb   : > { %2823 = vmatprep.subr.bf16.mxu1 %v2822_v37  ;;  %v4073_v37 = vld [vmem:[%s3831_s15 + $0x580] sm:$0xff]  ;;  %v636_v57 = vadd.f32 1.0, %v3213_v47  ;;  %v492_v47 = vmul.f32 0.5, %v4070_v33 }
  0xec   : > { %v683_v52 = vmul.f32 %v627_v43, %v459_v32  ;;  %v2584_v62 = vpack.c.bf16 %v4076_v38, %v4073_v37  ;;  %v925_v32 = vld [vmem:[%s3831_s15 + $0x610] sm:$0xff]  ;;  %v932_v37 = vld [vmem:[%s3831_s15 + $0x648] sm:$0xff] }
  0xed   : > { %2569 = vmatpush1.bf16.msra.mxu0 %v2568_v45  ;;  %v548_v45 = vmul.f32 0.70710677, %v4070_v33  ;;  %v692_v8 = vmul.f32 %v636_v57, %v468_v44  ;;  %v936_v38 = vld [vmem:[%s3831_s15 + $0x668] sm:$0xff]  ;;  %v946_v33 = vld [vmem:[%s3831_s15 + $0x6b8] sm:$0xff] }
  0xee   : > { %2825 = vmatpush1.bf16.msra.mxu1 %v2824_v48  ;;  %2571 = vmatprep.subr.bf16.mxu0 %v2570_v49  ;;  %v2838_v48 = vpack.c.bf16 %v914_v31, %v910_v30  ;;  %v916_v49 = vld [vmem:[%s3831_s15 + $0x5c8] sm:$0xff]  ;;  %v2590_v30 = vpack.c.bf16 %v928_v12, %v924_v11  ;;  %v927_v31 = vld [vmem:[%s3831_s15 + $0x620] sm:$0xff] }
  0xef   : > { %2827 = vmatprep.subr.bf16.mxu1 %v2826_v53  ;;  %v684_v53 = vmul.f32 %v628_v40, %v460_v27  ;;  %3224 = verf.f32 %v548_v45  ;;  %v2586_v5 = vpack.c.bf16 %v920_v50, %v916_v49  ;;  %v484_v27 = vmul.f32 0.5, %v4054_v17  ;;  %v938_v40 = vld [vmem:[%s3831_s15 + $0x678] sm:$0xff]  ;;  %v944_v57 = vld [vmem:[%s3831_s15 + $0x6a8] sm:$0xff] }
  0xf0   : > { %3226 = verf.f32 %v547_v54  ;;  %v2592_v44 = vpack.c.bf16 %v927_v31, %v923_v10  ;;  %v2594_v50 = vpack.c.bf16 %v936_v38, %v932_v37  ;;  %v2850_v55 = vpack.c.bf16 %v938_v40, %v934_v39  ;;  %v951_v10 = vld [vmem:[%s3831_s15 + $0x6e0] sm:$0xff]  ;;  %v949_v31 = vld [vmem:[%s3831_s15 + $0x6d0] sm:$0xff]  ;;  %v958_v37 = vld [vmem:[%s3831_s15 + $0x718] sm:$0xff] }
  0xf1   : > { %2573 = vmatpush1.bf16.msra.mxu0 %v2572_v61  ;;  %v3215_v61 = vpop.eup %3214  ;;  %1313 = vmatprep.mubr.f32.mxu0 %v684_v53  ;;  %3228 = verf.f32 %v556_v60  ;;  %v962_v38 = vld [vmem:[%s3831_s15 + $0x738] sm:$0xff] }
  0xf2   : > { %2829 = vmatpush1.bf16.msra.mxu1 %v2828_v1  ;;  %2575 = vmatprep.subr.bf16.mxu0 %v2574_v2  ;;  %v476_v1 = vmul.f32 0.5, %v4037_v0  ;;  %v4109_v2 = vld [vmem:[%s3829_s12 + $0x180] sm:$0x1]  ;;  %v3217_v3 = vpop.eup %3216  ;;  %v635_v0 = vadd.f32 1.0, %v3215_v61  ;;  %v942_v61 = vld [vmem:[%s3831_s15 + $0x698] sm:$0xff] }
  0xf3   : > { %2831 = vmatprep.subr.bf16.mxu1 %v2830_v7  ;;  %v921_v7 = vld [vmem:[%s3831_s15 + $0x5f0] sm:$0xff]  ;;  %1741 = vmatprep.mubr.f32.mxu1 %v684_v53  ;;  %v644_v13 = vadd.f32 1.0, %v3217_v3  ;;  %v3219_v16 = vpop.eup %3218  ;;  %v935_v53 = vld [vmem:[%s3831_s15 + $0x660] sm:$0xff]  ;;  %v2854_v12 = vpack.c.bf16 %v946_v33, %v942_v61  ;;  %v972_v33 = vld [vmem:[%s3831_s15 + $0x788] sm:$0xff] }
  0xf4   : > { %1314 = vmatmul.mubr.f32.gmra.mrb[2].mxu0 %v683_v52  ;;  %1742 = vmatmul.mubr.f32.gmra.mrb[2].mxu1 %v683_v52  ;;  %v691_v21 = vmul.f32 %v635_v0, %v467_v58  ;;  %v643_v26 = vadd.f32 1.0, %v3219_v16  ;;  %v3221_v28 = vpop.eup %3220  ;;  %v2844_v29 = vpack.c.bf16 %v921_v7, %v917_v6  ;;  %v940_v52 = vld [vmem:[%s3831_s15 + $0x688] sm:$0xff]  ;;  %v2596_v3 = vpack.c.bf16 %v935_v53, %v931_v51  ;;  %v943_v0 = vld [vmem:[%s3831_s15 + $0x6a0] sm:$0xff]  ;;  %v966_v51 = vld [vmem:[%s3831_s15 + $0x758] sm:$0xff] }
  0xf5   : > { %2577 = vmatpush1.bf16.msra.mxu0 %v2576_v14  ;;  %v555_v14 = vmul.f32 0.70710677, %v4109_v2  ;;  %1319 = vmatprep.mubr.f32.mxu0 %v692_v8  ;;  %v700_v25 = vmul.f32 %v644_v13, %v476_v1  ;;  %v3223_v34 = vpop.eup %3222  ;;  %v652_v17 = vadd.f32 1.0, %v3221_v28  ;;  %v2598_v7 = vpack.c.bf16 %v944_v57, %v940_v52  ;;  %v945_v13 = vld [vmem:[%s3831_s15 + $0x6b0] sm:$0xff]  ;;  %v952_v16 = vld [vmem:[%s3831_s15 + $0x6e8] sm:$0xff]  ;;  %v970_v53 = vld [vmem:[%s3831_s15 + $0x778] sm:$0xff] }
  0xf6   : > { %2833 = vmatpush1.bf16.msra.mxu1 %v2832_v18  ;;  %2579 = vmatprep.subr.bf16.mxu0 %v2578_v19  ;;  %v2588_v18 = vpack.c.bf16 %v4104_v63, %v4095_v56  ;;  %v926_v19 = vld [vmem:[%s3831_s15 + $0x618] sm:$0xff]  ;;  %v651_v43 = vadd.f32 1.0, %v3223_v34  ;;  %v937_v56 = vld [vmem:[%s3831_s15 + $0x670] sm:$0xff]  ;;  %v491_v63 = vmul.f32 0.5, %v4087_v46  ;;  %v967_v52 = vld [vmem:[%s3831_s15 + $0x760] sm:$0xff] }
  0xf7   : > { %2835 = vmatprep.subr.bf16.mxu1 %v2834_v24  ;;  %v510_v24 = vmul.f32 0.70710677, %v4119_v15  ;;  %3230 = verf.f32 %v555_v14  ;;  %1747 = vmatprep.mubr.f32.mxu1 %v692_v8  ;;  %v708_v45 = vmul.f32 %v652_v17, %v484_v27  ;;  %v2852_v6 = vpack.c.bf16 %v937_v56, %v933_v23  ;;  %v939_v8 = vld [vmem:[%s3831_s15 + $0x680] sm:$0xff]  ;;  %v941_v46 = vld [vmem:[%s3831_s15 + $0x690] sm:$0xff]  ;;  %v948_v14 = vld [vmem:[%s3831_s15 + $0x6c8] sm:$0xff] }
  0xf8   : > { %1320 = vmatmul.mubr.f32.gmra.mrb[4].mxu0 %v691_v21  ;;  %1748 = vmatmul.mubr.f32.gmra.mrb[4].mxu1 %v691_v21  ;;  %v499_v21 = vmul.f32 0.5, %v4109_v2  ;;  %v454_v27 = vmul.f32 0.5, %v4119_v15  ;;  %v947_v2 = vld [vmem:[%s3831_s15 + $0x6c0] sm:$0xff]  ;;  %v953_v34 = vld [vmem:[%s3831_s15 + $0x6f0] sm:$0xff] }
  0xf9   : > { %2581 = vmatpush1.bf16.msra.mxu0 %v2580_v35  ;;  %3232 = verf.f32 %v510_v24  ;;  %v2846_v35 = vpack.c.bf16 %v930_v20, %v926_v19  ;;  %1325 = vmatprep.mubr.f32.mxu0 %v700_v25  ;;  %v954_v19 = vld [vmem:[%s3831_s15 + $0x6f8] sm:$0xff]  ;;  %v4158_v24 = vld [vmem:[%s3829_s12 + $0x10] sm:$0xff]  ;;  %v2604_v39 = vpack.c.bf16 %v951_v10, %v947_v2  ;;  %v963_v56 = vld [vmem:[%s3831_s15 + $0x740] sm:$0xff] }
  0xfa   : > { %2837 = vmatpush1.bf16.msra.mxu1 %v2836_v36  ;;  %2583 = vmatprep.subr.bf16.mxu0 %v2582_v41  ;;  %v929_v36 = vld [vmem:[%s3831_s15 + $0x630] sm:$0xff]  ;;  %v699_v41 = vmul.f32 %v643_v26, %v475_v22  ;;  %v509_v15 = vmul.f32 0.70710677, %v4158_v24  ;;  %v992_v2 = vld [vmem:[%s3831_s15 + $0x828] sm:$0xff] }
  0xfb   : > { %2839 = vmatprep.subr.bf16.mxu1 %v2838_v48  ;;  %v3225_v48 = vpop.eup %3224  ;;  %v2848_v49 = vpack.c.bf16 %v929_v36, %v925_v32  ;;  %1753 = vmatprep.mubr.f32.mxu1 %v700_v25  ;;  %v2600_v25 = vpack.c.bf16 %v943_v0, %v939_v8  ;;  %v960_v36 = vld [vmem:[%s3831_s15 + $0x728] sm:$0xff]  ;;  %v965_v57 = vld [vmem:[%s3831_s15 + $0x750] sm:$0xff]  ;;  %v4190_v8 = vld [vmem:[%s3829_s12 + $0x58] sm:$0xff] }
  0xfc   : > { %v3227_v54 = vpop.eup %3226  ;;  %v660_v58 = vadd.f32 1.0, %v3225_v48  ;;  %1326 = vmatmul.mubr.f32.gmra.mrb[6].mxu0 %v699_v41  ;;  %1754 = vmatmul.mubr.f32.gmra.mrb[6].mxu1 %v699_v41  ;;  %v2860_v41 = vpack.c.bf16 %v953_v34, %v949_v31  ;;  %v961_v48 = vld [vmem:[%s3831_s15 + $0x730] sm:$0xff]  ;;  %3234 = verf.f32 %v509_v15  ;;  %v994_v34 = vld [vmem:[%s3831_s15 + $0x838] sm:$0xff] }
  0xfd   : > { %2585 = vmatpush1.bf16.msra.mxu0 %v2584_v62  ;;  %v707_v62 = vmul.f32 %v651_v43, %v483_v42  ;;  %v659_v1 = vadd.f32 1.0, %v3227_v54  ;;  %v3229_v60 = vpop.eup %3228  ;;  %1331 = vmatprep.mubr.f32.mxu0 %v708_v45  ;;  %v955_v43 = vld [vmem:[%s3831_s15 + $0x700] sm:$0xff]  ;;  %v969_v61 = vld [vmem:[%s3831_s15 + $0x770] sm:$0xff] }
  0xfe   : > { %2841 = vmatpush1.bf16.msra.mxu1 %v2840_v4  ;;  %2587 = vmatprep.subr.bf16.mxu0 %v2586_v5  ;;  %v716_v4 = vmul.f32 %v660_v58, %v492_v47  ;;  %v500_v5 = vmul.f32 0.5, %v4099_v59  ;;  %v950_v59 = vld [vmem:[%s3831_s15 + $0x6d8] sm:$0xff]  ;;  %v2862_v47 = vpack.c.bf16 %v962_v38, %v958_v37  ;;  %v2866_v58 = vpack.c.bf16 %v970_v53, %v966_v51  ;;  %v4213_v31 = vld [vmem:[%s3829_s12 + $0x90] sm:$0xff]  ;;  %v987_v38 = vld [vmem:[%s3831_s15 + $0x800] sm:$0xff] }
  0xff   : > { %2843 = vmatprep.subr.bf16.mxu1 %v2842_v9  ;;  %v668_v9 = vadd.f32 1.0, %v3229_v60  ;;  %1759 = vmatprep.mubr.f32.mxu1 %v708_v45  ;;  %v715_v20 = vmul.f32 %v659_v1, %v491_v63  ;;  %v2858_v32 = vpack.c.bf16 %v954_v19, %v950_v59  ;;  %v957_v45 = vld [vmem:[%s3831_s15 + $0x710] sm:$0xff]  ;;  %v974_v63 = vld [vmem:[%s3831_s15 + $0x798] sm:$0xff]  ;;  %v2612_v60 = vpack.c.bf16 %v967_v52, %v963_v56  ;;  %v979_v19 = vld [vmem:[%s3831_s15 + $0x7c0] sm:$0xff] }
 0x100   : > { %1332 = vmatmul.mubr.f32.gmra.mrb[8].mxu0 %v707_v62  ;;  %1760 = vmatmul.mubr.f32.gmra.mrb[8].mxu1 %v707_v62  ;;  %v2864_v54 = vpack.c.bf16 %v961_v48, %v957_v45  ;;  %v976_v62 = vld [vmem:[%s3831_s15 + $0x7a8] sm:$0xff]  ;;  %v978_v1 = vld [vmem:[%s3831_s15 + $0x7b8] sm:$0xff]  ;;  %v525_v15 = vmul.f32 0.70710677, %v4213_v31  ;;  %v4230_v48 = vld [vmem:[%s3829_s12 + $0xd0] sm:$0xff] }
 0x101   : > { %2589 = vmatpush1.bf16.msra.mxu0 %v2588_v18  ;;  %v3231_v11 = vpop.eup %3230  ;;  %1337 = vmatprep.mubr.f32.mxu0 %v716_v4  ;;  %v724_v26 = vmul.f32 %v668_v9, %v500_v5  ;;  %v2614_v5 = vpack.c.bf16 %v976_v62, %v972_v33  ;;  %v2870_v0 = vpack.c.bf16 %v978_v1, %v974_v63  ;;  %v980_v9 = vld [vmem:[%s3831_s15 + $0x7c8] sm:$0xff]  ;;  %v1002_v51 = vld [vmem:[%s3831_s15 + $0x878] sm:$0xff]  ;;  %v533_v53 = vmul.f32 0.70710677, %v4230_v48  ;;  %v999_v56 = vld [vmem:[%s3831_s15 + $0x860] sm:$0xff] }
 0x102   : > { %2845 = vmatpush1.bf16.msra.mxu1 %v2844_v29  ;;  %2591 = vmatprep.subr.bf16.mxu0 %v2590_v30  ;;  %v667_v22 = vadd.f32 1.0, %v3231_v11  ;;  %v2856_v29 = vpack.c.bf16 %v945_v13, %v941_v46  ;;  %v2602_v30 = vpack.c.bf16 %v952_v16, %v948_v14  ;;  %v977_v46 = vld [vmem:[%s3831_s15 + $0x7b0] sm:$0xff]  ;;  %v984_v11 = vld [vmem:[%s3831_s15 + $0x7e8] sm:$0xff]  ;;  %v982_v13 = vld [vmem:[%s3831_s15 + $0x7d8] sm:$0xff]  ;;  %v462_v63 = vmul.f32 0.5, %v4190_v8 }
 0x103   : > { %2847 = vmatprep.subr.bf16.mxu1 %v2846_v35  ;;  %v3233_v18 = vpop.eup %3232  ;;  %v956_v35 = vld [vmem:[%s3831_s15 + $0x708] sm:$0xff]  ;;  %1765 = vmatprep.mubr.f32.mxu1 %v716_v4  ;;  %v2868_v4 = vpack.c.bf16 %v969_v61, %v965_v57  ;;  %v986_v14 = vld [vmem:[%s3831_s15 + $0x7f8] sm:$0xff]  ;;  %v4199_v16 = vld [vmem:[%s3829_s12 + $0x50] sm:$0xff] }
 0x104   : > { %v622_v28 = vadd.f32 1.0, %v3233_v18  ;;  %1338 = vmatmul.mubr.f32.gmra.mrb[10].mxu0 %v715_v20  ;;  %1766 = vmatmul.mubr.f32.gmra.mrb[10].mxu1 %v715_v20  ;;  %v723_v17 = vmul.f32 %v667_v22, %v499_v21  ;;  %v2606_v42 = vpack.c.bf16 %v960_v36, %v956_v35  ;;  %v983_v20 = vld [vmem:[%s3831_s15 + $0x7e0] sm:$0xff]  ;;  %v517_v21 = vmul.f32 0.70710677, %v4199_v16  ;;  %v996_v45 = vld [vmem:[%s3831_s15 + $0x848] sm:$0xff]  ;;  %v4241_v52 = vld [vmem:[%s3831_s15 + $0x850] sm:$0xff] }
 0x105   : > { %2593 = vmatpush1.bf16.msra.mxu0 %v2592_v44  ;;  %1343 = vmatprep.mubr.f32.mxu0 %v724_v26  ;;  %v959_v44 = vld [vmem:[%s3831_s15 + $0x720] sm:$0xff]  ;;  %v453_v35 = vmul.f32 0.5, %v4158_v24  ;;  %v2620_v37 = vpack.c.bf16 %v983_v20, %v979_v19  ;;  %v1001_v33 = vld [vmem:[%s3831_s15 + $0x870] sm:$0xff]  ;;  %v1004_v62 = vld [vmem:[%s3831_s15 + $0x888] sm:$0xff] }
 0x106   : > { %2849 = vmatpush1.bf16.msra.mxu1 %v2848_v49  ;;  %2595 = vmatprep.subr.bf16.mxu0 %v2594_v50  ;;  %v678_v40 = vmul.f32 %v622_v28, %v454_v27  ;;  %v964_v49 = vld [vmem:[%s3831_s15 + $0x748] sm:$0xff]  ;;  %v2608_v23 = vpack.c.bf16 %v959_v44, %v955_v43  ;;  %v3235_v18 = vpop.eup %3234  ;;  %v985_v27 = vld [vmem:[%s3831_s15 + $0x7f0] sm:$0xff]  ;;  %v4207_v28 = vld [vmem:[%s3829_s12 + $0x98] sm:$0xff] }
 0x107   : > { %2851 = vmatprep.subr.bf16.mxu1 %v2850_v55  ;;  %v968_v50 = vld [vmem:[%s3831_s15 + $0x768] sm:$0xff]  ;;  %1771 = vmatprep.mubr.f32.mxu1 %v724_v26  ;;  %v981_v26 = vld [vmem:[%s3831_s15 + $0x7d0] sm:$0xff]  ;;  %v526_v10 = vmul.f32 0.70710677, %v4207_v28  ;;  %v621_v36 = vadd.f32 1.0, %v3235_v18  ;;  %v991_v24 = vld [vmem:[%s3831_s15 + $0x820] sm:$0xff] }
 0x108   : > { %1344 = vmatmul.mubr.f32.gmra.mrb[12].mxu0 %v723_v17  ;;  %1772 = vmatmul.mubr.f32.gmra.mrb[12].mxu1 %v723_v17  ;;  %v2610_v55 = vpack.c.bf16 %v968_v50, %v964_v49  ;;  %v4221_v17 = vld [vmem:[%s3829_s12 + $0xd8] sm:$0xff]  ;;  %v4248_v1 = vld [vmem:[%s3829_s12 + $0x110] sm:$0xff] }
 0x109   : > { %2597 = vmatpush1.bf16.msra.mxu0 %v2596_v3  ;;  %1414 = vmatprep.mubr.f32.mxu0 %v678_v40  ;;  %v971_v3 = vld [vmem:[%s3831_s15 + $0x780] sm:$0xff]  ;;  %v534_v43 = vmul.f32 0.70710677, %v4221_v17  ;;  %v677_v49 = vmul.f32 %v621_v36, %v453_v35  ;;  %v998_v50 = vld [vmem:[%s3831_s15 + $0x858] sm:$0xff]  ;;  %v4266_v18 = vld [vmem:[%s3831_s15 + $0x890] sm:$0xff] }
 0x10a   : > { %2853 = vmatpush1.bf16.msra.mxu1 %v2852_v6  ;;  %2599 = vmatprep.subr.bf16.mxu0 %v2598_v7  ;;  %v975_v6 = vld [vmem:[%s3831_s15 + $0x7a0] sm:$0xff]  ;;  %v973_v7 = vld [vmem:[%s3831_s15 + $0x790] sm:$0xff]  ;;  %v4285_v35 = vld [vmem:[%s3829_s12 + $0x198] sm:$0x1] }
 0x10b   : > { %2855 = vmatprep.subr.bf16.mxu1 %v2854_v12  ;;  %1842 = vmatprep.mubr.f32.mxu1 %v678_v40  ;;  %v518_v12 = vmul.f32 0.70710677, %v4190_v8  ;;  %v2616_v59 = vpack.c.bf16 %v975_v6, %v971_v3  ;;  %v2872_v22 = vpack.c.bf16 %v977_v46, %v973_v7  ;;  %v2882_v3 = vpack.c.bf16 %v1002_v51, %v998_v50  ;;  %v1010_v6 = vld [vmem:[%s3831_s15 + $0x8b8] sm:$0xff]  ;;  %v4258_v8 = vld [vmem:[%s3831_s15 + $0x8a0] sm:$0xff]  ;;  %v4273_v20 = vld [vmem:[%s3829_s12 + $0x150] sm:$0xff] }
 0x10c   : > { %v541_v7 = vmul.f32 0.70710677, %v4248_v1  ;;  %v1020_v51 = vld [vmem:[%s3831_s15 + $0x908] sm:$0xff] }
 0x10d   : > { %2601 = vmatpush1.bf16.msra.mxu0 %v2600_v25  ;;  %3236 = verf.f32 %v518_v12  ;;  %v2618_v25 = vpack.c.bf16 %v984_v11, %v980_v9  ;;  %v461_v9 = vmul.f32 0.5, %v4199_v16  ;;  %v4262_v11 = vld [vmem:[%s3829_s12 + $0x158] sm:$0xff] }
 0x10e   : > { %2857 = vmatpush1.bf16.msra.mxu1 %v2856_v29  ;;  %2603 = vmatprep.subr.bf16.mxu0 %v2602_v30  ;;  %v2874_v29 = vpack.c.bf16 %v986_v14, %v982_v13  ;;  %v988_v30 = vld [vmem:[%s3831_s15 + $0x808] sm:$0xff]  ;;  %3238 = verf.f32 %v517_v21  ;;  %v2884_v14 = vpack.c.bf16 %v1001_v33, %v4241_v52  ;;  %v550_v19 = vmul.f32 0.70710677, %v4262_v11 }
 0x10f   : > { %2859 = vmatprep.subr.bf16.mxu1 %v2858_v32  ;;  %v990_v32 = vld [vmem:[%s3831_s15 + $0x818] sm:$0xff]  ;;  %3240 = verf.f32 %v526_v10  ;;  %v2622_v40 = vpack.c.bf16 %v992_v2, %v988_v30  ;;  %v1012_v21 = vld [vmem:[%s3831_s15 + $0x8c8] sm:$0xff] }
 0x110   : > { %3242 = verf.f32 %v525_v15  ;;  %v2878_v44 = vpack.c.bf16 %v994_v34, %v990_v32  ;;  %v1018_v10 = vld [vmem:[%s3831_s15 + $0x8f8] sm:$0xff]  ;;  %v469_v32 = vmul.f32 0.5, %v4213_v31  ;;  %v549_v34 = vmul.f32 0.70710677, %v4273_v20  ;;  %v4308_v52 = vld [vmem:[%s3829_s12 + $0x28] sm:$0xff] }
 0x111   : > { %2605 = vmatpush1.bf16.msra.mxu0 %v2604_v39  ;;  %v2876_v39 = vpack.c.bf16 %v985_v27, %v981_v26  ;;  %3244 = verf.f32 %v534_v43 }
 0x112   : > { %2861 = vmatpush1.bf16.msra.mxu1 %v2860_v41  ;;  %2607 = vmatprep.subr.bf16.mxu0 %v2606_v42  ;;  %v989_v41 = vld [vmem:[%s3831_s15 + $0x810] sm:$0xff]  ;;  %3246 = verf.f32 %v533_v53  ;;  %v1024_v53 = vld [vmem:[%s3831_s15 + $0x928] sm:$0xff] }
 0x113   : > { %2863 = vmatprep.subr.bf16.mxu1 %v2862_v47  ;;  %v993_v42 = vld [vmem:[%s3831_s15 + $0x830] sm:$0xff]  ;;  %v1000_v47 = vld [vmem:[%s3831_s15 + $0x868] sm:$0xff] }
 0x114   : > { %v2626_v61 = vpack.c.bf16 %v1000_v47, %v996_v45  ;;  %v1015_v45 = vld [vmem:[%s3831_s15 + $0x8e0] sm:$0xff]  ;;  %v1013_v47 = vld [vmem:[%s3831_s15 + $0x8d0] sm:$0xff] }
 0x115   : > { %2609 = vmatpush1.bf16.msra.mxu0 %v2608_v23  ;;  %v4236_v23 = vld [vmem:[%s3829_s12 + $0x118] sm:$0xff] }
 0x116   : > { %2865 = vmatpush1.bf16.msra.mxu1 %v2864_v54  ;;  %2611 = vmatprep.subr.bf16.mxu0 %v2610_v55  ;;  %v2624_v54 = vpack.c.bf16 %v991_v24, %v987_v38  ;;  %v995_v55 = vld [vmem:[%s3831_s15 + $0x840] sm:$0xff]  ;;  %v542_v57 = vmul.f32 0.70710677, %v4236_v23  ;;  %v558_v24 = vmul.f32 0.70710677, %v4285_v35  ;;  %v486_v33 = vmul.f32 0.5, %v4236_v23 }
 0x117   : > { %2867 = vmatprep.subr.bf16.mxu1 %v2866_v58  ;;  %v2880_v58 = vpack.c.bf16 %v993_v42, %v989_v41  ;;  %v2628_v13 = vpack.c.bf16 %v999_v56, %v995_v55  ;;  %v4297_v41 = vld [vmem:[%s3829_s12 + $0x190] sm:$0x1]  ;;  %v477_v56 = vmul.f32 0.5, %v4230_v48  ;;  %v1019_v23 = vld [vmem:[%s3831_s15 + $0x900] sm:$0xff] }
 0x118   : > { %3248 = verf.f32 %v542_v57 }
 0x119   : > { %2613 = vmatpush1.bf16.msra.mxu0 %v2612_v60  ;;  %v3237_v60 = vpop.eup %3236  ;;  %3250 = verf.f32 %v541_v7  ;;  %v1021_v7 = vld [vmem:[%s3831_s15 + $0x910] sm:$0xff] }
 0x11a   : > { %2869 = vmatpush1.bf16.msra.mxu1 %v2868_v4  ;;  %2615 = vmatprep.subr.bf16.mxu0 %v2614_v5  ;;  %v1008_v4 = vld [vmem:[%s3831_s15 + $0x8a8] sm:$0xff]  ;;  %v1006_v5 = vld [vmem:[%s3831_s15 + $0x898] sm:$0xff]  ;;  %v630_v46 = vadd.f32 1.0, %v3237_v60  ;;  %v3239_v12 = vpop.eup %3238  ;;  %3252 = verf.f32 %v550_v19 }
 0x11b   : > { %2871 = vmatprep.subr.bf16.mxu1 %v2870_v0  ;;  %v4255_v0 = vld [vmem:[%s3831_s15 + $0x880] sm:$0xff]  ;;  %v2630_v16 = vpack.c.bf16 %v1008_v4, %v1004_v62  ;;  %v629_v27 = vadd.f32 1.0, %v3239_v12  ;;  %v3241_v30 = vpop.eup %3240  ;;  %v2886_v2 = vpack.c.bf16 %v1010_v6, %v1006_v5  ;;  %3254 = verf.f32 %v549_v34  ;;  %v1028_v12 = vld [vmem:[%s3831_s15 + $0x948] sm:$0xff]  ;;  %v1034_v19 = vld [vmem:[%s3831_s15 + $0x978] sm:$0xff] }
 0x11c   : > { %v686_v26 = vmul.f32 %v630_v46, %v462_v63  ;;  %v3243_v36 = vpop.eup %3242  ;;  %v2632_v15 = vpack.c.bf16 %v4258_v8, %v4255_v0  ;;  %v638_v38 = vadd.f32 1.0, %v3241_v30  ;;  %3256 = verf.f32 %v558_v24  ;;  %v1023_v6 = vld [vmem:[%s3831_s15 + $0x920] sm:$0xff]  ;;  %v1033_v34 = vld [vmem:[%s3831_s15 + $0x970] sm:$0xff] }
 0x11d   : > { %2617 = vmatpush1.bf16.msra.mxu0 %v2616_v59  ;;  %v4269_v59 = vld [vmem:[%s3831_s15 + $0x8b0] sm:$0xff]  ;;  %v685_v31 = vmul.f32 %v629_v27, %v461_v9  ;;  %v3245_v42 = vpop.eup %3244  ;;  %v512_v62 = vmul.f32 0.70710677, %v4308_v52  ;;  %v2638_v5 = vpack.c.bf16 %v1024_v53, %v1020_v51  ;;  %v1031_v30 = vld [vmem:[%s3831_s15 + $0x960] sm:$0xff]  ;;  %v502_v24 = vmul.f32 0.5, %v4285_v35  ;;  %v1044_v53 = vld [vmem:[%s3831_s15 + $0x9c8] sm:$0xff] }
 0x11e   : > { %2873 = vmatpush1.bf16.msra.mxu1 %v2872_v22  ;;  %2619 = vmatprep.subr.bf16.mxu0 %v2618_v25  ;;  %v1016_v22 = vld [vmem:[%s3831_s15 + $0x8e8] sm:$0xff]  ;;  %v4278_v25 = vld [vmem:[%s3831_s15 + $0x8d8] sm:$0xff]  ;;  %v646_v55 = vadd.f32 1.0, %v3245_v42  ;;  %v3247_v57 = vpop.eup %3246  ;;  %v1025_v9 = vld [vmem:[%s3831_s15 + $0x930] sm:$0xff] }
 0x11f   : > { %2875 = vmatprep.subr.bf16.mxu1 %v2874_v29  ;;  %v470_v29 = vmul.f32 0.5, %v4207_v28  ;;  %v4292_v28 = vld [vmem:[%s3831_s15 + $0x8c0] sm:$0xff]  ;;  %v2634_v43 = vpack.c.bf16 %v1016_v22, %v1012_v21  ;;  %v494_v22 = vmul.f32 0.5, %v4262_v11  ;;  %v1041_v51 = vld [vmem:[%s3831_s15 + $0x9b0] sm:$0xff] }
 0x120   : > { %v2636_v48 = vpack.c.bf16 %v1015_v45, %v4292_v28  ;;  %v493_v28 = vmul.f32 0.5, %v4273_v20 }
 0x121   : > { %2621 = vmatpush1.bf16.msra.mxu0 %v2620_v37  ;;  %v2888_v37 = vpack.c.bf16 %v4269_v59, %v4266_v18  ;;  %v694_v50 = vmul.f32 %v638_v38, %v470_v29  ;;  %v485_v18 = vmul.f32 0.5, %v4248_v1  ;;  %v1030_v59 = vld [vmem:[%s3831_s15 + $0x958] sm:$0xff]  ;;  %v2896_v1 = vpack.c.bf16 %v1025_v9, %v1021_v7  ;;  %v1027_v29 = vld [vmem:[%s3831_s15 + $0x940] sm:$0xff]  ;;  %v1049_v7 = vld [vmem:[%s3831_s15 + $0x9f0] sm:$0xff] }
 0x122   : > { %2877 = vmatpush1.bf16.msra.mxu1 %v2876_v39  ;;  %2623 = vmatprep.subr.bf16.mxu0 %v2622_v40  ;;  %v637_v39 = vadd.f32 1.0, %v3243_v36  ;;  %v478_v40 = vmul.f32 0.5, %v4221_v17  ;;  %v557_v17 = vmul.f32 0.70710677, %v4297_v41  ;;  %v3249_v63 = vpop.eup %3248  ;;  %v2898_v11 = vpack.c.bf16 %v1034_v19, %v1030_v59  ;;  %v1036_v36 = vld [vmem:[%s3831_s15 + $0x988] sm:$0xff]  ;;  %v1042_v38 = vld [vmem:[%s3831_s15 + $0x9b8] sm:$0xff] }
 0x123   : > { %2879 = vmatprep.subr.bf16.mxu1 %v2878_v44  ;;  %v2890_v44 = vpack.c.bf16 %v1018_v10, %v4278_v25  ;;  %v654_v0 = vadd.f32 1.0, %v3249_v63  ;;  %v3251_v8 = vpop.eup %3250  ;;  %v456_v63 = vmul.f32 0.5, %v4308_v52  ;;  %v1056_v52 = vld [vmem:[%s3831_s15 + $0xa28] sm:$0xff]  ;;  %v1058_v9 = vld [vmem:[%s3831_s15 + $0xa38] sm:$0xff]  ;;  %v1051_v59 = vld [vmem:[%s3831_s15 + $0xa00] sm:$0xff] }
 0x124   : > { %1415 = vmatmul.mubr.f32.vlgmr.msra.gmra.mrb[0].mxu0 %v677_v49  ;;  %3258 = verf.f32 %v557_v17  ;;  %v702_v60 = vmul.f32 %v646_v55, %v478_v40  ;;  %v653_v21 = vadd.f32 1.0, %v3251_v8  ;;  %v3253_v25 = vpop.eup %3252  ;;  %v1055_v19 = vld [vmem:[%s3831_s15 + $0xa20] sm:$0xff] }
 0x125   : > { %2625 = vmatpush1.bf16.msra.mxu0 %v2624_v54  ;;  %1843 = vmatmul.mubr.f32.vlgmr.msra.gmra.mrb[0].mxu1 %v677_v49  ;;  %v1017_v49 = vld [vmem:[%s3831_s15 + $0x8f0] sm:$0xff]  ;;  %v693_v54 = vmul.f32 %v637_v39, %v469_v32  ;;  %3260 = verf.f32 %v512_v62  ;;  %v662_v10 = vadd.f32 1.0, %v3253_v25  ;;  %v3255_v32 = vpop.eup %3254  ;;  %v1060_v25 = vld [vmem:[%s3831_s15 + $0xa48] sm:$0xff] }
 0x126   : > { %2881 = vmatpush1.bf16.msra.mxu1 %v2880_v58  ;;  %2627 = vmatprep.subr.bf16.mxu0 %v2626_v61  ;;  %v1022_v58 = vld [vmem:[%s3831_s15 + $0x918] sm:$0xff]  ;;  %v2892_v4 = vpack.c.bf16 %v1017_v49, %v1013_v47  ;;  %v661_v40 = vadd.f32 1.0, %v3255_v32  ;;  %v3257_v42 = vpop.eup %3256  ;;  %v1035_v47 = vld [vmem:[%s3831_s15 + $0x980] sm:$0xff] }
 0x127   : > { %2883 = vmatprep.subr.bf16.mxu1 %v2882_v3  ;;  %1420 = vmatprep.mubr.f32.mxu0 %v686_v26  ;;  %v1026_v61 = vld [vmem:[%s3831_s15 + $0x938] sm:$0xff]  ;;  %v645_v3 = vadd.f32 1.0, %v3247_v57  ;;  %v718_v39 = vmul.f32 %v662_v10, %v494_v22  ;;  %v1039_v49 = vld [vmem:[%s3831_s15 + $0x9a0] sm:$0xff]  ;;  %v670_v17 = vadd.f32 1.0, %v3257_v42  ;;  %v1057_v22 = vld [vmem:[%s3831_s15 + $0xa30] sm:$0xff] }
 0x128   : > { %1848 = vmatprep.mubr.f32.mxu1 %v686_v26  ;;  %1421 = vmatmul.mubr.f32.gmra.mrb[2].mxu0 %v685_v31  ;;  %v2894_v46 = vpack.c.bf16 %v1026_v61, %v1022_v58  ;;  %v2640_v26 = vpack.c.bf16 %v1023_v6, %v1019_v23  ;;  %v717_v55 = vmul.f32 %v661_v40, %v493_v28  ;;  %v1046_v61 = vld [vmem:[%s3831_s15 + $0x9d8] sm:$0xff]  ;;  %v1045_v23 = vld [vmem:[%s3831_s15 + $0x9d0] sm:$0xff]  ;;  %v1059_v10 = vld [vmem:[%s3831_s15 + $0xa40] sm:$0xff] }
 0x129   : > { %2629 = vmatpush1.bf16.msra.mxu0 %v2628_v13  ;;  %1849 = vmatmul.mubr.f32.gmra.mrb[2].mxu1 %v685_v31  ;;  %v1032_v13 = vld [vmem:[%s3831_s15 + $0x968] sm:$0xff]  ;;  %v1038_v31 = vld [vmem:[%s3831_s15 + $0x998] sm:$0xff]  ;;  %v726_v62 = vmul.f32 %v670_v17, %v502_v24  ;;  %v1063_v32 = vld [vmem:[%s3831_s15 + $0xa60] sm:$0xff] }
 0x12a   : > { %2885 = vmatpush1.bf16.msra.mxu1 %v2884_v14  ;;  %2631 = vmatprep.subr.bf16.mxu0 %v2630_v16  ;;  %v701_v14 = vmul.f32 %v645_v3, %v477_v56  ;;  %v710_v16 = vmul.f32 %v654_v0, %v486_v33  ;;  %v2642_v27 = vpack.c.bf16 %v1032_v13, %v1028_v12  ;;  %v501_v56 = vmul.f32 0.5, %v4297_v41  ;;  %v1050_v33 = vld [vmem:[%s3831_s15 + $0x9f8] sm:$0xff]  ;;  %v1052_v0 = vld [vmem:[%s3831_s15 + $0xa08] sm:$0xff]  ;;  %v1067_v24 = vld [vmem:[%s3831_s15 + $0xa80] sm:$0xff] }
 0x12b   : > { %2887 = vmatprep.subr.bf16.mxu1 %v2886_v2  ;;  %1426 = vmatprep.mubr.f32.mxu0 %v694_v50  ;;  %v1029_v2 = vld [vmem:[%s3831_s15 + $0x950] sm:$0xff]  ;;  %v2902_v35 = vpack.c.bf16 %v1042_v38, %v1038_v31  ;;  %v2906_v6 = vpack.c.bf16 %v1050_v33, %v1046_v61  ;;  %v1070_v28 = vld [vmem:[%s3831_s15 + $0xa98] sm:$0xff]  ;;  %v2660_v38 = vpack.c.bf16 %v1063_v32, %v1059_v10  ;;  %v1071_v42 = vld [vmem:[%s3831_s15 + $0xaa0] sm:$0xff] }
 0x12c   : > { %1854 = vmatprep.mubr.f32.mxu1 %v694_v50  ;;  %1427 = vmatmul.mubr.f32.gmra.mrb[4].mxu0 %v693_v54  ;;  %v2900_v20 = vpack.c.bf16 %v1033_v34, %v1029_v2  ;;  %v1037_v50 = vld [vmem:[%s3831_s15 + $0x990] sm:$0xff]  ;;  %v1074_v31 = vld [vmem:[%s3831_s15 + $0xab8] sm:$0xff]  ;;  %v4378_v17 = vld [vmem:[%s3829_s12 + $0x20] sm:$0xff] }
 0x12d   : > { %2633 = vmatpush1.bf16.msra.mxu0 %v2632_v15  ;;  %1855 = vmatmul.mubr.f32.gmra.mrb[4].mxu1 %v693_v54  ;;  %v1040_v15 = vld [vmem:[%s3831_s15 + $0x9a8] sm:$0xff] }
 0x12e   : > { %2889 = vmatpush1.bf16.msra.mxu1 %v2888_v37  ;;  %2635 = vmatprep.subr.bf16.mxu0 %v2634_v43  ;;  %v709_v37 = vmul.f32 %v653_v21, %v485_v18  ;;  %v2644_v43 = vpack.c.bf16 %v1031_v30, %v1027_v29  ;;  %v2646_v45 = vpack.c.bf16 %v1040_v15, %v1036_v36  ;;  %v1048_v54 = vld [vmem:[%s3831_s15 + $0x9e8] sm:$0xff]  ;;  %v1065_v36 = vld [vmem:[%s3831_s15 + $0xa70] sm:$0xff] }
 0x12f   : > { %2891 = vmatprep.subr.bf16.mxu1 %v2890_v44  ;;  %1432 = vmatprep.mubr.f32.mxu0 %v702_v60  ;;  %v3259_v44 = vpop.eup %3258  ;;  %v2650_v3 = vpack.c.bf16 %v1048_v54, %v1044_v53  ;;  %v2654_v18 = vpack.c.bf16 %v1056_v52, %v1052_v0  ;;  %v2656_v29 = vpack.c.bf16 %v1055_v19, %v1051_v59  ;;  %v1068_v15 = vld [vmem:[%s3831_s15 + $0xa88] sm:$0xff]  ;;  %v1089_v0 = vld [vmem:[%s3831_s15 + $0xb30] sm:$0xff]  ;;  %v4409_v59 = vld [vmem:[%s3829_s12 + $0xa0] sm:$0xff] }
 0x130   : > { %1860 = vmatprep.mubr.f32.mxu1 %v702_v60  ;;  %1433 = vmatmul.mubr.f32.gmra.mrb[6].mxu0 %v701_v14  ;;  %v669_v57 = vadd.f32 1.0, %v3259_v44  ;;  %v3261_v58 = vpop.eup %3260  ;;  %v2904_v60 = vpack.c.bf16 %v1041_v51, %v1037_v50  ;;  %v2918_v44 = vpack.c.bf16 %v1074_v31, %v1070_v28  ;;  %v1082_v50 = vld [vmem:[%s3831_s15 + $0xaf8] sm:$0xff]  ;;  %v1075_v51 = vld [vmem:[%s3831_s15 + $0xac0] sm:$0xff]  ;;  %v1084_v61 = vld [vmem:[%s3831_s15 + $0xb08] sm:$0xff]  ;;  %v527_v10 = vmul.f32 0.70710677, %v4409_v59 }
 0x131   : > { %2637 = vmatpush1.bf16.msra.mxu0 %v2636_v48  ;;  %1861 = vmatmul.mubr.f32.gmra.mrb[6].mxu1 %v701_v14  ;;  %v2648_v48 = vpack.c.bf16 %v1039_v49, %v1035_v47  ;;  %v624_v41 = vadd.f32 1.0, %v3261_v58  ;;  %v2908_v14 = vpack.c.bf16 %v1049_v7, %v1045_v23  ;;  %v1080_v47 = vld [vmem:[%s3831_s15 + $0xae8] sm:$0xff]  ;;  %v1078_v49 = vld [vmem:[%s3831_s15 + $0xad8] sm:$0xff]  ;;  %v1085_v7 = vld [vmem:[%s3831_s15 + $0xb10] sm:$0xff] }
 0x132   : > { %2893 = vmatpush1.bf16.msra.mxu1 %v2892_v4  ;;  %2639 = vmatprep.subr.bf16.mxu0 %v2638_v5  ;;  %v1043_v4 = vld [vmem:[%s3831_s15 + $0x9c0] sm:$0xff]  ;;  %v725_v8 = vmul.f32 %v669_v57, %v501_v56  ;;  %v1077_v56 = vld [vmem:[%s3831_s15 + $0xad0] sm:$0xff]  ;;  %v2922_v58 = vpack.c.bf16 %v1082_v50, %v1078_v49  ;;  %v1088_v33 = vld [vmem:[%s3831_s15 + $0xb28] sm:$0xff] }
 0x133   : > { %2895 = vmatprep.subr.bf16.mxu1 %v2894_v46  ;;  %1438 = vmatprep.mubr.f32.mxu0 %v710_v16  ;;  %v1047_v5 = vld [vmem:[%s3831_s15 + $0x9e0] sm:$0xff]  ;;  %v1054_v46 = vld [vmem:[%s3831_s15 + $0xa18] sm:$0xff]  ;;  %v680_v12 = vmul.f32 %v624_v41, %v456_v63  ;;  %v1081_v57 = vld [vmem:[%s3831_s15 + $0xaf0] sm:$0xff]  ;;  %v2670_v23 = vpack.c.bf16 %v1088_v33, %v1084_v61 }
 0x134   : > { %1866 = vmatprep.mubr.f32.mxu1 %v710_v16  ;;  %1439 = vmatmul.mubr.f32.gmra.mrb[8].mxu0 %v709_v37  ;;  %v2652_v13 = vpack.c.bf16 %v1047_v5, %v1043_v4  ;;  %v1053_v16 = vld [vmem:[%s3831_s15 + $0xa10] sm:$0xff]  ;;  %v2910_v21 = vpack.c.bf16 %v1058_v9, %v1054_v46  ;;  %v4388_v63 = vld [vmem:[%s3829_s12 + $0x68] sm:$0xff]  ;;  %v1090_v41 = vld [vmem:[%s3831_s15 + $0xb38] sm:$0xff]  ;;  %v2924_v5 = vpack.c.bf16 %v1081_v57, %v1077_v56 }
 0x135   : > { %2641 = vmatpush1.bf16.msra.mxu0 %v2640_v26  ;;  %1867 = vmatmul.mubr.f32.gmra.mrb[8].mxu1 %v709_v37  ;;  %v1064_v26 = vld [vmem:[%s3831_s15 + $0xa68] sm:$0xff]  ;;  %v2912_v30 = vpack.c.bf16 %v1057_v22, %v1053_v16  ;;  %v1083_v4 = vld [vmem:[%s3831_s15 + $0xb00] sm:$0xff]  ;;  %v520_v52 = vmul.f32 0.70710677, %v4388_v63  ;;  %v1114_v49 = vld [vmem:[%s3831_s15 + $0xbf8] sm:$0xff] }
 0x136   : > { %2897 = vmatpush1.bf16.msra.mxu1 %v2896_v1  ;;  %2643 = vmatprep.subr.bf16.mxu0 %v2642_v27  ;;  %v1062_v1 = vld [vmem:[%s3831_s15 + $0xa58] sm:$0xff]  ;;  %v2658_v2 = vpack.c.bf16 %v1064_v26, %v1060_v25  ;;  %v1072_v37 = vld [vmem:[%s3831_s15 + $0xaa8] sm:$0xff]  ;;  %v1091_v16 = vld [vmem:[%s3831_s15 + $0xb40] sm:$0xff] }
 0x137   : > { %2899 = vmatprep.subr.bf16.mxu1 %v2898_v11  ;;  %1444 = vmatprep.mubr.f32.mxu0 %v718_v39  ;;  %v1066_v27 = vld [vmem:[%s3831_s15 + $0xa78] sm:$0xff]  ;;  %v1061_v11 = vld [vmem:[%s3831_s15 + $0xa50] sm:$0xff]  ;;  %v2662_v40 = vpack.c.bf16 %v1072_v37, %v1068_v15  ;;  %v1092_v46 = vld [vmem:[%s3831_s15 + $0xb48] sm:$0xff] }
 0x138   : > { %1872 = vmatprep.mubr.f32.mxu1 %v718_v39  ;;  %1445 = vmatmul.mubr.f32.gmra.mrb[10].mxu0 %v717_v55  ;;  %v2914_v34 = vpack.c.bf16 %v1066_v27, %v1062_v1  ;;  %v2916_v39 = vpack.c.bf16 %v1065_v36, %v1061_v11  ;;  %v1096_v9 = vld [vmem:[%s3831_s15 + $0xb68] sm:$0xff]  ;;  %v1095_v25 = vld [vmem:[%s3831_s15 + $0xb60] sm:$0xff]  ;;  %v1093_v26 = vld [vmem:[%s3831_s15 + $0xb50] sm:$0xff] }
 0x139   : > { %2645 = vmatpush1.bf16.msra.mxu0 %v2644_v43  ;;  %1873 = vmatmul.mubr.f32.gmra.mrb[10].mxu1 %v717_v55  ;;  %v1069_v43 = vld [vmem:[%s3831_s15 + $0xa90] sm:$0xff]  ;;  %v1079_v55 = vld [vmem:[%s3831_s15 + $0xae0] sm:$0xff]  ;;  %v2674_v22 = vpack.c.bf16 %v1096_v9, %v1092_v46  ;;  %v4420_v32 = vld [vmem:[%s3829_s12 + $0xe8] sm:$0xff]  ;;  %v2676_v15 = vpack.c.bf16 %v1095_v25, %v1091_v16 }
 0x13a   : > { %2901 = vmatpush1.bf16.msra.mxu1 %v2900_v20  ;;  %2647 = vmatprep.subr.bf16.mxu0 %v2646_v45  ;;  %v1073_v20 = vld [vmem:[%s3831_s15 + $0xab0] sm:$0xff]  ;;  %v1076_v45 = vld [vmem:[%s3831_s15 + $0xac8] sm:$0xff]  ;;  %v1102_v11 = vld [vmem:[%s3831_s15 + $0xb98] sm:$0xff] }
 0x13b   : > { %2903 = vmatprep.subr.bf16.mxu1 %v2902_v35  ;;  %1450 = vmatprep.mubr.f32.mxu0 %v726_v62  ;;  %v2664_v35 = vpack.c.bf16 %v1071_v42, %v1067_v24  ;;  %v2920_v53 = vpack.c.bf16 %v1073_v20, %v1069_v43  ;;  %v2666_v54 = vpack.c.bf16 %v1080_v47, %v1076_v45  ;;  %v1097_v1 = vld [vmem:[%s3831_s15 + $0xb70] sm:$0xff]  ;;  %v4425_v36 = vld [vmem:[%s3829_s12 + $0xe0] sm:$0xff]  ;;  %v536_v24 = vmul.f32 0.70710677, %v4420_v32  ;;  %v1108_v43 = vld [vmem:[%s3831_s15 + $0xbc8] sm:$0xff] }
 0x13c   : > { %1878 = vmatprep.mubr.f32.mxu1 %v726_v62  ;;  %1451 = vmatmul.mubr.f32.gmra.mrb[12].mxu0 %v725_v8  ;;  %v511_v62 = vmul.f32 0.70710677, %v4378_v17  ;;  %v1099_v37 = vld [vmem:[%s3831_s15 + $0xb80] sm:$0xff]  ;;  %v2932_v28 = vpack.c.bf16 %v1097_v1, %v1093_v26  ;;  %v535_v20 = vmul.f32 0.70710677, %v4425_v36  ;;  %v4436_v45 = vld [vmem:[%s3829_s12 + $0x128] sm:$0xff] }
 0x13d   : > { %2649 = vmatpush1.bf16.msra.mxu0 %v2648_v48  ;;  %1879 = vmatmul.mubr.f32.gmra.mrb[12].mxu1 %v725_v8  ;;  %v1086_v48 = vld [vmem:[%s3831_s15 + $0xb18] sm:$0xff]  ;;  %v4441_v50 = vld [vmem:[%s3829_s12 + $0x120] sm:$0xff]  ;;  %v1116_v61 = vld [vmem:[%s3831_s15 + $0xc08] sm:$0xff]  ;;  %v464_v1 = vmul.f32 0.5, %v4388_v63 }
 0x13e   : > { %2905 = vmatpush1.bf16.msra.mxu1 %v2904_v60  ;;  %2651 = vmatprep.subr.bf16.mxu0 %v2650_v3  ;;  %v4393_v60 = vld [vmem:[%s3829_s12 + $0x60] sm:$0xff]  ;;  %v2668_v3 = vpack.c.bf16 %v1079_v55, %v1075_v51  ;;  %v2926_v8 = vpack.c.bf16 %v1090_v41, %v1086_v48  ;;  %3262 = verf.f32 %v511_v62  ;;  %v1110_v47 = vld [vmem:[%s3831_s15 + $0xbd8] sm:$0xff]  ;;  %v1109_v55 = vld [vmem:[%s3831_s15 + $0xbd0] sm:$0xff]  ;;  %v544_v62 = vmul.f32 0.70710677, %v4436_v45 }
 0x13f   : > { %2907 = vmatprep.subr.bf16.mxu1 %v2906_v6  ;;  %1521 = vmatprep.mubr.f32.mxu0 %v680_v12  ;;  %v1087_v6 = vld [vmem:[%s3831_s15 + $0xb20] sm:$0xff]  ;;  %3264 = verf.f32 %v520_v52  ;;  %v1120_v33 = vld [vmem:[%s3831_s15 + $0xc28] sm:$0xff]  ;;  %v2938_v48 = vpack.c.bf16 %v1114_v49, %v1110_v47  ;;  %v1118_v41 = vld [vmem:[%s3831_s15 + $0xc18] sm:$0xff] }
 0x140   : > { %1949 = vmatprep.mubr.f32.mxu1 %v680_v12  ;;  %v519_v12 = vmul.f32 0.70710677, %v4393_v60  ;;  %v2672_v19 = vpack.c.bf16 %v1087_v6, %v1083_v4  ;;  %v543_v4 = vmul.f32 0.70710677, %v4441_v50  ;;  %v455_v6 = vmul.f32 0.5, %v4378_v17  ;;  %v1119_v52 = vld [vmem:[%s3831_s15 + $0xc20] sm:$0xff] }
 0x141   : > { %2653 = vmatpush1.bf16.msra.mxu0 %v2652_v13  ;;  %v4404_v13 = vld [vmem:[%s3829_s12 + $0xa8] sm:$0xff]  ;;  %v2686_v16 = vpack.c.bf16 %v1120_v33, %v1116_v61  ;;  %v1130_v25 = vld [vmem:[%s3831_s15 + $0xc78] sm:$0xff] }
 0x142   : > { %2909 = vmatpush1.bf16.msra.mxu1 %v2908_v14  ;;  %2655 = vmatprep.subr.bf16.mxu0 %v2654_v18  ;;  %v1094_v14 = vld [vmem:[%s3831_s15 + $0xb58] sm:$0xff]  ;;  %v528_v27 = vmul.f32 0.70710677, %v4404_v13  ;;  %3266 = verf.f32 %v519_v12 }
 0x143   : > { %2911 = vmatprep.subr.bf16.mxu1 %v2910_v21  ;;  %v1098_v18 = vld [vmem:[%s3831_s15 + $0xb78] sm:$0xff]  ;;  %v2928_v21 = vpack.c.bf16 %v1089_v0, %v1085_v7  ;;  %v1115_v0 = vld [vmem:[%s3831_s15 + $0xc00] sm:$0xff] }
 0x144   : > { %3268 = verf.f32 %v528_v27  ;;  %v2688_v63 = vpack.c.bf16 %v1119_v52, %v1115_v0  ;;  %v1134_v47 = vld [vmem:[%s3831_s15 + $0xc98] sm:$0xff]  ;;  %v480_v52 = vmul.f32 0.5, %v4420_v32 }
 0x145   : > { %2657 = vmatpush1.bf16.msra.mxu0 %v2656_v29  ;;  %v2930_v29 = vpack.c.bf16 %v1098_v18, %v1094_v14  ;;  %3270 = verf.f32 %v527_v10  ;;  %v1117_v14 = vld [vmem:[%s3831_s15 + $0xc10] sm:$0xff]  ;;  %v1138_v49 = vld [vmem:[%s3831_s15 + $0xcb8] sm:$0xff] }
 0x146   : > { %2913 = vmatpush1.bf16.msra.mxu1 %v2912_v30  ;;  %2659 = vmatprep.subr.bf16.mxu0 %v2658_v2  ;;  %v1100_v30 = vld [vmem:[%s3831_s15 + $0xb88] sm:$0xff]  ;;  %3272 = verf.f32 %v536_v24  ;;  %v1121_v18 = vld [vmem:[%s3831_s15 + $0xc30] sm:$0xff] }
 0x147   : > { %2915 = vmatprep.subr.bf16.mxu1 %v2914_v34  ;;  %v1104_v2 = vld [vmem:[%s3831_s15 + $0xba8] sm:$0xff]  ;;  %v1106_v34 = vld [vmem:[%s3831_s15 + $0xbb8] sm:$0xff]  ;;  %3274 = verf.f32 %v535_v20 }
 0x148   : > { %v2678_v31 = vpack.c.bf16 %v1104_v2, %v1100_v30  ;;  %v2934_v42 = vpack.c.bf16 %v1106_v34, %v1102_v11  ;;  %3276 = verf.f32 %v544_v62  ;;  %v4472_v30 = vld [vmem:[%s3829_s12 + $0x1a8] sm:$0x1]  ;;  %v463_v11 = vmul.f32 0.5, %v4393_v60 }
 0x149   : > { %2661 = vmatpush1.bf16.msra.mxu0 %v2660_v38  ;;  %v1103_v38 = vld [vmem:[%s3831_s15 + $0xba0] sm:$0xff]  ;;  %3278 = verf.f32 %v543_v4  ;;  %v1132_v60 = vld [vmem:[%s3831_s15 + $0xc88] sm:$0xff]  ;;  %v560_v20 = vmul.f32 0.70710677, %v4472_v30  ;;  %v1133_v4 = vld [vmem:[%s3831_s15 + $0xc90] sm:$0xff] }
 0x14a   : > { %2917 = vmatpush1.bf16.msra.mxu1 %v2916_v39  ;;  %2663 = vmatprep.subr.bf16.mxu0 %v2662_v40  ;;  %v1101_v39 = vld [vmem:[%s3831_s15 + $0xb90] sm:$0xff]  ;;  %v2680_v51 = vpack.c.bf16 %v1103_v38, %v1099_v37  ;;  %v1123_v38 = vld [vmem:[%s3831_s15 + $0xc40] sm:$0xff] }
 0x14b   : > { %2919 = vmatprep.subr.bf16.mxu1 %v2918_v44  ;;  %v1105_v40 = vld [vmem:[%s3831_s15 + $0xbb0] sm:$0xff]  ;;  %v1112_v44 = vld [vmem:[%s3831_s15 + $0xbe8] sm:$0xff] }
 0x14c   : > { %v2936_v56 = vpack.c.bf16 %v1105_v40, %v1101_v39  ;;  %v2682_v57 = vpack.c.bf16 %v1112_v44, %v1108_v43  ;;  %v1127_v39 = vld [vmem:[%s3831_s15 + $0xc60] sm:$0xff]  ;;  %v1125_v40 = vld [vmem:[%s3831_s15 + $0xc50] sm:$0xff]  ;;  %v1136_v43 = vld [vmem:[%s3831_s15 + $0xca8] sm:$0xff]  ;;  %v472_v44 = vmul.f32 0.5, %v4404_v13  ;;  %v471_v13 = vmul.f32 0.5, %v4409_v59 }
 0x14d   : > { %2665 = vmatpush1.bf16.msra.mxu0 %v2664_v35  ;;  %v3263_v35 = vpop.eup %3262  ;;  %v2692_v61 = vpack.c.bf16 %v1127_v39, %v1123_v38  ;;  %v2694_v62 = vpack.c.bf16 %v1136_v43, %v1132_v60  ;;  %v487_v38 = vmul.f32 0.5, %v4441_v50  ;;  %v1147_v60 = vld [vmem:[%s3831_s15 + $0xd00] sm:$0xff]  ;;  %v1156_v50 = vld [vmem:[%s3831_s15 + $0xd48] sm:$0xff] }
 0x14e   : > { %2921 = vmatpush1.bf16.msra.mxu1 %v2920_v53  ;;  %2667 = vmatprep.subr.bf16.mxu0 %v2666_v54  ;;  %v1107_v53 = vld [vmem:[%s3831_s15 + $0xbc0] sm:$0xff]  ;;  %v623_v7 = vadd.f32 1.0, %v3263_v35 }
 0x14f   : > { %2923 = vmatprep.subr.bf16.mxu1 %v2922_v58  ;;  %v1111_v54 = vld [vmem:[%s3831_s15 + $0xbe0] sm:$0xff]  ;;  %v1113_v58 = vld [vmem:[%s3831_s15 + $0xbf0] sm:$0xff] }
 0x150   : > { %v2684_v9 = vpack.c.bf16 %v1111_v54, %v1107_v53  ;;  %v2940_v12 = vpack.c.bf16 %v1113_v58, %v1109_v55  ;;  %v679_v10 = vmul.f32 %v623_v7, %v455_v6  ;;  %v4490_v54 = vld [vmem:[%s3829_s12 + $0x38] sm:$0xff]  ;;  %v1140_v6 = vld [vmem:[%s3831_s15 + $0xcc8] sm:$0xff]  ;;  %v1151_v43 = vld [vmem:[%s3831_s15 + $0xd20] sm:$0xff] }
 0x151   : > { %2669 = vmatpush1.bf16.msra.mxu0 %v2668_v3  ;;  %v1122_v3 = vld [vmem:[%s3831_s15 + $0xc38] sm:$0xff]  ;;  %v514_v59 = vmul.f32 0.70710677, %v4490_v54  ;;  %v1144_v7 = vld [vmem:[%s3831_s15 + $0xce8] sm:$0xff] }
 0x152   : > { %2925 = vmatpush1.bf16.msra.mxu1 %v2924_v5  ;;  %2671 = vmatprep.subr.bf16.mxu0 %v2670_v23  ;;  %v4454_v5 = vld [vmem:[%s3829_s12 + $0x168] sm:$0xff]  ;;  %v3265_v23 = vpop.eup %3264  ;;  %v2942_v17 = vpack.c.bf16 %v1122_v3, %v1118_v41  ;;  %v1131_v41 = vld [vmem:[%s3831_s15 + $0xc80] sm:$0xff] }
 0x153   : > { %2927 = vmatprep.subr.bf16.mxu1 %v2926_v8  ;;  %v4460_v8 = vld [vmem:[%s3829_s12 + $0x160] sm:$0xff]  ;;  %v3267_v46 = vpop.eup %3266  ;;  %v552_v26 = vmul.f32 0.70710677, %v4454_v5  ;;  %v632_v27 = vadd.f32 1.0, %v3265_v23  ;;  %v1137_v23 = vld [vmem:[%s3831_s15 + $0xcb0] sm:$0xff] }
 0x154   : > { %v3269_v2 = vpop.eup %3268  ;;  %v631_v34 = vadd.f32 1.0, %v3267_v46  ;;  %v1135_v3 = vld [vmem:[%s3831_s15 + $0xca0] sm:$0xff] }
 0x155   : > { %2673 = vmatpush1.bf16.msra.mxu0 %v2672_v19  ;;  %v1124_v19 = vld [vmem:[%s3831_s15 + $0xc48] sm:$0xff]  ;;  %v3271_v37 = vpop.eup %3270  ;;  %3280 = verf.f32 %v552_v26  ;;  %v688_v35 = vmul.f32 %v632_v27, %v464_v1  ;;  %v2696_v32 = vpack.c.bf16 %v1135_v3, %v1131_v41  ;;  %v1143_v26 = vld [vmem:[%s3831_s15 + $0xce0] sm:$0xff]  ;;  %v1141_v1 = vld [vmem:[%s3831_s15 + $0xcd0] sm:$0xff] }
 0x156   : > { %2929 = vmatpush1.bf16.msra.mxu1 %v2928_v21  ;;  %2675 = vmatprep.subr.bf16.mxu0 %v2674_v22  ;;  %v1128_v21 = vld [vmem:[%s3831_s15 + $0xc68] sm:$0xff]  ;;  %v1126_v22 = vld [vmem:[%s3831_s15 + $0xc58] sm:$0xff]  ;;  %v3273_v55 = vpop.eup %3272  ;;  %v1145_v27 = vld [vmem:[%s3831_s15 + $0xcf0] sm:$0xff] }
 0x157   : > { %2931 = vmatprep.subr.bf16.mxu1 %v2930_v29  ;;  %v551_v29 = vmul.f32 0.70710677, %v4460_v8  ;;  %v2946_v24 = vpack.c.bf16 %v1130_v25, %v1126_v22  ;;  %v3275_v58 = vpop.eup %3274  ;;  %v648_v46 = vadd.f32 1.0, %v3273_v55  ;;  %v2698_v22 = vpack.c.bf16 %v1144_v7, %v1140_v6  ;;  %v1139_v25 = vld [vmem:[%s3831_s15 + $0xcc0] sm:$0xff]  ;;  %v1168_v6 = vld [vmem:[%s3831_s15 + $0xda8] sm:$0xff] }
 0x158   : > { %v1155_v41 = vld [vmem:[%s3831_s15 + $0xd40] sm:$0xff] }
 0x159   : > { %2677 = vmatpush1.bf16.msra.mxu0 %v2676_v15  ;;  %v4476_v15 = vld [vmem:[%s3829_s12 + $0x1a0] sm:$0x1]  ;;  %3282 = verf.f32 %v551_v29  ;;  %v1148_v29 = vld [vmem:[%s3831_s15 + $0xd08] sm:$0xff] }
 0x15a   : > { %2933 = vmatpush1.bf16.msra.mxu1 %v2932_v28  ;;  %2679 = vmatprep.subr.bf16.mxu0 %v2678_v31  ;;  %v2944_v28 = vpack.c.bf16 %v1121_v18, %v1117_v14  ;;  %v2690_v31 = vpack.c.bf16 %v1128_v21, %v1124_v19  ;;  %v559_v53 = vmul.f32 0.70710677, %v4476_v15  ;;  %3284 = verf.f32 %v560_v20  ;;  %v1146_v14 = vld [vmem:[%s3831_s15 + $0xcf8] sm:$0xff]  ;;  %v1159_v3 = vld [vmem:[%s3831_s15 + $0xd60] sm:$0xff] }
 0x15b   : > { %2935 = vmatprep.subr.bf16.mxu1 %v2934_v42  ;;  %v1129_v42 = vld [vmem:[%s3831_s15 + $0xc70] sm:$0xff]  ;;  %v479_v19 = vmul.f32 0.5, %v4425_v36  ;;  %v2952_v21 = vpack.c.bf16 %v1137_v23, %v1133_v4 }
 0x15c   : > { %v2948_v33 = vpack.c.bf16 %v1129_v42, %v1125_v40  ;;  %3286 = verf.f32 %v559_v53  ;;  %v1157_v4 = vld [vmem:[%s3831_s15 + $0xd50] sm:$0xff] }
 0x15d   : > { %2681 = vmatpush1.bf16.msra.mxu0 %v2680_v51  ;;  %v640_v51 = vadd.f32 1.0, %v3269_v2  ;;  %3288 = verf.f32 %v514_v59  ;;  %v1152_v2 = vld [vmem:[%s3831_s15 + $0xd28] sm:$0xff]  ;;  %v1161_v23 = vld [vmem:[%s3831_s15 + $0xd70] sm:$0xff] }
 0x15e   : > { %2937 = vmatpush1.bf16.msra.mxu1 %v2936_v56  ;;  %2683 = vmatprep.subr.bf16.mxu0 %v2682_v57  ;;  %v687_v56 = vmul.f32 %v631_v34, %v463_v11  ;;  %v639_v57 = vadd.f32 1.0, %v3271_v37  ;;  %v488_v11 = vmul.f32 0.5, %v4436_v45  ;;  %v2956_v45 = vpack.c.bf16 %v1145_v27, %v1141_v1  ;;  %v1172_v1 = vld [vmem:[%s3831_s15 + $0xdc8] sm:$0xff] }
 0x15f   : > { %2939 = vmatprep.subr.bf16.mxu1 %v2938_v48  ;;  %v2950_v48 = vpack.c.bf16 %v1138_v49, %v1134_v47  ;;  %v696_v0 = vmul.f32 %v640_v51, %v472_v44  ;;  %v2702_v42 = vpack.c.bf16 %v1152_v2, %v1148_v29  ;;  %v1149_v44 = vld [vmem:[%s3831_s15 + $0xd10] sm:$0xff]  ;;  %v1160_v49 = vld [vmem:[%s3831_s15 + $0xd68] sm:$0xff]  ;;  %v496_v51 = vmul.f32 0.5, %v4454_v5  ;;  %v1174_v2 = vld [vmem:[%s3831_s15 + $0xdd8] sm:$0xff] }
 0x160   : > { %v695_v18 = vmul.f32 %v639_v57, %v471_v13  ;;  %v1153_v47 = vld [vmem:[%s3831_s15 + $0xd30] sm:$0xff]  ;;  %v1162_v13 = vld [vmem:[%s3831_s15 + $0xd78] sm:$0xff]  ;;  %v458_v27 = vmul.f32 0.5, %v4490_v54  ;;  %v1171_v54 = vld [vmem:[%s3831_s15 + $0xdc0] sm:$0xff] }
 0x161   : > { %2685 = vmatpush1.bf16.msra.mxu0 %v2684_v9  ;;  %v3277_v9 = vpop.eup %3276  ;;  %v2960_v5 = vpack.c.bf16 %v1153_v47, %v1149_v44  ;;  %v1179_v47 = vld [vmem:[%s3831_s15 + $0xe00] sm:$0xff] }
 0x162   : > { %2941 = vmatpush1.bf16.msra.mxu1 %v2940_v12  ;;  %2687 = vmatprep.subr.bf16.mxu0 %v2686_v16  ;;  %v1142_v12 = vld [vmem:[%s3831_s15 + $0xcd8] sm:$0xff]  ;;  %v647_v16 = vadd.f32 1.0, %v3275_v58  ;;  %v656_v34 = vadd.f32 1.0, %v3277_v9  ;;  %v495_v58 = vmul.f32 0.5, %v4460_v8  ;;  %v1164_v8 = vld [vmem:[%s3831_s15 + $0xd88] sm:$0xff] }
 0x163   : > { %2943 = vmatprep.subr.bf16.mxu1 %v2942_v17  ;;  %v3279_v17 = vpop.eup %3278  ;;  %v2954_v36 = vpack.c.bf16 %v1146_v14, %v1142_v12  ;;  %v1166_v9 = vld [vmem:[%s3831_s15 + $0xd98] sm:$0xff] }
 0x164   : > { %1522 = vmatmul.mubr.f32.vlgmr.msra.gmra.mrb[0].mxu0 %v679_v10  ;;  %v3281_v37 = vpop.eup %3280  ;;  %v655_v39 = vadd.f32 1.0, %v3279_v17  ;;  %v1170_v12 = vld [vmem:[%s3831_s15 + $0xdb8] sm:$0xff]  ;;  %v2710_v17 = vpack.c.bf16 %v1168_v6, %v1164_v8 }
 0x165   : > { %2689 = vmatpush1.bf16.msra.mxu0 %v2688_v63  ;;  %1950 = vmatmul.mubr.f32.vlgmr.msra.gmra.mrb[0].mxu1 %v679_v10  ;;  %v704_v10 = vmul.f32 %v648_v46, %v480_v52  ;;  %v1150_v63 = vld [vmem:[%s3831_s15 + $0xd18] sm:$0xff]  ;;  %v3283_v40 = vpop.eup %3282  ;;  %v664_v53 = vadd.f32 1.0, %v3281_v37 }
 0x166   : > { %2945 = vmatpush1.bf16.msra.mxu1 %v2944_v28  ;;  %2691 = vmatprep.subr.bf16.mxu0 %v2690_v31  ;;  %v1154_v28 = vld [vmem:[%s3831_s15 + $0xd38] sm:$0xff]  ;;  %v703_v31 = vmul.f32 %v647_v16, %v479_v19  ;;  %v3285_v55 = vpop.eup %3284  ;;  %v711_v57 = vmul.f32 %v655_v39, %v487_v38  ;;  %v2708_v16 = vpack.c.bf16 %v1159_v3, %v1155_v41  ;;  %v1177_v39 = vld [vmem:[%s3831_s15 + $0xdf0] sm:$0xff]  ;;  %v1196_v3 = vld [vmem:[%s3831_s15 + $0xe88] sm:$0xff] }
 0x167   : > { %2947 = vmatprep.subr.bf16.mxu1 %v2946_v24  ;;  %1527 = vmatprep.mubr.f32.mxu0 %v688_v35  ;;  %v2700_v24 = vpack.c.bf16 %v1143_v26, %v1139_v25  ;;  %v2958_v20 = vpack.c.bf16 %v1154_v28, %v1150_v63  ;;  %v720_v7 = vmul.f32 %v664_v53, %v496_v51  ;;  %v672_v52 = vadd.f32 1.0, %v3285_v55  ;;  %v1169_v26 = vld [vmem:[%s3831_s15 + $0xdb0] sm:$0xff]  ;;  %v1175_v28 = vld [vmem:[%s3831_s15 + $0xde0] sm:$0xff]  ;;  %v1188_v53 = vld [vmem:[%s3831_s15 + $0xe48] sm:$0xff] }
 0x168   : > { %1955 = vmatprep.mubr.f32.mxu1 %v688_v35  ;;  %1528 = vmatmul.mubr.f32.gmra.mrb[2].mxu0 %v687_v56  ;;  %v712_v35 = vmul.f32 %v656_v34, %v488_v11  ;;  %v2966_v25 = vpack.c.bf16 %v1170_v12, %v1166_v9  ;;  %v1185_v51 = vld [vmem:[%s3831_s15 + $0xe30] sm:$0xff]  ;;  %v1192_v55 = vld [vmem:[%s3831_s15 + $0xe68] sm:$0xff] }
 0x169   : > { %2693 = vmatpush1.bf16.msra.mxu0 %v2692_v61  ;;  %1956 = vmatmul.mubr.f32.gmra.mrb[2].mxu1 %v687_v56  ;;  %v1158_v56 = vld [vmem:[%s3831_s15 + $0xd58] sm:$0xff]  ;;  %v663_v61 = vadd.f32 1.0, %v3283_v40  ;;  %v1180_v40 = vld [vmem:[%s3831_s15 + $0xe08] sm:$0xff]  ;;  %v1193_v41 = vld [vmem:[%s3831_s15 + $0xe70] sm:$0xff] }
 0x16a   : > { %2949 = vmatpush1.bf16.msra.mxu1 %v2948_v33  ;;  %2695 = vmatprep.subr.bf16.mxu0 %v2694_v62  ;;  %v3287_v33 = vpop.eup %3286  ;;  %v2704_v62 = vpack.c.bf16 %v1151_v43, %v1147_v60  ;;  %v2962_v59 = vpack.c.bf16 %v1162_v13, %v1158_v56  ;;  %v1186_v60 = vld [vmem:[%s3831_s15 + $0xe38] sm:$0xff]  ;;  %v2716_v43 = vpack.c.bf16 %v1175_v28, %v1171_v54  ;;  %v1201_v12 = vld [vmem:[%s3831_s15 + $0xeb0] sm:$0xff] }
 0x16b   : > { %2951 = vmatprep.subr.bf16.mxu1 %v2950_v48  ;;  %1533 = vmatprep.mubr.f32.mxu0 %v696_v0  ;;  %v2706_v48 = vpack.c.bf16 %v1160_v49, %v1156_v50  ;;  %v3289_v46 = vpop.eup %3288  ;;  %v719_v14 = vmul.f32 %v663_v61, %v495_v58  ;;  %v671_v19 = vadd.f32 1.0, %v3287_v33  ;;  %v1183_v50 = vld [vmem:[%s3831_s15 + $0xe20] sm:$0xff]  ;;  %v1181_v49 = vld [vmem:[%s3831_s15 + $0xe10] sm:$0xff]  ;;  %v1190_v56 = vld [vmem:[%s3831_s15 + $0xe58] sm:$0xff]  ;;  %v2722_v61 = vpack.c.bf16 %v1192_v55, %v1188_v53 }
 0x16c   : > { %1961 = vmatprep.mubr.f32.mxu1 %v696_v0  ;;  %1534 = vmatmul.mubr.f32.gmra.mrb[4].mxu0 %v695_v18  ;;  %v504_v0 = vmul.f32 0.5, %v4472_v30  ;;  %v2964_v30 = vpack.c.bf16 %v1161_v23, %v1157_v4  ;;  %v626_v29 = vadd.f32 1.0, %v3289_v46  ;;  %v1194_v13 = vld [vmem:[%s3831_s15 + $0xe78] sm:$0xff]  ;;  %v2976_v58 = vpack.c.bf16 %v1185_v51, %v1181_v49  ;;  %v1187_v33 = vld [vmem:[%s3831_s15 + $0xe40] sm:$0xff]  ;;  %v1200_v4 = vld [vmem:[%s3831_s15 + $0xea8] sm:$0xff] }
 0x16d   : > { %2697 = vmatpush1.bf16.msra.mxu0 %v2696_v32  ;;  %1962 = vmatmul.mubr.f32.gmra.mrb[4].mxu1 %v695_v18  ;;  %v503_v18 = vmul.f32 0.5, %v4476_v15  ;;  %v1163_v32 = vld [vmem:[%s3831_s15 + $0xd80] sm:$0xff]  ;;  %v1202_v23 = vld [vmem:[%s3831_s15 + $0xeb8] sm:$0xff]  ;;  %v1197_v46 = vld [vmem:[%s3831_s15 + $0xe90] sm:$0xff] }
 0x16e   : > { %2953 = vmatpush1.bf16.msra.mxu1 %v2952_v21  ;;  %2699 = vmatprep.subr.bf16.mxu0 %v2698_v22  ;;  %v1167_v21 = vld [vmem:[%s3831_s15 + $0xda0] sm:$0xff]  ;;  %v1165_v22 = vld [vmem:[%s3831_s15 + $0xd90] sm:$0xff]  ;;  %v728_v15 = vmul.f32 %v672_v52, %v504_v0  ;;  %v4595_v54 = vld [vmem:[%s3829_s12 + $0xb8] sm:$0xff] }
 0x16f   : > { %2955 = vmatprep.subr.bf16.mxu1 %v2954_v36  ;;  %1539 = vmatprep.mubr.f32.mxu0 %v704_v10  ;;  %v1176_v36 = vld [vmem:[%s3831_s15 + $0xde8] sm:$0xff]  ;;  %v727_v11 = vmul.f32 %v671_v19, %v503_v18  ;;  %v2712_v34 = vpack.c.bf16 %v1167_v21, %v1163_v32  ;;  %v2968_v37 = vpack.c.bf16 %v1169_v26, %v1165_v22  ;;  %v1195_v0 = vld [vmem:[%s3831_s15 + $0xe80] sm:$0xff]  ;;  %v1206_v19 = vld [vmem:[%s3831_s15 + $0xed8] sm:$0xff] }
 0x170   : > { %1967 = vmatprep.mubr.f32.mxu1 %v704_v10  ;;  %1540 = vmatmul.mubr.f32.gmra.mrb[6].mxu0 %v703_v31  ;;  %v1178_v10 = vld [vmem:[%s3831_s15 + $0xdf8] sm:$0xff]  ;;  %v2714_v63 = vpack.c.bf16 %v1176_v36, %v1172_v1  ;;  %v1199_v52 = vld [vmem:[%s3831_s15 + $0xea0] sm:$0xff]  ;;  %v1208_v18 = vld [vmem:[%s3831_s15 + $0xee8] sm:$0xff]  ;;  %v2984_v21 = vpack.c.bf16 %v1201_v12, %v1197_v46 }
 0x171   : > { %2701 = vmatpush1.bf16.msra.mxu0 %v2700_v24  ;;  %1968 = vmatmul.mubr.f32.gmra.mrb[6].mxu1 %v703_v31  ;;  %v1173_v31 = vld [vmem:[%s3831_s15 + $0xdd0] sm:$0xff]  ;;  %v2970_v38 = vpack.c.bf16 %v1178_v10, %v1174_v2  ;;  %v1184_v24 = vld [vmem:[%s3831_s15 + $0xe28] sm:$0xff]  ;;  %v4579_v32 = vld [vmem:[%s3829_s12 + $0x78] sm:$0xff] }
 0x172   : > { %2957 = vmatpush1.bf16.msra.mxu1 %v2956_v45  ;;  %2703 = vmatprep.subr.bf16.mxu0 %v2702_v42  ;;  %v682_v45 = vmul.f32 %v626_v29, %v458_v27  ;;  %v1182_v42 = vld [vmem:[%s3831_s15 + $0xe18] sm:$0xff]  ;;  %v2972_v44 = vpack.c.bf16 %v1177_v39, %v1173_v31  ;;  %v1207_v26 = vld [vmem:[%s3831_s15 + $0xee0] sm:$0xff]  ;;  %v1205_v1 = vld [vmem:[%s3831_s15 + $0xed0] sm:$0xff] }
 0x173   : > { %2959 = vmatprep.subr.bf16.mxu1 %v2958_v20  ;;  %1545 = vmatprep.mubr.f32.mxu0 %v712_v35  ;;  %v2718_v20 = vpack.c.bf16 %v1184_v24, %v1180_v40  ;;  %v1212_v27 = vld [vmem:[%s3831_s15 + $0xf08] sm:$0xff]  ;;  %v1214_v10 = vld [vmem:[%s3831_s15 + $0xf18] sm:$0xff]  ;;  %v1215_v39 = vld [vmem:[%s3831_s15 + $0xf20] sm:$0xff] }
 0x174   : > { %1973 = vmatprep.mubr.f32.mxu1 %v712_v35  ;;  %1546 = vmatmul.mubr.f32.gmra.mrb[8].mxu0 %v711_v57  ;;  %v2974_v35 = vpack.c.bf16 %v1186_v60, %v1182_v42  ;;  %v1216_v29 = vld [vmem:[%s3831_s15 + $0xf28] sm:$0xff]  ;;  %v1213_v40 = vld [vmem:[%s3831_s15 + $0xf10] sm:$0xff]  ;;  %v1219_v55 = vld [vmem:[%s3831_s15 + $0xf40] sm:$0xff] }
 0x175   : > { %2705 = vmatpush1.bf16.msra.mxu0 %v2704_v62  ;;  %1974 = vmatmul.mubr.f32.gmra.mrb[8].mxu1 %v711_v57  ;;  %v2720_v57 = vpack.c.bf16 %v1183_v50, %v1179_v47  ;;  %v1191_v62 = vld [vmem:[%s3831_s15 + $0xe60] sm:$0xff]  ;;  %v2734_v31 = vpack.c.bf16 %v1216_v29, %v1212_v27  ;;  %v1220_v42 = vld [vmem:[%s3831_s15 + $0xf48] sm:$0xff]  ;;  %v530_v47 = vmul.f32 0.70710677, %v4595_v54  ;;  %v4608_v50 = vld [vmem:[%s3829_s12 + $0xb0] sm:$0xff] }
 0x176   : > { %2961 = vmatpush1.bf16.msra.mxu1 %v2960_v5  ;;  %2707 = vmatprep.subr.bf16.mxu0 %v2706_v48  ;;  %v1189_v5 = vld [vmem:[%s3831_s15 + $0xe50] sm:$0xff]  ;;  %v2978_v48 = vpack.c.bf16 %v1194_v13, %v1190_v56  ;;  %v2724_v8 = vpack.c.bf16 %v1191_v62, %v1187_v33  ;;  %v1224_v60 = vld [vmem:[%s3831_s15 + $0xf68] sm:$0xff]  ;;  %v1223_v56 = vld [vmem:[%s3831_s15 + $0xf60] sm:$0xff]  ;;  %v529_v62 = vmul.f32 0.70710677, %v4608_v50 }
 0x177   : > { %2963 = vmatprep.subr.bf16.mxu1 %v2962_v59  ;;  %1551 = vmatprep.mubr.f32.mxu0 %v720_v7  ;;  %v1198_v59 = vld [vmem:[%s3831_s15 + $0xe98] sm:$0xff]  ;;  %v2980_v6 = vpack.c.bf16 %v1193_v41, %v1189_v5  ;;  %v2738_v53 = vpack.c.bf16 %v1224_v60, %v1220_v42  ;;  %v1221_v13 = vld [vmem:[%s3831_s15 + $0xf50] sm:$0xff]  ;;  %v1232_v33 = vld [vmem:[%s3831_s15 + $0xfa8] sm:$0xff] }
 0x178   : > { %1979 = vmatprep.mubr.f32.mxu1 %v720_v7  ;;  %1552 = vmatmul.mubr.f32.gmra.mrb[10].mxu0 %v719_v14  ;;  %v2726_v7 = vpack.c.bf16 %v1200_v4, %v1196_v3  ;;  %v2982_v9 = vpack.c.bf16 %v1202_v23, %v1198_v59  ;;  %v1230_v5 = vld [vmem:[%s3831_s15 + $0xf98] sm:$0xff]  ;;  %v4624_v3 = vld [vmem:[%s3829_s12 + $0xf0] sm:$0xff]  ;;  %v2740_v4 = vpack.c.bf16 %v1223_v56, %v1219_v55  ;;  %v1240_v12 = vld [vmem:[%s3831_s15 + $0xfe8] sm:$0xff] }
 0x179   : > { %2709 = vmatpush1.bf16.msra.mxu0 %v2708_v16  ;;  %1980 = vmatmul.mubr.f32.gmra.mrb[10].mxu1 %v719_v14  ;;  %v1204_v14 = vld [vmem:[%s3831_s15 + $0xec8] sm:$0xff]  ;;  %v1210_v16 = vld [vmem:[%s3831_s15 + $0xef8] sm:$0xff]  ;;  %v1233_v46 = vld [vmem:[%s3831_s15 + $0xfb0] sm:$0xff] }
 0x17a   : > { %2965 = vmatpush1.bf16.msra.mxu1 %v2964_v30  ;;  %2711 = vmatprep.subr.bf16.mxu0 %v2710_v17  ;;  %v4576_v30 = vld [vmem:[%s3829_s12 + $0x30] sm:$0xff]  ;;  %v2728_v17 = vpack.c.bf16 %v1199_v52, %v1195_v0  ;;  %v2730_v22 = vpack.c.bf16 %v1208_v18, %v1204_v14  ;;  %v2986_v36 = vpack.c.bf16 %v1210_v16, %v1206_v19  ;;  %v4627_v59 = vld [vmem:[%s3829_s12 + $0x138] sm:$0xff]  ;;  %v537_v14 = vmul.f32 0.70710677, %v4624_v3  ;;  %v1239_v27 = vld [vmem:[%s3831_s15 + $0xfe0] sm:$0xff] }
 0x17b   : > { %2967 = vmatprep.subr.bf16.mxu1 %v2966_v25  ;;  %1557 = vmatprep.mubr.f32.mxu0 %v728_v15  ;;  %v1203_v25 = vld [vmem:[%s3831_s15 + $0xec0] sm:$0xff]  ;;  %v513_v2 = vmul.f32 0.70710677, %v4576_v30  ;;  %v1229_v0 = vld [vmem:[%s3831_s15 + $0xf90] sm:$0xff]  ;;  %v1238_v18 = vld [vmem:[%s3831_s15 + $0xfd8] sm:$0xff] }
 0x17c   : > { %1985 = vmatprep.mubr.f32.mxu1 %v728_v15  ;;  %1558 = vmatmul.mubr.f32.gmra.mrb[12].mxu0 %v727_v11  ;;  %v1209_v15 = vld [vmem:[%s3831_s15 + $0xef0] sm:$0xff]  ;;  %v1242_v19 = vld [vmem:[%s3831_s15 + $0xff8] sm:$0xff]  ;;  %v546_v16 = vmul.f32 0.70710677, %v4627_v59 }
 0x17d   : > { %2713 = vmatpush1.bf16.msra.mxu0 %v2712_v34  ;;  %1986 = vmatmul.mubr.f32.gmra.mrb[12].mxu1 %v727_v11  ;;  %v1218_v11 = vld [vmem:[%s3831_s15 + $0xf38] sm:$0xff]  ;;  %v522_v34 = vmul.f32 0.70710677, %v4579_v32  ;;  %v2988_v28 = vpack.c.bf16 %v1209_v15, %v1205_v1  ;;  %3290 = verf.f32 %v513_v2  ;;  %v3000_v1 = vpack.c.bf16 %v1233_v46, %v1229_v0  ;;  %v1235_v15 = vld [vmem:[%s3831_s15 + $0xfc0] sm:$0xff]  ;;  %v1237_v2 = vld [vmem:[%s3831_s15 + $0xfd0] sm:$0xff] }
 0x17e   : > { %2969 = vmatpush1.bf16.msra.mxu1 %v2968_v37  ;;  %2715 = vmatprep.subr.bf16.mxu0 %v2714_v63  ;;  %v4592_v37 = vld [vmem:[%s3829_s12 + $0x70] sm:$0xff]  ;;  %v2732_v63 = vpack.c.bf16 %v1207_v26, %v1203_v25  ;;  %v2990_v24 = vpack.c.bf16 %v1218_v11, %v1214_v10  ;;  %v4643_v25 = vld [vmem:[%s3829_s12 + $0x178] sm:$0xff]  ;;  %v3002_v29 = vpack.c.bf16 %v1242_v19, %v1238_v18 }
 0x17f   : > { %2971 = vmatprep.subr.bf16.mxu1 %v2970_v38  ;;  %1628 = vmatprep.mubr.f32.mxu0 %v682_v45  ;;  %v1211_v38 = vld [vmem:[%s3831_s15 + $0xf00] sm:$0xff]  ;;  %3292 = verf.f32 %v522_v34  ;;  %v1241_v10 = vld [vmem:[%s3831_s15 + $0xff0] sm:$0xff]  ;;  %v457_v34 = vmul.f32 0.5, %v4576_v30  ;;  %v465_v30 = vmul.f32 0.5, %v4592_v37 }
 0x180   : > { %2056 = vmatprep.mubr.f32.mxu1 %v682_v45  ;;  %v1217_v45 = vld [vmem:[%s3831_s15 + $0xf30] sm:$0xff]  ;;  %v2736_v49 = vpack.c.bf16 %v1215_v39, %v1211_v38  ;;  %v2748_v39 = vpack.c.bf16 %v1239_v27, %v1235_v15  ;;  %v3004_v60 = vpack.c.bf16 %v1241_v10, %v1237_v2 }
 0x181   : > { %2717 = vmatpush1.bf16.msra.mxu0 %v2716_v43  ;;  %v521_v43 = vmul.f32 0.70710677, %v4592_v37  ;;  %v2992_v51 = vpack.c.bf16 %v1217_v45, %v1213_v40  ;;  %v466_v40 = vmul.f32 0.5, %v4579_v32  ;;  %v4657_v45 = vld [vmem:[%s3829_s12 + $0x1b8] sm:$0x1] }
 0x182   : > { %2973 = vmatpush1.bf16.msra.mxu1 %v2972_v44  ;;  %2719 = vmatprep.subr.bf16.mxu0 %v2718_v20  ;;  %v1222_v44 = vld [vmem:[%s3831_s15 + $0xf58] sm:$0xff] }
 0x183   : > { %2975 = vmatprep.subr.bf16.mxu1 %v2974_v35  ;;  %v1226_v20 = vld [vmem:[%s3831_s15 + $0xf78] sm:$0xff]  ;;  %3294 = verf.f32 %v521_v43 }
 0x184   : > { %v4611_v35 = vld [vmem:[%s3829_s12 + $0xf8] sm:$0xff]  ;;  %3296 = verf.f32 %v530_v47  ;;  %v562_v47 = vmul.f32 0.70710677, %v4657_v45 }
 0x185   : > { %2721 = vmatpush1.bf16.msra.mxu0 %v2720_v57  ;;  %v2994_v57 = vpack.c.bf16 %v1226_v20, %v1222_v44  ;;  %v538_v41 = vmul.f32 0.70710677, %v4611_v35  ;;  %3298 = verf.f32 %v529_v62  ;;  %v482_v62 = vmul.f32 0.5, %v4611_v35 }
 0x186   : > { %2977 = vmatpush1.bf16.msra.mxu1 %v2976_v58  ;;  %2723 = vmatprep.subr.bf16.mxu0 %v2722_v61  ;;  %v1225_v58 = vld [vmem:[%s3831_s15 + $0xf70] sm:$0xff]  ;;  %v1228_v61 = vld [vmem:[%s3831_s15 + $0xf88] sm:$0xff] }
 0x187   : > { %2979 = vmatprep.subr.bf16.mxu1 %v2978_v48  ;;  %v1234_v48 = vld [vmem:[%s3831_s15 + $0xfb8] sm:$0xff]  ;;  %v2996_v23 = vpack.c.bf16 %v1225_v58, %v1221_v13  ;;  %3300 = verf.f32 %v538_v41  ;;  %v481_v41 = vmul.f32 0.5, %v4624_v3  ;;  %v498_v3 = vmul.f32 0.5, %v4643_v25 }
 0x188   : > { %v2998_v52 = vpack.c.bf16 %v1234_v48, %v1230_v5  ;;  %3302 = verf.f32 %v537_v14 }
 0x189   : > { %2725 = vmatpush1.bf16.msra.mxu0 %v2724_v8  ;;  %v2742_v8 = vpack.c.bf16 %v1232_v33, %v1228_v61  ;;  %3304 = verf.f32 %v546_v16 }
 0x18a   : > { %2981 = vmatpush1.bf16.msra.mxu1 %v2980_v6  ;;  %2727 = vmatprep.subr.bf16.mxu0 %v2726_v7  ;;  %v1227_v6 = vld [vmem:[%s3831_s15 + $0xf80] sm:$0xff] }
 0x18b   : > { %2983 = vmatprep.subr.bf16.mxu1 %v2982_v9  ;;  %v1231_v7 = vld [vmem:[%s3831_s15 + $0xfa0] sm:$0xff]  ;;  %v1236_v9 = vld [vmem:[%s3831_s15 + $0xfc8] sm:$0xff] }
 0x18d   : > { %2729 = vmatpush1.bf16.msra.mxu0 %v2728_v17  ;;  %v4640_v17 = vld [vmem:[%s3829_s12 + $0x130] sm:$0xff] }
 0x18e   : > { %2985 = vmatpush1.bf16.msra.mxu1 %v2984_v21  ;;  %2731 = vmatprep.subr.bf16.mxu0 %v2730_v22  ;;  %v3291_v21 = vpop.eup %3290  ;;  %v2744_v22 = vpack.c.bf16 %v1231_v7, %v1227_v6  ;;  %v545_v11 = vmul.f32 0.70710677, %v4640_v17  ;;  %v489_v0 = vmul.f32 0.5, %v4640_v17  ;;  %v506_v17 = vmul.f32 0.5, %v4657_v45 }
 0x18f   : > { %2987 = vmatprep.subr.bf16.mxu1 %v2986_v36  ;;  %v3293_v26 = vpop.eup %3292  ;;  %v2746_v36 = vpack.c.bf16 %v1240_v12, %v1236_v9 }
 0x190   : > { %v3295_v38 = vpop.eup %3294  ;;  %3306 = verf.f32 %v545_v11 }
 0x191   : > { %2733 = vmatpush1.bf16.msra.mxu0 %v2732_v63  ;;  %v625_v63 = vadd.f32 1.0, %v3291_v21  ;;  %v3297_v42 = vpop.eup %3296  ;;  %v633_v20 = vadd.f32 1.0, %v3295_v38 }
 0x192   : > { %2989 = vmatpush1.bf16.msra.mxu1 %v2988_v28  ;;  %2735 = vmatprep.subr.bf16.mxu0 %v2734_v31  ;;  %v554_v28 = vmul.f32 0.70710677, %v4643_v25  ;;  %v4653_v31 = vld [vmem:[%s3829_s12 + $0x170] sm:$0xff]  ;;  %v3299_v32 = vpop.eup %3298  ;;  %v642_v55 = vadd.f32 1.0, %v3297_v42 }
 0x193   : > { %2991 = vmatprep.subr.bf16.mxu1 %v2990_v24  ;;  %v634_v24 = vadd.f32 1.0, %v3293_v26  ;;  %v553_v43 = vmul.f32 0.70710677, %v4653_v31  ;;  %v681_v44 = vmul.f32 %v625_v63, %v457_v34  ;;  %v3301_v56 = vpop.eup %3300  ;;  %v689_v37 = vmul.f32 %v633_v20, %v465_v30 }
 0x194   : > { %3308 = verf.f32 %v554_v28  ;;  %v641_v58 = vadd.f32 1.0, %v3299_v32  ;;  %v3303_v61 = vpop.eup %3302  ;;  %v650_v5 = vadd.f32 1.0, %v3301_v56 }
 0x195   : > { %2737 = vmatpush1.bf16.msra.mxu0 %v2736_v49  ;;  %v449_v49 = vld [vmem:[%s3829_s12 + $0x1b0] sm:$0x1]  ;;  %3310 = verf.f32 %v553_v43  ;;  %v3305_v48 = vpop.eup %3304 }
 0x196   : > { %2993 = vmatpush1.bf16.msra.mxu1 %v2992_v51  ;;  %2739 = vmatprep.subr.bf16.mxu0 %v2738_v53  ;;  %v690_v51 = vmul.f32 %v634_v24, %v466_v40  ;;  %v474_v53 = vmul.f32 0.5, %v4595_v54  ;;  %v561_v13 = vmul.f32 0.70710677, %v449_v49  ;;  %3312 = verf.f32 %v562_v47 }
 0x197   : > { %2995 = vmatprep.subr.bf16.mxu1 %v2994_v57  ;;  %v473_v57 = vmul.f32 0.5, %v4608_v50  ;;  %v706_v50 = vmul.f32 %v650_v5, %v482_v62  ;;  %v658_v6 = vadd.f32 1.0, %v3305_v48 }
 0x198   : > { %v698_v33 = vmul.f32 %v642_v55, %v474_v53  ;;  %3314 = verf.f32 %v561_v13 }
 0x199   : > { %2741 = vmatpush1.bf16.msra.mxu0 %v2740_v4  ;;  %v697_v54 = vmul.f32 %v641_v58, %v473_v57  ;;  %v649_v4 = vadd.f32 1.0, %v3303_v61  ;;  %v2103_v58 = vld [vmem:[%s3842_s9] sm:$0xf] (!%p2484_p1) }
 0x19a   : > { %2997 = vmatpush1.bf16.msra.mxu1 %v2996_v23  ;;  %2743 = vmatprep.subr.bf16.mxu0 %v2742_v8  ;;  %v3307_v23 = vpop.eup %3306  ;;  %v490_v8 = vmul.f32 0.5, %v4627_v59  ;;  %v497_v59 = vmul.f32 0.5, %v4653_v31 }
 0x19b   : > { %2999 = vmatprep.subr.bf16.mxu1 %v2998_v52  ;;  %v705_v35 = vmul.f32 %v649_v4, %v481_v41  ;;  %v657_v52 = vadd.f32 1.0, %v3307_v23 }
 0x19c   : > { %v714_v9 = vmul.f32 %v658_v6, %v490_v8 }
 0x19d   : > { %2745 = vmatpush1.bf16.msra.mxu0 %v2744_v22  ;;  %v713_v18 = vmul.f32 %v657_v52, %v489_v0 }
 0x19e   : > { %3001 = vmatpush1.bf16.msra.mxu1 %v3000_v1  ;;  %2747 = vmatprep.subr.bf16.mxu0 %v2746_v36  ;;  %v3309_v7 = vpop.eup %3308  ;;  %v505_v1 = vmul.f32 0.5, %v449_v49 }
 0x19f   : > { %3003 = vmatprep.subr.bf16.mxu1 %v3002_v29  ;;  %v3311_v46 = vpop.eup %3310  ;;  %v666_v12 = vadd.f32 1.0, %v3309_v7 }
 0x1a0   : > { %v3313_v14 = vpop.eup %3312  ;;  %v665_v19 = vadd.f32 1.0, %v3311_v46 }
 0x1a1   : > { %2749 = vmatpush1.bf16.msra.mxu0 %v2748_v39  ;;  %v722_v21 = vmul.f32 %v666_v12, %v498_v3  ;;  %v674_v22 = vadd.f32 1.0, %v3313_v14 }
 0x1a2   : > { %3005 = vmatpush1.bf16.msra.mxu1 %v3004_v60  ;;  %v3315_v16 = vpop.eup %3314  ;;  %v721_v26 = vmul.f32 %v665_v19, %v497_v59 }
 0x1a3   : > { %v673_v25 = vadd.f32 1.0, %v3315_v16  ;;  %v730_v36 = vmul.f32 %v674_v22, %v506_v17 }
 0x1a4   : > { %1629 = vmatmul.mubr.f32.vlgmr.msra.gmra.mrb[0].mxu0 %v681_v44 }
 0x1a5   : > { %2057 = vmatmul.mubr.f32.vlgmr.msra.gmra.mrb[0].mxu1 %v681_v44  ;;  %1634 = vmatprep.mubr.f32.mxu0 %v690_v51  ;;  %v729_v15 = vmul.f32 %v673_v25, %v505_v1 }
 0x1a6   : > { %2062 = vmatprep.mubr.f32.mxu1 %v690_v51 }
 0x1a8   : > { %1635 = vmatmul.mubr.f32.gmra.mrb[2].mxu0 %v689_v37 }
 0x1a9   : > { %2063 = vmatmul.mubr.f32.gmra.mrb[2].mxu1 %v689_v37  ;;  %1640 = vmatprep.mubr.f32.mxu0 %v698_v33  ;;  %v2105_v37 = vlaneseq (!%p2484_p1) }
 0x1aa   : > { %2068 = vmatprep.mubr.f32.mxu1 %v698_v33 }
 0x1ab   : > { %v2106_v57 = vshrl.u32 (!%p2484_p1), %v2105_v37, 7 }
 0x1ac   : > { %1641 = vmatmul.mubr.f32.gmra.mrb[4].mxu0 %v697_v54 }
 0x1ad   : > { %2069 = vmatmul.mubr.f32.gmra.mrb[4].mxu1 %v697_v54  ;;  %1646 = vmatprep.mubr.f32.mxu0 %v706_v50  ;;  %v2107_v61 = vsub.s32 (!%p2484_p1), 0, %v2106_v57  ;;  %v2111_v33 = vsub.s32 (!%p2484_p1), 1, %v2106_v57  ;;  %v2115_v62 = vsub.s32 (!%p2484_p1), 2, %v2106_v57  ;;  %v2119_v5 = vsub.s32 (!%p2484_p1), 3, %v2106_v57 }
 0x1ae   : > { %2074 = vmatprep.mubr.f32.mxu1 %v706_v50 }
 0x1af   : > { %v2108_v48 = vrot.slane (!%p2484_p1), %v2103_v58, %v2107_v61  ;;  %v2112_v54 = vrot.slane (!%p2484_p1), %v2103_v58, %v2111_v33  ;;  %v2116_v41 = vrot.slane (!%p2484_p1), %v2103_v58, %v2115_v62  ;;  %v2120_v4 = vrot.slane (!%p2484_p1), %v2103_v58, %v2119_v5 }
 0x1b0   : > { %1647 = vmatmul.mubr.f32.gmra.mrb[6].mxu0 %v705_v35 }
 0x1b1   : > { %2075 = vmatmul.mubr.f32.gmra.mrb[6].mxu1 %v705_v35  ;;  %1652 = vmatprep.mubr.f32.mxu0 %v714_v9 }
 0x1b2   : > { %2080 = vmatprep.mubr.f32.mxu1 %v714_v9 }
 0x1b4   : > { %1653 = vmatmul.mubr.f32.gmra.mrb[8].mxu0 %v713_v18 }
 0x1b5   : > { %2081 = vmatmul.mubr.f32.gmra.mrb[8].mxu1 %v713_v18  ;;  %1658 = vmatprep.mubr.f32.mxu0 %v722_v21 }
 0x1b6   : > { %2086 = vmatprep.mubr.f32.mxu1 %v722_v21 }
 0x1b8   : > { %1659 = vmatmul.mubr.f32.gmra.mrb[10].mxu0 %v721_v26 }
 0x1b9   : > { %2087 = vmatmul.mubr.f32.gmra.mrb[10].mxu1 %v721_v26  ;;  %1664 = vmatprep.mubr.f32.mxu0 %v730_v36 }
 0x1ba   : > { %2092 = vmatprep.mubr.f32.mxu1 %v730_v36 }
 0x1bc   : > { %1665 = vmatmul.mubr.f32.gmra.mrb[12].mxu0 %v729_v15 }
 0x1bd   : > { %2093 = vmatmul.mubr.f32.gmra.mrb[12].mxu1 %v729_v15 }
 0x277   : > { %v4672_v27 = vpop.f32.mrb[0].mxu0 }
 0x278   : > { %v4674_v29 = vpop.f32.mrb[0].mxu1  ;;  %v4676_v2 = vpop.f32.mrb[1].mxu0  ;;  %v2125_v23 = vadd.f32 (!%p2484_p1), %v2108_v48, %v4672_v27 }
 0x279   : > { %v4678_v10 = vpop.f32.mrb[1].mxu1  ;;  %v2126_v50 = vadd.f32 (!%p2484_p1), %v2112_v54, %v4676_v2  ;;  %v2127_v8 = vadd.f32 (!%p2484_p1), %v2116_v41, %v4674_v29 }
 0x27a   : > { %v2128_v6 = vadd.f32 (!%p2484_p1), %v2120_v4, %v4678_v10  ;;  %2153 = vst [vmem:[%s4730_s29] sm:$0xff] (!%p2484_p1), %v2125_v23 }
 0x27b   : > { %v4680_v11 = vpop.f32.mrb[2].mxu0  ;;  %2154 = vst [vmem:[%s4730_s29 + $0x8] sm:$0xff] (!%p2484_p1), %v2126_v50  ;;  %2155 = vst [vmem:[%s4730_s29 + $0x10] sm:$0xff] (!%p2484_p1), %v2127_v8 }
 0x27c   : > { %v4682_v34 = vpop.f32.mrb[2].mxu1  ;;  %v4684_v63 = vpop.f32.mrb[3].mxu0  ;;  %v2129_v7 = vadd.f32 (!%p2484_p1), %v2108_v48, %v4680_v11  ;;  %2156 = vst [vmem:[%s4730_s29 + $0x18] sm:$0xff] (!%p2484_p1), %v2128_v6 }
 0x27d   : > { %v4686_v28 = vpop.f32.mrb[3].mxu1  ;;  %v2130_v35 = vadd.f32 (!%p2484_p1), %v2112_v54, %v4684_v63  ;;  %v2131_v0 = vadd.f32 (!%p2484_p1), %v2116_v41, %v4682_v34 }
 0x27e   : > { %v2132_v52 = vadd.f32 (!%p2484_p1), %v2120_v4, %v4686_v28  ;;  %2157 = vst [vmem:[%s4730_s29 + $0x20] sm:$0xff] (!%p2484_p1), %v2129_v7 }
 0x27f   : > { %v4688_v31 = vpop.f32.mrb[4].mxu0  ;;  %2158 = vst [vmem:[%s4730_s29 + $0x28] sm:$0xff] (!%p2484_p1), %v2130_v35  ;;  %2159 = vst [vmem:[%s4730_s29 + $0x30] sm:$0xff] (!%p2484_p1), %v2131_v0 }
 0x280   : > { %v4690_v38 = vpop.f32.mrb[4].mxu1  ;;  %v4692_v39 = vpop.f32.mrb[5].mxu0  ;;  %v2133_v46 = vadd.f32 (!%p2484_p1), %v2108_v48, %v4688_v31  ;;  %2160 = vst [vmem:[%s4730_s29 + $0x38] sm:$0xff] (!%p2484_p1), %v2132_v52 }
 0x281   : > { %v4694_v40 = vpop.f32.mrb[5].mxu1  ;;  %v2134_v9 = vadd.f32 (!%p2484_p1), %v2112_v54, %v4692_v39  ;;  %v2135_v3 = vadd.f32 (!%p2484_p1), %v2116_v41, %v4690_v38 }
 0x282   : > { %v2136_v12 = vadd.f32 (!%p2484_p1), %v2120_v4, %v4694_v40  ;;  %2161 = vst [vmem:[%s4730_s29 + $0x40] sm:$0xff] (!%p2484_p1), %v2133_v46 }
 0x283   : > { %v4696_v24 = vpop.f32.mrb[6].mxu0  ;;  %2162 = vst [vmem:[%s4730_s29 + $0x48] sm:$0xff] (!%p2484_p1), %v2134_v9  ;;  %2163 = vst [vmem:[%s4730_s29 + $0x50] sm:$0xff] (!%p2484_p1), %v2135_v3 }
 0x284   : > { %v4698_v45 = vpop.f32.mrb[6].mxu1  ;;  %v4700_v42 = vpop.f32.mrb[7].mxu0  ;;  %v2137_v14 = vadd.f32 (!%p2484_p1), %v2108_v48, %v4696_v24  ;;  %2164 = vst [vmem:[%s4730_s29 + $0x58] sm:$0xff] (!%p2484_p1), %v2136_v12 }
 0x285   : > { %v4702_v60 = vpop.f32.mrb[7].mxu1  ;;  %v2138_v18 = vadd.f32 (!%p2484_p1), %v2112_v54, %v4700_v42  ;;  %v2139_v59 = vadd.f32 (!%p2484_p1), %v2116_v41, %v4698_v45 }
 0x286   : > { %v2140_v19 = vadd.f32 (!%p2484_p1), %v2120_v4, %v4702_v60  ;;  %2165 = vst [vmem:[%s4730_s29 + $0x60] sm:$0xff] (!%p2484_p1), %v2137_v14 }
 0x287   : > { %v4704_v30 = vpop.f32.mrb[8].mxu0  ;;  %2166 = vst [vmem:[%s4730_s29 + $0x68] sm:$0xff] (!%p2484_p1), %v2138_v18  ;;  %2167 = vst [vmem:[%s4730_s29 + $0x70] sm:$0xff] (!%p2484_p1), %v2139_v59 }
 0x288   : > { %v4706_v43 = vpop.f32.mrb[8].mxu1  ;;  %v4708_v44 = vpop.f32.mrb[9].mxu0  ;;  %v2141_v16 = vadd.f32 (!%p2484_p1), %v2108_v48, %v4704_v30  ;;  %2168 = vst [vmem:[%s4730_s29 + $0x78] sm:$0xff] (!%p2484_p1), %v2140_v19 }
 0x289   : > { %v4710_v20 = vpop.f32.mrb[9].mxu1  ;;  %v2142_v21 = vadd.f32 (!%p2484_p1), %v2112_v54, %v4708_v44  ;;  %v2143_v17 = vadd.f32 (!%p2484_p1), %v2116_v41, %v4706_v43 }
 0x28a   : > { %v2144_v22 = vadd.f32 (!%p2484_p1), %v2120_v4, %v4710_v20  ;;  %2169 = vst [vmem:[%s4730_s29 + $0x80] sm:$0xff] (!%p2484_p1), %v2141_v16 }
 0x28b   : > { %v4712_v47 = vpop.f32.mrb[10].mxu0  ;;  %2102 = sbr.rel (%p2484_p1) target bundleno = 661 (0x295), region = 67  ;;  %2170 = vst [vmem:[%s4730_s29 + $0x88] sm:$0xff] (!%p2484_p1), %v2142_v21  ;;  %2171 = vst [vmem:[%s4730_s29 + $0x90] sm:$0xff] (!%p2484_p1), %v2143_v17 }
 0x28c   : > { %v4714_v49 = vpop.f32.mrb[10].mxu1  ;;  %v4716_v32 = vpop.f32.mrb[11].mxu0  ;;  %v2145_v26 = vadd.f32 (!%p2484_p1), %v2108_v48, %v4712_v47  ;;  %2172 = vst [vmem:[%s4730_s29 + $0x98] sm:$0xff] (!%p2484_p1), %v2144_v22 }
 0x28d   : > { %v4718_v51 = vpop.f32.mrb[11].mxu1  ;;  %v2146_v1 = vadd.f32 (!%p2484_p1), %v2112_v54, %v4716_v32  ;;  %v2147_v25 = vadd.f32 (!%p2484_p1), %v2116_v41, %v4714_v49 }
 0x28e   : > { %v2148_v36 = vadd.f32 (!%p2484_p1), %v2120_v4, %v4718_v51  ;;  %2173 = vst [vmem:[%s4730_s29 + $0xa0] sm:$0xff] (!%p2484_p1), %v2145_v26 }
 0x28f   : > { %v4720_v53 = vpop.f32.mrb[12].mxu0  ;;  %2174 = vst [vmem:[%s4730_s29 + $0xa8] sm:$0xff] (!%p2484_p1), %v2146_v1  ;;  %2175 = vst [vmem:[%s4730_s29 + $0xb0] sm:$0xff] (!%p2484_p1), %v2147_v25 }
 0x290   : > { %v4722_v55 = vpop.f32.mrb[12].mxu1  ;;  %v4724_v56 = vpop.f32.mrb[13].mxu0  ;;  %v2149_v15 = vadd.f32 (!%p2484_p1), %v2108_v48, %v4720_v53  ;;  %2176 = vst [vmem:[%s4730_s29 + $0xb8] sm:$0xff] (!%p2484_p1), %v2148_v36 }
 0x291   : > { %v4726_v13 = vpop.f32.mrb[13].mxu1  ;;  %v2150_v37 = vadd.f32 (!%p2484_p1), %v2112_v54, %v4724_v56  ;;  %v2151_v57 = vadd.f32 (!%p2484_p1), %v2116_v41, %v4722_v55 }
 0x292   : > { %v2152_v58 = vadd.f32 %v2120_v4, %v4726_v13  ;;  %2177 = vst [vmem:[%s4730_s29 + $0xc0] sm:$0x1] %v2149_v15 }
 0x293   : > { %2178 = vst [vmem:[%s4730_s29 + $0xc8] sm:$0x1] %v2150_v37  ;;  %2179 = vst [vmem:[%s4730_s29 + $0xd0] sm:$0x1] %v2151_v57 }
 0x294   : > { %2180 = vst [vmem:[%s4730_s29 + $0xd8] sm:$0x1] %v2152_v58 }
 0x295 PF: > { %p2485_p7 = scmp.le.s32.totalorder %s3466_s20, 0 }
 0x296   : > { %v2185_v61 = vld [vmem:[%s4730_s29] sm:$0xff] (!%p2485_p7)  ;;  %v2186_v33 = vld [vmem:[%s4730_s29 + $0x8] sm:$0xff] (!%p2485_p7)  ;;  %v2187_v62 = vld [vmem:[%s4730_s29 + $0x10] sm:$0xff] (!%p2485_p7) }
 0x297   : > { %2184 = sbr.rel (%p2485_p7) target bundleno = 679 (0x2a7), region = 71  ;;  %v2213_v5 = vadd.f32 (!%p2485_p7), %v2185_v61, %v4672_v27  ;;  %v2214_v48 = vadd.f32 (!%p2485_p7), %v2186_v33, %v4676_v2  ;;  %v2215_v54 = vadd.f32 (!%p2485_p7), %v2187_v62, %v4674_v29  ;;  %v2188_v41 = vld [vmem:[%s4730_s29 + $0x18] sm:$0xff] (!%p2485_p7)  ;;  %v2189_v4 = vld [vmem:[%s4730_s29 + $0x20] sm:$0xff] (!%p2485_p7)  ;;  %v2190_v23 = vld [vmem:[%s4730_s29 + $0x28] sm:$0xff] (!%p2485_p7) }
 0x298   : > { %v2216_v50 = vadd.f32 (!%p2485_p7), %v2188_v41, %v4678_v10  ;;  %v2217_v8 = vadd.f32 (!%p2485_p7), %v2189_v4, %v4680_v11  ;;  %v2218_v6 = vadd.f32 (!%p2485_p7), %v2190_v23, %v4684_v63  ;;  %v2191_v27 = vld [vmem:[%s4730_s29 + $0x30] sm:$0xff] (!%p2485_p7)  ;;  %v2192_v7 = vld [vmem:[%s4730_s29 + $0x38] sm:$0xff] (!%p2485_p7)  ;;  %v2193_v2 = vld [vmem:[%s4730_s29 + $0x40] sm:$0xff] (!%p2485_p7) }
 0x299   : > { %2241 = vst [vmem:[%s4730_s29] sm:$0xff] (!%p2485_p7), %v2213_v5  ;;  %2242 = vst [vmem:[%s4730_s29 + $0x8] sm:$0xff] (!%p2485_p7), %v2214_v48  ;;  %v2219_v29 = vadd.f32 (!%p2485_p7), %v2191_v27, %v4682_v34  ;;  %v2220_v10 = vadd.f32 (!%p2485_p7), %v2192_v7, %v4686_v28  ;;  %v2221_v11 = vadd.f32 (!%p2485_p7), %v2193_v2, %v4688_v31  ;;  %v2194_v35 = vld [vmem:[%s4730_s29 + $0x48] sm:$0xff] (!%p2485_p7)  ;;  %v2195_v63 = vld [vmem:[%s4730_s29 + $0x50] sm:$0xff] (!%p2485_p7) }
 0x29a   : > { %2243 = vst [vmem:[%s4730_s29 + $0x10] sm:$0xff] (!%p2485_p7), %v2215_v54  ;;  %v2196_v0 = vld [vmem:[%s4730_s29 + $0x58] sm:$0xff] (!%p2485_p7)  ;;  %2244 = vst [vmem:[%s4730_s29 + $0x18] sm:$0xff] (!%p2485_p7), %v2216_v50  ;;  %v2222_v52 = vadd.f32 (!%p2485_p7), %v2194_v35, %v4692_v39  ;;  %v2223_v34 = vadd.f32 (!%p2485_p7), %v2195_v63, %v4690_v38  ;;  %v2197_v46 = vld [vmem:[%s4730_s29 + $0x60] sm:$0xff] (!%p2485_p7) }
 0x29b   : > { %2245 = vst [vmem:[%s4730_s29 + $0x20] sm:$0xff] (!%p2485_p7), %v2217_v8  ;;  %2246 = vst [vmem:[%s4730_s29 + $0x28] sm:$0xff] (!%p2485_p7), %v2218_v6  ;;  %v2224_v28 = vadd.f32 (!%p2485_p7), %v2196_v0, %v4694_v40  ;;  %v2198_v31 = vld [vmem:[%s4730_s29 + $0x68] sm:$0xff] (!%p2485_p7)  ;;  %v2199_v9 = vld [vmem:[%s4730_s29 + $0x70] sm:$0xff] (!%p2485_p7)  ;;  %v2225_v3 = vadd.f32 (!%p2485_p7), %v2197_v46, %v4696_v24 }
 0x29c   : > { %2247 = vst [vmem:[%s4730_s29 + $0x30] sm:$0xff] (!%p2485_p7), %v2219_v29  ;;  %2248 = vst [vmem:[%s4730_s29 + $0x38] sm:$0xff] (!%p2485_p7), %v2220_v10  ;;  %v2226_v39 = vadd.f32 (!%p2485_p7), %v2198_v31, %v4700_v42  ;;  %v2227_v38 = vadd.f32 (!%p2485_p7), %v2199_v9, %v4698_v45  ;;  %v2200_v12 = vld [vmem:[%s4730_s29 + $0x78] sm:$0xff] (!%p2485_p7)  ;;  %v2201_v40 = vld [vmem:[%s4730_s29 + $0x80] sm:$0xff] (!%p2485_p7) }
 0x29d   : > { %2249 = vst [vmem:[%s4730_s29 + $0x40] sm:$0xff] (!%p2485_p7), %v2221_v11  ;;  %v2202_v14 = vld [vmem:[%s4730_s29 + $0x88] sm:$0xff] (!%p2485_p7)  ;;  %2250 = vst [vmem:[%s4730_s29 + $0x48] sm:$0xff] (!%p2485_p7), %v2222_v52  ;;  %v2228_v18 = vadd.f32 (!%p2485_p7), %v2200_v12, %v4702_v60  ;;  %v2229_v24 = vadd.f32 (!%p2485_p7), %v2201_v40, %v4704_v30  ;;  %v2203_v59 = vld [vmem:[%s4730_s29 + $0x90] sm:$0xff] (!%p2485_p7) }
 0x29e   : > { %2251 = vst [vmem:[%s4730_s29 + $0x50] sm:$0xff] %v2223_v34  ;;  %2252 = vst [vmem:[%s4730_s29 + $0x58] sm:$0xff] %v2224_v28  ;;  %v2230_v42 = vadd.f32 %v2202_v14, %v4708_v44  ;;  %v2204_v45 = vld [vmem:[%s4730_s29 + $0x98] sm:$0xff]  ;;  %v2205_v19 = vld [vmem:[%s4730_s29 + $0xa0] sm:$0xff]  ;;  %v2231_v16 = vadd.f32 %v2203_v59, %v4706_v43 }
 0x29f   : > { %2253 = vst [vmem:[%s4730_s29 + $0x60] sm:$0xff] %v2225_v3  ;;  %2254 = vst [vmem:[%s4730_s29 + $0x68] sm:$0xff] %v2226_v39  ;;  %v2232_v60 = vadd.f32 %v2204_v45, %v4710_v20  ;;  %v2233_v30 = vadd.f32 %v2205_v19, %v4712_v47  ;;  %v2206_v21 = vld [vmem:[%s4730_s29 + $0xa8] sm:$0xff]  ;;  %v2207_v44 = vld [vmem:[%s4730_s29 + $0xb0] sm:$0xff] }
 0x2a0   : > { %2255 = vst [vmem:[%s4730_s29 + $0x70] sm:$0xff] %v2227_v38  ;;  %v2208_v17 = vld [vmem:[%s4730_s29 + $0xb8] sm:$0xff]  ;;  %2256 = vst [vmem:[%s4730_s29 + $0x78] sm:$0xff] %v2228_v18  ;;  %v2234_v22 = vadd.f32 %v2206_v21, %v4716_v32  ;;  %v2235_v43 = vadd.f32 %v2207_v44, %v4714_v49  ;;  %v2209_v26 = vld [vmem:[%s4730_s29 + $0xc0] sm:$0x1] }
 0x2a1   : > { %2257 = vst [vmem:[%s4730_s29 + $0x80] sm:$0xff] %v2229_v24  ;;  %2258 = vst [vmem:[%s4730_s29 + $0x88] sm:$0xff] %v2230_v42  ;;  %v2236_v20 = vadd.f32 %v2208_v17, %v4718_v51  ;;  %v2210_v47 = vld [vmem:[%s4730_s29 + $0xc8] sm:$0x1]  ;;  %v2211_v1 = vld [vmem:[%s4730_s29 + $0xd0] sm:$0x1]  ;;  %v2237_v25 = vadd.f32 %v2209_v26, %v4720_v53 }
 0x2a2   : > { %2259 = vst [vmem:[%s4730_s29 + $0x90] sm:$0xff] %v2231_v16  ;;  %2260 = vst [vmem:[%s4730_s29 + $0x98] sm:$0xff] %v2232_v60  ;;  %v2238_v36 = vadd.f32 %v2210_v47, %v4724_v56  ;;  %v2239_v32 = vadd.f32 %v2211_v1, %v4722_v55  ;;  %v2212_v15 = vld [vmem:[%s4730_s29 + $0xd8] sm:$0x1] }
 0x2a3   : > { %2261 = vst [vmem:[%s4730_s29 + $0xa0] sm:$0xff] %v2233_v30  ;;  %2262 = vst [vmem:[%s4730_s29 + $0xa8] sm:$0xff] %v2234_v22  ;;  %v2240_v49 = vadd.f32 %v2212_v15, %v4726_v13 }
 0x2a4   : > { %2263 = vst [vmem:[%s4730_s29 + $0xb0] sm:$0xff] %v2235_v43  ;;  %2264 = vst [vmem:[%s4730_s29 + $0xb8] sm:$0xff] %v2236_v20 }
 0x2a5   : > { %2265 = vst [vmem:[%s4730_s29 + $0xc0] sm:$0x1] %v2237_v25  ;;  %2266 = vst [vmem:[%s4730_s29 + $0xc8] sm:$0x1] %v2238_v36 }
 0x2a6   : > { %2267 = vst [vmem:[%s4730_s29 + $0xd0] sm:$0x1] %v2239_v32  ;;  %2268 = vst [vmem:[%s4730_s29 + $0xd8] sm:$0x1] %v2240_v49 }
 0x2a7 PF: > { %p5015_p2 = scmp.ne.s32.totalorder %s5010_s4, 0 }
 0x2a8   : > { %s2493_s20 = sshll.u32 (%p5015_p2), %s3470_s21, 5  ;;  %v2315_v48 = vld [vmem:[%s4730_s29 + $0x60] sm:$0xff] (%p5015_p2)  ;;  %v2317_v54 = vld [vmem:[%s4730_s29 + $0x68] sm:$0xff] (%p5015_p2)  ;;  %v2319_v41 = vld [vmem:[%s4730_s29 + $0x70] sm:$0xff] (%p5015_p2) }
 0x2a9   : > { %2275 = sbr.rel (!%p5015_p2) target bundleno = 696 (0x2b8), region = 75  ;;  %v2291_v51 = vld [vmem:[%s4730_s29] sm:$0xff] (%p5015_p2)  ;;  %v2293_v53 = vld [vmem:[%s4730_s29 + $0x8] sm:$0xff] (%p5015_p2)  ;;  %s4884_s30 = scalar_lea.vmem (%p5015_p2), %s4987_s3, %s2493_s20  ;;  %v2321_v4 = vld [vmem:[%s4730_s29 + $0x78] sm:$0xff] (%p5015_p2) }
 0x2aa   : > { %v2295_v55 = vld [vmem:[%s4730_s29 + $0x10] sm:$0xff] (%p5015_p2)  ;;  %v2297_v56 = vld [vmem:[%s4730_s29 + $0x18] sm:$0xff] (%p5015_p2)  ;;  %2292 = vst [vmem:[%s4884_s30] sm:$0xff] (%p5015_p2), %v2291_v51  ;;  %2294 = vst [vmem:[%s4884_s30 + $0x8] sm:$0xff] (%p5015_p2), %v2293_v53 }
 0x2ab   : > { %v2299_v13 = vld [vmem:[%s4730_s29 + $0x20] sm:$0xff] (%p5015_p2)  ;;  %v2301_v37 = vld [vmem:[%s4730_s29 + $0x28] sm:$0xff] (%p5015_p2)  ;;  %2296 = vst [vmem:[%s4884_s30 + $0x10] sm:$0xff] (%p5015_p2), %v2295_v55  ;;  %2298 = vst [vmem:[%s4884_s30 + $0x18] sm:$0xff] (%p5015_p2), %v2297_v56 }
 0x2ac   : > { %2300 = vst [vmem:[%s4884_s30 + $0x40] sm:$0xff] (%p5015_p2), %v2299_v13  ;;  %2302 = vst [vmem:[%s4884_s30 + $0x48] sm:$0xff] (%p5015_p2), %v2301_v37  ;;  %v2303_v57 = vld [vmem:[%s4730_s29 + $0x30] sm:$0xff] (%p5015_p2)  ;;  %v2305_v58 = vld [vmem:[%s4730_s29 + $0x38] sm:$0xff] (%p5015_p2) }
 0x2ad   : > { %v2307_v61 = vld [vmem:[%s4730_s29 + $0x40] sm:$0xff] (%p5015_p2)  ;;  %2304 = vst [vmem:[%s4884_s30 + $0x50] sm:$0xff] (%p5015_p2), %v2303_v57  ;;  %2306 = vst [vmem:[%s4884_s30 + $0x58] sm:$0xff] (%p5015_p2), %v2305_v58  ;;  %v2309_v33 = vld [vmem:[%s4730_s29 + $0x48] sm:$0xff] (%p5015_p2) }
 0x2ae   : > { %2308 = vst [vmem:[%s4884_s30 + $0x80] sm:$0xff] (%p5015_p2), %v2307_v61  ;;  %v2311_v62 = vld [vmem:[%s4730_s29 + $0x50] sm:$0xff] (%p5015_p2)  ;;  %v2313_v5 = vld [vmem:[%s4730_s29 + $0x58] sm:$0xff] (%p5015_p2)  ;;  %2310 = vst [vmem:[%s4884_s30 + $0x88] sm:$0xff] (%p5015_p2), %v2309_v33 }
 0x2af   : > { %2312 = vst [vmem:[%s4884_s30 + $0x90] sm:$0xff] (%p5015_p2), %v2311_v62  ;;  %2314 = vst [vmem:[%s4884_s30 + $0x98] sm:$0xff] (%p5015_p2), %v2313_v5  ;;  %v2323_v23 = vld [vmem:[%s4730_s29 + $0x80] sm:$0xff] (%p5015_p2)  ;;  %v2325_v50 = vld [vmem:[%s4730_s29 + $0x88] sm:$0xff] (%p5015_p2) }
 0x2b0   : > { %2316 = vst [vmem:[%s4884_s30 + $0xc0] sm:$0xff] %v2315_v48  ;;  %2318 = vst [vmem:[%s4884_s30 + $0xc8] sm:$0xff] %v2317_v54  ;;  %v2327_v8 = vld [vmem:[%s4730_s29 + $0x90] sm:$0xff]  ;;  %v2329_v6 = vld [vmem:[%s4730_s29 + $0x98] sm:$0xff] }
 0x2b1   : > { %2320 = vst [vmem:[%s4884_s30 + $0xd0] sm:$0xff] %v2319_v41  ;;  %2322 = vst [vmem:[%s4884_s30 + $0xd8] sm:$0xff] %v2321_v4  ;;  %v2331_v27 = vld [vmem:[%s4730_s29 + $0xa0] sm:$0xff]  ;;  %v2333_v7 = vld [vmem:[%s4730_s29 + $0xa8] sm:$0xff] }
 0x2b2   : > { %2324 = vst [vmem:[%s4884_s30 + $0x100] sm:$0xff] %v2323_v23  ;;  %2326 = vst [vmem:[%s4884_s30 + $0x108] sm:$0xff] %v2325_v50  ;;  %v2335_v2 = vld [vmem:[%s4730_s29 + $0xb0] sm:$0xff]  ;;  %v2337_v29 = vld [vmem:[%s4730_s29 + $0xb8] sm:$0xff] }
 0x2b3   : > { %2328 = vst [vmem:[%s4884_s30 + $0x110] sm:$0xff] %v2327_v8  ;;  %2330 = vst [vmem:[%s4884_s30 + $0x118] sm:$0xff] %v2329_v6  ;;  %v2339_v10 = vld [vmem:[%s4730_s29 + $0xc0] sm:$0xff]  ;;  %v2341_v11 = vld [vmem:[%s4730_s29 + $0xc8] sm:$0xff] }
 0x2b4   : > { %2332 = vst [vmem:[%s4884_s30 + $0x140] sm:$0xff] %v2331_v27  ;;  %2334 = vst [vmem:[%s4884_s30 + $0x148] sm:$0xff] %v2333_v7  ;;  %v2343_v35 = vld [vmem:[%s4730_s29 + $0xd0] sm:$0xff]  ;;  %v2345_v63 = vld [vmem:[%s4730_s29 + $0xd8] sm:$0xff] }
 0x2b5   : > { %2336 = vst [vmem:[%s4884_s30 + $0x150] sm:$0xff] %v2335_v2  ;;  %2338 = vst [vmem:[%s4884_s30 + $0x158] sm:$0xff] %v2337_v29 }
 0x2b6   : > { %2340 = vst [vmem:[%s4884_s30 + $0x180] sm:$0xff] %v2339_v10  ;;  %2342 = vst [vmem:[%s4884_s30 + $0x188] sm:$0xff] %v2341_v11 }
 0x2b7   : > { %2344 = vst [vmem:[%s4884_s30 + $0x190] sm:$0xff] %v2343_v35  ;;  %2346 = vst [vmem:[%s4884_s30 + $0x198] sm:$0xff] %v2345_v63 }
 0x2b8 PF: > { %s19_s24 = sadd.s32 1, %s3482_s24   ;;  %s5017_s4 = sld [smem:[#allocation17_spill]] }
 0x2b9   : > { %p4940_p5 = scmp.ge.s32.totalorder %s19_s24, 10   ;;  %s5018_s17 = sld [smem:[#allocation10_spill]] }
 0x2ba   : > { %s5019_s0 = sld [smem:[#allocation16_spill]]  ;;  %s5020_s18 = sld [smem:[#allocation11_spill]] }
 0x2bb   : > { %s5021_s19 = sld [smem:[#allocation15_spill]]  ;;  %s5022_s20 = sld [smem:[#allocation12_spill]] }
 0x2bc   : > { %s5023_s22 = sld [smem:[#allocation13_spill]]  ;;  %s5024_s25 = sld [smem:[#allocation14_spill]] }
 0x2bd   : > { %s5026_s12 = smov %s3438_s13  ;;  %s5027_s13 = smov %s3442_s14 }
 0x2be   : > { %s5028_s14 = smov %s5017_s4  ;;  %s5029_s15 = smov %s3450_s16 }
 0x2bf   : > { %s5030_s16 = smov %s5018_s17  ;;  %s5032_s21 = smov %s3478_s23 }
 0x2c0   : > { %s5031_s17 = smov %s5019_s0  ;;  %18 = sbr.rel (!%p4940_p5) target bundleno = 13 (0xd), region = 147 }
 0x2c2   : > { %s5033_s23 = smov %s5024_s25 }
 0x2c7   :  { %2362 = vsyncpa [#allocation4], 1 }
 0x2c8   :  { %2364 = vsyncpa [#allocation4 + $0x1], 1 }
 0x2c9   :  { %2365 = vsyncpa [#allocation6], 1 }
 0x2ca   :  { %2367 = vsyncpa [#allocation6 + $0x1], 1 }

</bundles_post_ra>
